<compile_context>
chip_gen: v7x
topology: tpu7x:2x2x1
jax: 0.10.0
libtpu: 0.0.40
codegen_flags: <defaults>
</compile_context>

<pallas_src>
import functools
import math

import jax
import jax.numpy as jnp
from jax import lax
from jax.experimental import pallas as pl
from jax.experimental.pallas import tpu as pltpu


LANE = 256       # packed weight-slab lane width (max fan-out after folding)
OUT_COLS = 128   # lane-dense merged output width


# ----------------------------- small helpers --------------------------------

def _elu(x):
    # nn.ELU(alpha=1.0)
    return jnp.where(x > 0, x, jnp.exp(jnp.minimum(x, 0.0)) - 1.0)


def _pad8(r):
    return ((r + 7) // 8) * 8


# --------------------------- parameter packing -------------------------------

class _Packer:
    """Packs (W, b) layers into one (rows, LANE) f32 slab.

    Each W occupies `rows` (8-aligned, >= fan_in) rows and the FULL lane
    width (zero-padded columns); each bias occupies one 8-row block.
    """

    def __init__(self, width):
        self.width = width
        self.chunks = []
        self.off = 0

    def add(self, w, b, rows=None):
        w = jnp.asarray(w, jnp.float32)
        b = jnp.asarray(b, jnp.float32).reshape(-1)
        fin, fout = int(w.shape[0]), int(w.shape[1])
        assert fout <= self.width and int(b.shape[0]) == fout
        rows = _pad8(fin) if rows is None else rows
        assert rows >= fin and rows % 8 == 0
        wm = jnp.zeros((rows, self.width), jnp.float32).at[:fin, :fout].set(w)
        bm = jnp.zeros((8, self.width), jnp.float32).at[0, :fout].set(b)
        w_row = self.off
        self.off += rows
        b_row = self.off
        self.off += 8
        self.chunks += [wm, bm]
        return (w_row, b_row, rows)

    def finalize(self):
        return jnp.concatenate(self.chunks, axis=0)


def _block_diag(mats):
    """Block-diagonal stack of equally shaped (fin, fout) matrices."""
    n = len(mats)
    fin, fout = mats[0].shape
    full = jnp.zeros((n * fin, n * fout), jnp.float32)
    for k, m in enumerate(mats):
        full = full.at[k * fin:(k + 1) * fin, k * fout:(k + 1) * fout].set(m)
    return full


def pack_params(p, *, num_actor_obs, num_critic_obs, num_proprio, num_modes,
                num_actions, tsdyn_hidden, tsdyn_latent, critic_hidden):
    """Pack every parameter of the model into ONE (rows, LANE) f32 slab."""
    pk = _Packer(LANE)
    specs = {}

    # --- NHA: obs -> ... -> num_modes logits -------------------------------
    specs["n0"] = pk.add(p["nw0"], p["nb0"])
    specs["n1"] = pk.add(p["nw1"], p["nb1"], rows=LANE)
    specs["n2"] = pk.add(p["nw2"], p["nb2"], rows=LANE)
    specs["n3"] = pk.add(p["nw3"], p["nb3"], rows=LANE)

    # --- TsDyn: 3 per-mode encoders folded laneways --------------------------
    w0 = jnp.concatenate([p["tw0"][m] for m in range(num_modes)], axis=1)
    b0 = jnp.concatenate([p["tb0"][m].reshape(1, -1) for m in range(num_modes)], axis=1)
    specs["t0"] = pk.add(w0, b0)
    for i in (1, 2, 3):
        W = _block_diag([p[f"tw{i}"][m] for m in range(num_modes)])
        b = jnp.concatenate([p[f"tb{i}"][m].reshape(1, -1) for m in range(num_modes)], axis=1)
        specs[f"t{i}"] = pk.add(W, b, rows=LANE)

    # --- actor ---------------------------------------------------------------
    # Layer 0 input is cat(obs[:, -num_proprio:], representation).  Split the
    # weight so the FULL obs multiplies a zero-padded proprio part (no lane
    # slice / concat of the observation is needed inside the kernel).
    aw0, ab0 = p["aw0"], p["ab0"]
    H0 = aw0.shape[1]
    wp = jnp.zeros((num_actor_obs, H0), jnp.float32)
    wp = wp.at[num_actor_obs - num_proprio:, :].set(aw0[:num_proprio])
    wr = aw0[num_proprio:]
    specs["a0p"] = pk.add(wp, ab0)
    specs["a0r"] = pk.add(wr, jnp.zeros_like(ab0))
    specs["a1"] = pk.add(p["aw1"], p["ab1"], rows=LANE)
    specs["a2"] = pk.add(p["aw2"], p["ab2"], rows=LANE)
    # Final Linear(.., 2*num_actions): even/odd columns are de-interleaved
    # into [alpha cols | beta cols] so no strided slicing is needed in-kernel.
    wl = jnp.concatenate([p["awA"], p["awB"]], axis=1)
    bl = jnp.concatenate([p["abA"], p["abB"]], axis=1)
    specs["aAB"] = pk.add(wl, bl, rows=LANE)

    # --- 4 critics folded laneways -------------------------------------------
    nc = p["cw0"].shape[0]
    cw0 = jnp.concatenate([p["cw0"][c] for c in range(nc)], axis=1)
    cb0 = jnp.concatenate([p["cb0"][c].reshape(1, -1) for c in range(nc)], axis=1)
    specs["c0"] = pk.add(cw0, cb0)
    for i in (1, 2, 3):
        W = _block_diag([p[f"cw{i}"][c] for c in range(nc)])
        b = jnp.concatenate([p[f"cb{i}"][c].reshape(1, -1) for c in range(nc)], axis=1)
        specs[f"c{i}"] = pk.add(W, b, rows=LANE)

    meta = dict(num_modes=num_modes, num_actions=num_actions,
                tsdyn_latent=tsdyn_latent, num_critics=nc)
    return pk.finalize(), specs, meta


# ------------------------------- fused kernel --------------------------------

def _fused_forward_kernel(specs, meta, obs_ref, cobs_ref, w_ref, out_ref):
    num_modes = meta["num_modes"]
    num_actions = meta["num_actions"]
    latent = meta["tsdyn_latent"]
    num_critics = meta["num_critics"]

    obs = obs_ref[...]                              # (B, num_actor_obs)
    cobs = cobs_ref[...]                            # (B, num_critic_obs)
    B = obs.shape[0]
    lane_w = w_ref.shape[1]
    out_cols = out_ref.shape[1]

    def layer(x, name, act=True):
        w_row, b_row, rows = specs[name]
        W = w_ref[w_row:w_row + rows, :]            # full-lane, 8-aligned read
        b = w_ref[b_row:b_row + 1, :]
        z = jnp.dot(x, W, preferred_element_type=jnp.float32) + b
        return _elu(z) if act else z

    # ---- NHA: MLP -> logits -> masked softmax over the first num_modes lanes
    h = layer(obs, "n0")
    h = layer(h, "n1")
    h = layer(h, "n2")
    logits = layer(h, "n3", act=False)              # (B, LANE), real in 0:num_modes
    lane = lax.broadcasted_iota(jnp.int32, (B, lane_w), 1)
    valid = lane < num_modes
    ml = jnp.where(valid, logits, -1e30)
    mmax = jnp.max(ml, axis=-1, keepdims=True)
    e = jnp.where(valid, jnp.exp(ml - mmax), 0.0)
    denom = jnp.sum(e, axis=-1, keepdims=True)
    probs = e * pl.reciprocal(denom, approx=True)   # zeros beyond num_modes

    # Straight-through "sample": forward value is a one-hot.
    # TODO(synk): torch.multinomial draws a random category; deterministic
    # argmax is used here so the kernel is reproducible.
    maxp = jnp.max(probs, axis=-1, keepdims=True)
    idx = jnp.min(jnp.where(probs >= maxp, lane, lane_w), axis=-1, keepdims=True)
    one_hot = (lane == idx).astype(jnp.float32)     # (B, LANE)

    # ---- TsDyn: 3 per-mode encoders as lane-concatenated / block-diag matmuls
    # TODO(synk): VAE class is not provided; get_representation() is modelled
    # as the VAE encoder MLP producing the tsdyn_latent_dims-dim latent mean.
    t = layer(obs, "t0")
    t = layer(t, "t1")
    t = layer(t, "t2")
    t = layer(t, "t3", act=False)                   # lanes m*latent:(m+1)*latent
    rep = one_hot[:, 0:1] * t[:, 0:latent]
    for m in range(1, num_modes):
        rep = rep + one_hot[:, m:m + 1] * t[:, m * latent:(m + 1) * latent]

    # ---- actor: layer 0 = obs @ Wp(zero-padded proprio rows) + rep @ Wr + b
    wp_row, b0_row, wp_rows = specs["a0p"]
    wr_row, _, wr_rows = specs["a0r"]
    a = _elu(jnp.dot(obs, w_ref[wp_row:wp_row + wp_rows, :],
                     preferred_element_type=jnp.float32)
             + jnp.dot(rep, w_ref[wr_row:wr_row + wr_rows, :],
                       preferred_element_type=jnp.float32)
             + w_ref[b0_row:b0_row + 1, :])
    a = layer(a, "a1")
    a = layer(a, "a2")
    ab = layer(a, "aAB")                            # ELU(final); cols [alpha | beta]
    alpha = jnp.maximum(ab[:, :num_actions], 1e-6)
    beta = jnp.maximum(ab[:, num_actions:2 * num_actions], 1e-6)
    actions = alpha * pl.reciprocal(alpha + beta, approx=True) * 6.0 - 3.0

    # ---- 4 critics folded into block-diagonal matmuls; values in lanes 0:4
    c = layer(cobs, "c0")
    c = layer(c, "c1")
    c = layer(c, "c2")
    c = layer(c, "c3", act=False)
    values = c[:, :num_critics]                     # (B, 4)

    # ---- single lane-dense output slab --------------------------------------
    used = num_actions + 2 * num_modes + num_critics
    pad = jnp.zeros((B, out_cols - used), jnp.float32)
    out_ref[...] = jnp.concatenate(
        [actions, one_hot[:, :num_modes], probs[:, :num_modes], values, pad],
        axis=-1)


def forward(obs, critic_obs, packed):
    """Fused act_inference + evaluate.

    Returns (actions, mode_latent, probs, value, glide_value, push_value, reg_value).
    """
    w_slab, specs, meta = packed
    B = obs.shape[0]
    vmem = pl.BlockSpec(memory_space=pltpu.MemorySpace.VMEM)
    kernel = functools.partial(_fused_forward_kernel, specs, meta)
    out = pl.pallas_call(
        kernel,
        out_shape=jax.ShapeDtypeStruct((B, OUT_COLS), jnp.float32),
        in_specs=[vmem, vmem, vmem],
        out_specs=vmem,
    )(obs, critic_obs, w_slab)

    na, nm = meta["num_actions"], meta["num_modes"]
    actions = out[:, :na]
    mode_latent = out[:, na:na + nm]
    probs = out[:, na + nm:na + 2 * nm]
    v0 = na + 2 * nm
    value = out[:, v0:v0 + 1]
    glide = out[:, v0 + 1:v0 + 2]
    push = out[:, v0 + 2:v0 + 3]
    reg = out[:, v0 + 3:v0 + 4]
    return actions, mode_latent, probs, value, glide, push, reg


# --------------------------- parameter construction --------------------------

def _linear(key, fan_in, fan_out):
    kw, kb = jax.random.split(key)
    w = jax.random.normal(kw, (fan_in, fan_out), jnp.float32) / math.sqrt(fan_in)
    b = 0.01 * jax.random.normal(kb, (1, fan_out), jnp.float32)
    return w, b


def make_params(key, *, num_actor_obs, num_critic_obs, num_actions, num_proprio,
                num_modes, actor_hidden, critic_hidden, nha_hidden,
                tsdyn_hidden, tsdyn_latent):
    keys = iter(jax.random.split(key, 64))
    p = {}

    # NHA: num_actor_obs -> nha_hidden -> num_modes
    dims = [num_actor_obs] + nha_hidden + [num_modes]
    for i in range(4):
        p[f"nw{i}"], p[f"nb{i}"] = _linear(next(keys), dims[i], dims[i + 1])

    # TsDyn encoders (one per mode), stacked on a leading mode axis
    tdims = [num_actor_obs] + tsdyn_hidden + [tsdyn_latent]
    for i in range(4):
        ws, bs = [], []
        for _ in range(num_modes):
            w, b = _linear(next(keys), tdims[i], tdims[i + 1])
            ws.append(w)
            bs.append(b)
        p[f"tw{i}"] = jnp.stack(ws)          # (M, in, out)
        p[f"tb{i}"] = jnp.stack(bs)          # (M, 1, out)

    # Actor: (tsdyn_latent + num_proprio) -> actor_hidden -> 2*num_actions
    adims = [tsdyn_latent + num_proprio] + actor_hidden
    for i in range(3):
        p[f"aw{i}"], p[f"ab{i}"] = _linear(next(keys), adims[i], adims[i + 1])
    w_last, b_last = _linear(next(keys), actor_hidden[-1], 2 * num_actions)
    # Original model: alpha = actions_mean[:, 0::2], beta = actions_mean[:, 1::2]
    p["awA"], p["abA"] = w_last[:, 0::2], b_last[:, 0::2]   # even cols -> alpha
    p["awB"], p["abB"] = w_last[:, 1::2], b_last[:, 1::2]   # odd  cols -> beta

    # 4 critics (critic / glide / push / reg), stacked on a leading axis
    cdims = [num_critic_obs] + critic_hidden + [1]
    for i in range(4):
        ws, bs = [], []
        for _ in range(4):
            w, b = _linear(next(keys), cdims[i], cdims[i + 1])
            ws.append(w)
            bs.append(b)
        p[f"cw{i}"] = jnp.stack(ws)          # (4, in, out)
        p[f"cb{i}"] = jnp.stack(bs)          # (4, 1, out)

    return p


# ------------------------------------ main -----------------------------------

if __name__ == "__main__":
    # Small, module-consistent configuration.
    num_proprio = 16
    history_len = 4
    num_actor_obs = num_proprio * history_len        # 64
    num_critic_obs = 64
    num_actions = 12                                 # actor outputs 2*12 = 24
    num_recon = 8                                    # (decoder side, unused here)
    num_modes = 3
    tsdyn_latent = 32
    actor_hidden = [64, 64, 64]
    critic_hidden = [64, 64, 64]
    nha_hidden = [64, 32, 32]
    tsdyn_hidden = [64, 32, 32]
    batch = 2

    root = jax.random.PRNGKey(0)
    k_obs, k_cobs, k_par = jax.random.split(root, 3)

    params = make_params(
        k_par,
        num_actor_obs=num_actor_obs, num_critic_obs=num_critic_obs,
        num_actions=num_actions, num_proprio=num_proprio, num_modes=num_modes,
        actor_hidden=actor_hidden, critic_hidden=critic_hidden,
        nha_hidden=nha_hidden, tsdyn_hidden=tsdyn_hidden,
        tsdyn_latent=tsdyn_latent,
    )

    # Pack ONCE at init: a single contiguous weight slab for the fused kernel.
    packed = pack_params(
        params,
        num_actor_obs=num_actor_obs, num_critic_obs=num_critic_obs,
        num_proprio=num_proprio, num_modes=num_modes, num_actions=num_actions,
        tsdyn_hidden=tsdyn_hidden, tsdyn_latent=tsdyn_latent,
        critic_hidden=critic_hidden,
    )

    obs = jax.random.normal(k_obs, (batch, num_actor_obs), jnp.float32)
    critic_obs = jax.random.normal(k_cobs, (batch, num_critic_obs), jnp.float32)

    (actions, mode_latent, probs,
     value, glide_v, push_v, reg_v) = forward(obs, critic_obs, packed)

    jax.block_until_ready((actions, mode_latent, probs, value, glide_v, push_v, reg_v))

    assert actions.shape == (batch, num_actions)
    assert mode_latent.shape == (batch, num_modes)
    assert probs.shape == (batch, num_modes)
    assert value.shape == (batch, 1)
    assert glide_v.shape == (batch, 1)
    assert push_v.shape == (batch, 1)
    assert reg_v.shape == (batch, 1)
    assert bool(jnp.all(jnp.isfinite(actions)))
    assert abs(float(jnp.sum(probs[0])) - 1.0) < 1e-2

    print("KERNEL_OK")
</pallas_src>

<mosaic_0001>
module attributes {stable_mosaic.version = 11 : i64} {
  func.func @_fused_forward_kernel(%arg0: memref<2x64xf32, #tpu.memory_space<vmem>>, %arg1: memref<2x64xf32, #tpu.memory_space<vmem>>, %arg2: memref<3496x256xf32, #tpu.memory_space<vmem>>, %arg3: memref<2x128xf32, #tpu.memory_space<vmem>>) attributes {dimension_semantics = [], scalar_prefetch = 0 : i64, scratch_operands = 0 : i64, tpu.core_type = #tpu.core_type<tc>} {
    %c0 = arith.constant 0 : index
    %c0_0 = arith.constant 0 : index
    %0 = vector.load %arg0[%c0, %c0_0] : memref<2x64xf32, #tpu.memory_space<vmem>>, vector<2x64xf32>
    %c0_1 = arith.constant 0 : index
    %c0_2 = arith.constant 0 : index
    %1 = vector.load %arg1[%c0_1, %c0_2] : memref<2x64xf32, #tpu.memory_space<vmem>>, vector<2x64xf32>
    %c0_3 = arith.constant 0 : index
    %c0_4 = arith.constant 0 : index
    %2 = vector.load %arg2[%c0_3, %c0_4] : memref<3496x256xf32, #tpu.memory_space<vmem>>, vector<64x256xf32>
    %c64 = arith.constant 64 : index
    %c0_5 = arith.constant 0 : index
    %3 = vector.load %arg2[%c64, %c0_5] : memref<3496x256xf32, #tpu.memory_space<vmem>>, vector<1x256xf32>
    %cst = arith.constant dense<0.000000e+00> : vector<2x256xf32>
    %4 = tpu.matmul %0, %2, %cst {dimension_numbers = #tpu.dot_dimension_numbers<[1], [0], [0], [1], [0, 0, 1, 1], [], []>} : vector<2x64xf32>, vector<64x256xf32>, vector<2x256xf32> -> vector<2x256xf32>
    %5 = vector.broadcast %3 : vector<1x256xf32> to vector<2x256xf32>
    %6 = arith.addf %4, %5 : vector<2x256xf32>
    %cst_6 = arith.constant 0.000000e+00 : f32
    %7 = vector.broadcast %cst_6 : f32 to vector<2x256xf32>
    %8 = arith.cmpf ogt, %6, %7 : vector<2x256xf32>
    %cst_7 = arith.constant 0.000000e+00 : f32
    %9 = vector.broadcast %cst_7 : f32 to vector<2x256xf32>
    %10 = arith.minimumf %6, %9 : vector<2x256xf32>
    %11 = math.exp %10 : vector<2x256xf32>
    %cst_8 = arith.constant 1.000000e+00 : f32
    %12 = vector.broadcast %cst_8 : f32 to vector<2x256xf32>
    %13 = arith.subf %11, %12 : vector<2x256xf32>
    %14 = arith.select %8, %6, %13 : vector<2x256xi1>, vector<2x256xf32>
    %c72 = arith.constant 72 : index
    %c0_9 = arith.constant 0 : index
    %15 = vector.load %arg2[%c72, %c0_9] : memref<3496x256xf32, #tpu.memory_space<vmem>>, vector<256x256xf32>
    %c328 = arith.constant 328 : index
    %c0_10 = arith.constant 0 : index
    %16 = vector.load %arg2[%c328, %c0_10] : memref<3496x256xf32, #tpu.memory_space<vmem>>, vector<1x256xf32>
    %cst_11 = arith.constant dense<0.000000e+00> : vector<2x256xf32>
    %17 = tpu.matmul %14, %15, %cst_11 {dimension_numbers = #tpu.dot_dimension_numbers<[1], [0], [0], [1], [0, 0, 1, 1], [], []>} : vector<2x256xf32>, vector<256x256xf32>, vector<2x256xf32> -> vector<2x256xf32>
    %18 = vector.broadcast %16 : vector<1x256xf32> to vector<2x256xf32>
    %19 = arith.addf %17, %18 : vector<2x256xf32>
    %cst_12 = arith.constant 0.000000e+00 : f32
    %20 = vector.broadcast %cst_12 : f32 to vector<2x256xf32>
    %21 = arith.cmpf ogt, %19, %20 : vector<2x256xf32>
    %cst_13 = arith.constant 0.000000e+00 : f32
    %22 = vector.broadcast %cst_13 : f32 to vector<2x256xf32>
    %23 = arith.minimumf %19, %22 : vector<2x256xf32>
    %24 = math.exp %23 : vector<2x256xf32>
    %cst_14 = arith.constant 1.000000e+00 : f32
    %25 = vector.broadcast %cst_14 : f32 to vector<2x256xf32>
    %26 = arith.subf %24, %25 : vector<2x256xf32>
    %27 = arith.select %21, %19, %26 : vector<2x256xi1>, vector<2x256xf32>
    %c336 = arith.constant 336 : index
    %c0_15 = arith.constant 0 : index
    %28 = vector.load %arg2[%c336, %c0_15] : memref<3496x256xf32, #tpu.memory_space<vmem>>, vector<256x256xf32>
    %c592 = arith.constant 592 : index
    %c0_16 = arith.constant 0 : index
    %29 = vector.load %arg2[%c592, %c0_16] : memref<3496x256xf32, #tpu.memory_space<vmem>>, vector<1x256xf32>
    %cst_17 = arith.constant dense<0.000000e+00> : vector<2x256xf32>
    %30 = tpu.matmul %27, %28, %cst_17 {dimension_numbers = #tpu.dot_dimension_numbers<[1], [0], [0], [1], [0, 0, 1, 1], [], []>} : vector<2x256xf32>, vector<256x256xf32>, vector<2x256xf32> -> vector<2x256xf32>
    %31 = vector.broadcast %29 : vector<1x256xf32> to vector<2x256xf32>
    %32 = arith.addf %30, %31 : vector<2x256xf32>
    %cst_18 = arith.constant 0.000000e+00 : f32
    %33 = vector.broadcast %cst_18 : f32 to vector<2x256xf32>
    %34 = arith.cmpf ogt, %32, %33 : vector<2x256xf32>
    %cst_19 = arith.constant 0.000000e+00 : f32
    %35 = vector.broadcast %cst_19 : f32 to vector<2x256xf32>
    %36 = arith.minimumf %32, %35 : vector<2x256xf32>
    %37 = math.exp %36 : vector<2x256xf32>
    %cst_20 = arith.constant 1.000000e+00 : f32
    %38 = vector.broadcast %cst_20 : f32 to vector<2x256xf32>
    %39 = arith.subf %37, %38 : vector<2x256xf32>
    %40 = arith.select %34, %32, %39 : vector<2x256xi1>, vector<2x256xf32>
    %c600 = arith.constant 600 : index
    %c0_21 = arith.constant 0 : index
    %41 = vector.load %arg2[%c600, %c0_21] : memref<3496x256xf32, #tpu.memory_space<vmem>>, vector<256x256xf32>
    %c856 = arith.constant 856 : index
    %c0_22 = arith.constant 0 : index
    %42 = vector.load %arg2[%c856, %c0_22] : memref<3496x256xf32, #tpu.memory_space<vmem>>, vector<1x256xf32>
    %cst_23 = arith.constant dense<0.000000e+00> : vector<2x256xf32>
    %43 = tpu.matmul %40, %41, %cst_23 {dimension_numbers = #tpu.dot_dimension_numbers<[1], [0], [0], [1], [0, 0, 1, 1], [], []>} : vector<2x256xf32>, vector<256x256xf32>, vector<2x256xf32> -> vector<2x256xf32>
    %44 = vector.broadcast %42 : vector<1x256xf32> to vector<2x256xf32>
    %45 = arith.addf %43, %44 : vector<2x256xf32>
    %46 = tpu.iota {dimensions = array<i32: 1>} : vector<2x256xi32>
    %c3_i32 = arith.constant 3 : i32
    %47 = vector.broadcast %c3_i32 : i32 to vector<2x256xi32>
    %48 = arith.cmpi slt, %46, %47 : vector<2x256xi32>
    %cst_24 = arith.constant -1.000000e+30 : f32
    %49 = vector.broadcast %cst_24 : f32 to vector<2x256xf32>
    %50 = arith.select %48, %45, %49 : vector<2x256xi1>, vector<2x256xf32>
    %cst_25 = arith.constant dense<0xFF800000> : vector<2xf32>
    %51 = vector.multi_reduction <maximumf>, %50, %cst_25 [1] : vector<2x256xf32> to vector<2xf32>
    %52 = vector.shape_cast %51 : vector<2xf32> to vector<2x1xf32>
    %53 = vector.broadcast %52 : vector<2x1xf32> to vector<2x256xf32>
    %54 = arith.subf %50, %53 : vector<2x256xf32>
    %55 = math.exp %54 : vector<2x256xf32>
    %cst_26 = arith.constant 0.000000e+00 : f32
    %56 = vector.broadcast %cst_26 : f32 to vector<2x256xf32>
    %57 = arith.select %48, %55, %56 : vector<2x256xi1>, vector<2x256xf32>
    %cst_27 = arith.constant dense<0.000000e+00> : vector<2xf32>
    %58 = vector.multi_reduction <add>, %57, %cst_27 [1] : vector<2x256xf32> to vector<2xf32>
    %59 = vector.shape_cast %58 : vector<2xf32> to vector<2x1xf32>
    %60 = tpu.reciprocal %59 {approx = true} : vector<2x1xf32> -> vector<2x1xf32>
    %61 = vector.broadcast %60 : vector<2x1xf32> to vector<2x256xf32>
    %62 = arith.mulf %57, %61 : vector<2x256xf32>
    %cst_28 = arith.constant dense<0xFF800000> : vector<2xf32>
    %63 = vector.multi_reduction <maximumf>, %62, %cst_28 [1] : vector<2x256xf32> to vector<2xf32>
    %64 = vector.shape_cast %63 : vector<2xf32> to vector<2x1xf32>
    %65 = vector.broadcast %64 : vector<2x1xf32> to vector<2x256xf32>
    %66 = arith.cmpf oge, %62, %65 : vector<2x256xf32>
    %c256_i32 = arith.constant 256 : i32
    %67 = vector.broadcast %c256_i32 : i32 to vector<2x256xi32>
    %68 = arith.select %66, %46, %67 : vector<2x256xi1>, vector<2x256xi32>
    %cst_29 = arith.constant dense<2147483647> : vector<2xi32>
    %69 = vector.multi_reduction <minsi>, %68, %cst_29 [1] : vector<2x256xi32> to vector<2xi32>
    %70 = vector.shape_cast %69 : vector<2xi32> to vector<2x1xi32>
    %71 = vector.broadcast %70 : vector<2x1xi32> to vector<2x256xi32>
    %72 = arith.cmpi eq, %46, %71 : vector<2x256xi32>
    %73 = arith.extui %72 : vector<2x256xi1> to vector<2x256xi32>
    %74 = arith.sitofp %73 : vector<2x256xi32> to vector<2x256xf32>
    %c864 = arith.constant 864 : index
    %c0_30 = arith.constant 0 : index
    %75 = vector.load %arg2[%c864, %c0_30] : memref<3496x256xf32, #tpu.memory_space<vmem>>, vector<64x256xf32>
    %c928 = arith.constant 928 : index
    %c0_31 = arith.constant 0 : index
    %76 = vector.load %arg2[%c928, %c0_31] : memref<3496x256xf32, #tpu.memory_space<vmem>>, vector<1x256xf32>
    %cst_32 = arith.constant dense<0.000000e+00> : vector<2x256xf32>
    %77 = tpu.matmul %0, %75, %cst_32 {dimension_numbers = #tpu.dot_dimension_numbers<[1], [0], [0], [1], [0, 0, 1, 1], [], []>} : vector<2x64xf32>, vector<64x256xf32>, vector<2x256xf32> -> vector<2x256xf32>
    %78 = vector.broadcast %76 : vector<1x256xf32> to vector<2x256xf32>
    %79 = arith.addf %77, %78 : vector<2x256xf32>
    %cst_33 = arith.constant 0.000000e+00 : f32
    %80 = vector.broadcast %cst_33 : f32 to vector<2x256xf32>
    %81 = arith.cmpf ogt, %79, %80 : vector<2x256xf32>
    %cst_34 = arith.constant 0.000000e+00 : f32
    %82 = vector.broadcast %cst_34 : f32 to vector<2x256xf32>
    %83 = arith.minimumf %79, %82 : vector<2x256xf32>
    %84 = math.exp %83 : vector<2x256xf32>
    %cst_35 = arith.constant 1.000000e+00 : f32
    %85 = vector.broadcast %cst_35 : f32 to vector<2x256xf32>
    %86 = arith.subf %84, %85 : vector<2x256xf32>
    %87 = arith.select %81, %79, %86 : vector<2x256xi1>, vector<2x256xf32>
    %c936 = arith.constant 936 : index
    %c0_36 = arith.constant 0 : index
    %88 = vector.load %arg2[%c936, %c0_36] : memref<3496x256xf32, #tpu.memory_space<vmem>>, vector<256x256xf32>
    %c1192 = arith.constant 1192 : index
    %c0_37 = arith.constant 0 : index
    %89 = vector.load %arg2[%c1192, %c0_37] : memref<3496x256xf32, #tpu.memory_space<vmem>>, vector<1x256xf32>
    %cst_38 = arith.constant dense<0.000000e+00> : vector<2x256xf32>
    %90 = tpu.matmul %87, %88, %cst_38 {dimension_numbers = #tpu.dot_dimension_numbers<[1], [0], [0], [1], [0, 0, 1, 1], [], []>} : vector<2x256xf32>, vector<256x256xf32>, vector<2x256xf32> -> vector<2x256xf32>
    %91 = vector.broadcast %89 : vector<1x256xf32> to vector<2x256xf32>
    %92 = arith.addf %90, %91 : vector<2x256xf32>
    %cst_39 = arith.constant 0.000000e+00 : f32
    %93 = vector.broadcast %cst_39 : f32 to vector<2x256xf32>
    %94 = arith.cmpf ogt, %92, %93 : vector<2x256xf32>
    %cst_40 = arith.constant 0.000000e+00 : f32
    %95 = vector.broadcast %cst_40 : f32 to vector<2x256xf32>
    %96 = arith.minimumf %92, %95 : vector<2x256xf32>
    %97 = math.exp %96 : vector<2x256xf32>
    %cst_41 = arith.constant 1.000000e+00 : f32
    %98 = vector.broadcast %cst_41 : f32 to vector<2x256xf32>
    %99 = arith.subf %97, %98 : vector<2x256xf32>
    %100 = arith.select %94, %92, %99 : vector<2x256xi1>, vector<2x256xf32>
    %c1200 = arith.constant 1200 : index
    %c0_42 = arith.constant 0 : index
    %101 = vector.load %arg2[%c1200, %c0_42] : memref<3496x256xf32, #tpu.memory_space<vmem>>, vector<256x256xf32>
    %c1456 = arith.constant 1456 : index
    %c0_43 = arith.constant 0 : index
    %102 = vector.load %arg2[%c1456, %c0_43] : memref<3496x256xf32, #tpu.memory_space<vmem>>, vector<1x256xf32>
    %cst_44 = arith.constant dense<0.000000e+00> : vector<2x256xf32>
    %103 = tpu.matmul %100, %101, %cst_44 {dimension_numbers = #tpu.dot_dimension_numbers<[1], [0], [0], [1], [0, 0, 1, 1], [], []>} : vector<2x256xf32>, vector<256x256xf32>, vector<2x256xf32> -> vector<2x256xf32>
    %104 = vector.broadcast %102 : vector<1x256xf32> to vector<2x256xf32>
    %105 = arith.addf %103, %104 : vector<2x256xf32>
    %cst_45 = arith.constant 0.000000e+00 : f32
    %106 = vector.broadcast %cst_45 : f32 to vector<2x256xf32>
    %107 = arith.cmpf ogt, %105, %106 : vector<2x256xf32>
    %cst_46 = arith.constant 0.000000e+00 : f32
    %108 = vector.broadcast %cst_46 : f32 to vector<2x256xf32>
    %109 = arith.minimumf %105, %108 : vector<2x256xf32>
    %110 = math.exp %109 : vector<2x256xf32>
    %cst_47 = arith.constant 1.000000e+00 : f32
    %111 = vector.broadcast %cst_47 : f32 to vector<2x256xf32>
    %112 = arith.subf %110, %111 : vector<2x256xf32>
    %113 = arith.select %107, %105, %112 : vector<2x256xi1>, vector<2x256xf32>
    %c1464 = arith.constant 1464 : index
    %c0_48 = arith.constant 0 : index
    %114 = vector.load %arg2[%c1464, %c0_48] : memref<3496x256xf32, #tpu.memory_space<vmem>>, vector<256x256xf32>
    %c1720 = arith.constant 1720 : index
    %c0_49 = arith.constant 0 : index
    %115 = vector.load %arg2[%c1720, %c0_49] : memref<3496x256xf32, #tpu.memory_space<vmem>>, vector<1x256xf32>
    %cst_50 = arith.constant dense<0.000000e+00> : vector<2x256xf32>
    %116 = tpu.matmul %113, %114, %cst_50 {dimension_numbers = #tpu.dot_dimension_numbers<[1], [0], [0], [1], [0, 0, 1, 1], [], []>} : vector<2x256xf32>, vector<256x256xf32>, vector<2x256xf32> -> vector<2x256xf32>
    %117 = vector.broadcast %115 : vector<1x256xf32> to vector<2x256xf32>
    %118 = arith.addf %116, %117 : vector<2x256xf32>
    %119 = vector.extract_strided_slice %74 {offsets = [0, 0], sizes = [2, 1], strides = [1, 1]} : vector<2x256xf32> to vector<2x1xf32>
    %120 = vector.extract_strided_slice %118 {offsets = [0, 0], sizes = [2, 32], strides = [1, 1]} : vector<2x256xf32> to vector<2x32xf32>
    %121 = vector.broadcast %119 : vector<2x1xf32> to vector<2x32xf32>
    %122 = arith.mulf %121, %120 : vector<2x32xf32>
    %123 = vector.extract_strided_slice %74 {offsets = [0, 1], sizes = [2, 1], strides = [1, 1]} : vector<2x256xf32> to vector<2x1xf32>
    %124 = vector.extract_strided_slice %118 {offsets = [0, 32], sizes = [2, 32], strides = [1, 1]} : vector<2x256xf32> to vector<2x32xf32>
    %125 = vector.broadcast %123 : vector<2x1xf32> to vector<2x32xf32>
    %126 = arith.mulf %125, %124 : vector<2x32xf32>
    %127 = arith.addf %122, %126 : vector<2x32xf32>
    %128 = vector.extract_strided_slice %74 {offsets = [0, 2], sizes = [2, 1], strides = [1, 1]} : vector<2x256xf32> to vector<2x1xf32>
    %129 = vector.extract_strided_slice %118 {offsets = [0, 64], sizes = [2, 32], strides = [1, 1]} : vector<2x256xf32> to vector<2x32xf32>
    %130 = vector.broadcast %128 : vector<2x1xf32> to vector<2x32xf32>
    %131 = arith.mulf %130, %129 : vector<2x32xf32>
    %132 = arith.addf %127, %131 : vector<2x32xf32>
    %c1728 = arith.constant 1728 : index
    %c0_51 = arith.constant 0 : index
    %133 = vector.load %arg2[%c1728, %c0_51] : memref<3496x256xf32, #tpu.memory_space<vmem>>, vector<64x256xf32>
    %cst_52 = arith.constant dense<0.000000e+00> : vector<2x256xf32>
    %134 = tpu.matmul %0, %133, %cst_52 {dimension_numbers = #tpu.dot_dimension_numbers<[1], [0], [0], [1], [0, 0, 1, 1], [], []>} : vector<2x64xf32>, vector<64x256xf32>, vector<2x256xf32> -> vector<2x256xf32>
    %c1800 = arith.constant 1800 : index
    %c0_53 = arith.constant 0 : index
    %135 = vector.load %arg2[%c1800, %c0_53] : memref<3496x256xf32, #tpu.memory_space<vmem>>, vector<32x256xf32>
    %cst_54 = arith.constant dense<0.000000e+00> : vector<2x256xf32>
    %136 = tpu.matmul %132, %135, %cst_54 {dimension_numbers = #tpu.dot_dimension_numbers<[1], [0], [0], [1], [0, 0, 1, 1], [], []>} : vector<2x32xf32>, vector<32x256xf32>, vector<2x256xf32> -> vector<2x256xf32>
    %137 = arith.addf %134, %136 : vector<2x256xf32>
    %c1792 = arith.constant 1792 : index
    %c0_55 = arith.constant 0 : index
    %138 = vector.load %arg2[%c1792, %c0_55] : memref<3496x256xf32, #tpu.memory_space<vmem>>, vector<1x256xf32>
    %139 = vector.broadcast %138 : vector<1x256xf32> to vector<2x256xf32>
    %140 = arith.addf %137, %139 : vector<2x256xf32>
    %cst_56 = arith.constant 0.000000e+00 : f32
    %141 = vector.broadcast %cst_56 : f32 to vector<2x256xf32>
    %142 = arith.cmpf ogt, %140, %141 : vector<2x256xf32>
    %cst_57 = arith.constant 0.000000e+00 : f32
    %143 = vector.broadcast %cst_57 : f32 to vector<2x256xf32>
    %144 = arith.minimumf %140, %143 : vector<2x256xf32>
    %145 = math.exp %144 : vector<2x256xf32>
    %cst_58 = arith.constant 1.000000e+00 : f32
    %146 = vector.broadcast %cst_58 : f32 to vector<2x256xf32>
    %147 = arith.subf %145, %146 : vector<2x256xf32>
    %148 = arith.select %142, %140, %147 : vector<2x256xi1>, vector<2x256xf32>
    %c1840 = arith.constant 1840 : index
    %c0_59 = arith.constant 0 : index
    %149 = vector.load %arg2[%c1840, %c0_59] : memref<3496x256xf32, #tpu.memory_space<vmem>>, vector<256x256xf32>
    %c2096 = arith.constant 2096 : index
    %c0_60 = arith.constant 0 : index
    %150 = vector.load %arg2[%c2096, %c0_60] : memref<3496x256xf32, #tpu.memory_space<vmem>>, vector<1x256xf32>
    %cst_61 = arith.constant dense<0.000000e+00> : vector<2x256xf32>
    %151 = tpu.matmul %148, %149, %cst_61 {dimension_numbers = #tpu.dot_dimension_numbers<[1], [0], [0], [1], [0, 0, 1, 1], [], []>} : vector<2x256xf32>, vector<256x256xf32>, vector<2x256xf32> -> vector<2x256xf32>
    %152 = vector.broadcast %150 : vector<1x256xf32> to vector<2x256xf32>
    %153 = arith.addf %151, %152 : vector<2x256xf32>
    %cst_62 = arith.constant 0.000000e+00 : f32
    %154 = vector.broadcast %cst_62 : f32 to vector<2x256xf32>
    %155 = arith.cmpf ogt, %153, %154 : vector<2x256xf32>
    %cst_63 = arith.constant 0.000000e+00 : f32
    %156 = vector.broadcast %cst_63 : f32 to vector<2x256xf32>
    %157 = arith.minimumf %153, %156 : vector<2x256xf32>
    %158 = math.exp %157 : vector<2x256xf32>
    %cst_64 = arith.constant 1.000000e+00 : f32
    %159 = vector.broadcast %cst_64 : f32 to vector<2x256xf32>
    %160 = arith.subf %158, %159 : vector<2x256xf32>
    %161 = arith.select %155, %153, %160 : vector<2x256xi1>, vector<2x256xf32>
    %c2104 = arith.constant 2104 : index
    %c0_65 = arith.constant 0 : index
    %162 = vector.load %arg2[%c2104, %c0_65] : memref<3496x256xf32, #tpu.memory_space<vmem>>, vector<256x256xf32>
    %c2360 = arith.constant 2360 : index
    %c0_66 = arith.constant 0 : index
    %163 = vector.load %arg2[%c2360, %c0_66] : memref<3496x256xf32, #tpu.memory_space<vmem>>, vector<1x256xf32>
    %cst_67 = arith.constant dense<0.000000e+00> : vector<2x256xf32>
    %164 = tpu.matmul %161, %162, %cst_67 {dimension_numbers = #tpu.dot_dimension_numbers<[1], [0], [0], [1], [0, 0, 1, 1], [], []>} : vector<2x256xf32>, vector<256x256xf32>, vector<2x256xf32> -> vector<2x256xf32>
    %165 = vector.broadcast %163 : vector<1x256xf32> to vector<2x256xf32>
    %166 = arith.addf %164, %165 : vector<2x256xf32>
    %cst_68 = arith.constant 0.000000e+00 : f32
    %167 = vector.broadcast %cst_68 : f32 to vector<2x256xf32>
    %168 = arith.cmpf ogt, %166, %167 : vector<2x256xf32>
    %cst_69 = arith.constant 0.000000e+00 : f32
    %169 = vector.broadcast %cst_69 : f32 to vector<2x256xf32>
    %170 = arith.minimumf %166, %169 : vector<2x256xf32>
    %171 = math.exp %170 : vector<2x256xf32>
    %cst_70 = arith.constant 1.000000e+00 : f32
    %172 = vector.broadcast %cst_70 : f32 to vector<2x256xf32>
    %173 = arith.subf %171, %172 : vector<2x256xf32>
    %174 = arith.select %168, %166, %173 : vector<2x256xi1>, vector<2x256xf32>
    %c2368 = arith.constant 2368 : index
    %c0_71 = arith.constant 0 : index
    %175 = vector.load %arg2[%c2368, %c0_71] : memref<3496x256xf32, #tpu.memory_space<vmem>>, vector<256x256xf32>
    %c2624 = arith.constant 2624 : index
    %c0_72 = arith.constant 0 : index
    %176 = vector.load %arg2[%c2624, %c0_72] : memref<3496x256xf32, #tpu.memory_space<vmem>>, vector<1x256xf32>
    %cst_73 = arith.constant dense<0.000000e+00> : vector<2x256xf32>
    %177 = tpu.matmul %174, %175, %cst_73 {dimension_numbers = #tpu.dot_dimension_numbers<[1], [0], [0], [1], [0, 0, 1, 1], [], []>} : vector<2x256xf32>, vector<256x256xf32>, vector<2x256xf32> -> vector<2x256xf32>
    %178 = vector.broadcast %176 : vector<1x256xf32> to vector<2x256xf32>
    %179 = arith.addf %177, %178 : vector<2x256xf32>
    %cst_74 = arith.constant 0.000000e+00 : f32
    %180 = vector.broadcast %cst_74 : f32 to vector<2x256xf32>
    %181 = arith.cmpf ogt, %179, %180 : vector<2x256xf32>
    %cst_75 = arith.constant 0.000000e+00 : f32
    %182 = vector.broadcast %cst_75 : f32 to vector<2x256xf32>
    %183 = arith.minimumf %179, %182 : vector<2x256xf32>
    %184 = math.exp %183 : vector<2x256xf32>
    %cst_76 = arith.constant 1.000000e+00 : f32
    %185 = vector.broadcast %cst_76 : f32 to vector<2x256xf32>
    %186 = arith.subf %184, %185 : vector<2x256xf32>
    %187 = arith.select %181, %179, %186 : vector<2x256xi1>, vector<2x256xf32>
    %188 = vector.extract_strided_slice %187 {offsets = [0, 0], sizes = [2, 12], strides = [1, 1]} : vector<2x256xf32> to vector<2x12xf32>
    %cst_77 = arith.constant 9.99999997E-7 : f32
    %189 = vector.broadcast %cst_77 : f32 to vector<2x12xf32>
    %190 = arith.maximumf %188, %189 : vector<2x12xf32>
    %191 = vector.extract_strided_slice %187 {offsets = [0, 12], sizes = [2, 12], strides = [1, 1]} : vector<2x256xf32> to vector<2x12xf32>
    %cst_78 = arith.constant 9.99999997E-7 : f32
    %192 = vector.broadcast %cst_78 : f32 to vector<2x12xf32>
    %193 = arith.maximumf %191, %192 : vector<2x12xf32>
    %194 = arith.addf %190, %193 : vector<2x12xf32>
    %195 = tpu.reciprocal %194 {approx = true} : vector<2x12xf32> -> vector<2x12xf32>
    %196 = arith.mulf %190, %195 : vector<2x12xf32>
    %cst_79 = arith.constant 6.000000e+00 : f32
    %197 = vector.broadcast %cst_79 : f32 to vector<2x12xf32>
    %198 = arith.mulf %196, %197 : vector<2x12xf32>
    %cst_80 = arith.constant 3.000000e+00 : f32
    %199 = vector.broadcast %cst_80 : f32 to vector<2x12xf32>
    %200 = arith.subf %198, %199 : vector<2x12xf32>
    %c2632 = arith.constant 2632 : index
    %c0_81 = arith.constant 0 : index
    %201 = vector.load %arg2[%c2632, %c0_81] : memref<3496x256xf32, #tpu.memory_space<vmem>>, vector<64x256xf32>
    %c2696 = arith.constant 2696 : index
    %c0_82 = arith.constant 0 : index
    %202 = vector.load %arg2[%c2696, %c0_82] : memref<3496x256xf32, #tpu.memory_space<vmem>>, vector<1x256xf32>
    %cst_83 = arith.constant dense<0.000000e+00> : vector<2x256xf32>
    %203 = tpu.matmul %1, %201, %cst_83 {dimension_numbers = #tpu.dot_dimension_numbers<[1], [0], [0], [1], [0, 0, 1, 1], [], []>} : vector<2x64xf32>, vector<64x256xf32>, vector<2x256xf32> -> vector<2x256xf32>
    %204 = vector.broadcast %202 : vector<1x256xf32> to vector<2x256xf32>
    %205 = arith.addf %203, %204 : vector<2x256xf32>
    %cst_84 = arith.constant 0.000000e+00 : f32
    %206 = vector.broadcast %cst_84 : f32 to vector<2x256xf32>
    %207 = arith.cmpf ogt, %205, %206 : vector<2x256xf32>
    %cst_85 = arith.constant 0.000000e+00 : f32
    %208 = vector.broadcast %cst_85 : f32 to vector<2x256xf32>
    %209 = arith.minimumf %205, %208 : vector<2x256xf32>
    %210 = math.exp %209 : vector<2x256xf32>
    %cst_86 = arith.constant 1.000000e+00 : f32
    %211 = vector.broadcast %cst_86 : f32 to vector<2x256xf32>
    %212 = arith.subf %210, %211 : vector<2x256xf32>
    %213 = arith.select %207, %205, %212 : vector<2x256xi1>, vector<2x256xf32>
    %c2704 = arith.constant 2704 : index
    %c0_87 = arith.constant 0 : index
    %214 = vector.load %arg2[%c2704, %c0_87] : memref<3496x256xf32, #tpu.memory_space<vmem>>, vector<256x256xf32>
    %c2960 = arith.constant 2960 : index
    %c0_88 = arith.constant 0 : index
    %215 = vector.load %arg2[%c2960, %c0_88] : memref<3496x256xf32, #tpu.memory_space<vmem>>, vector<1x256xf32>
    %cst_89 = arith.constant dense<0.000000e+00> : vector<2x256xf32>
    %216 = tpu.matmul %213, %214, %cst_89 {dimension_numbers = #tpu.dot_dimension_numbers<[1], [0], [0], [1], [0, 0, 1, 1], [], []>} : vector<2x256xf32>, vector<256x256xf32>, vector<2x256xf32> -> vector<2x256xf32>
    %217 = vector.broadcast %215 : vector<1x256xf32> to vector<2x256xf32>
    %218 = arith.addf %216, %217 : vector<2x256xf32>
    %cst_90 = arith.constant 0.000000e+00 : f32
    %219 = vector.broadcast %cst_90 : f32 to vector<2x256xf32>
    %220 = arith.cmpf ogt, %218, %219 : vector<2x256xf32>
    %cst_91 = arith.constant 0.000000e+00 : f32
    %221 = vector.broadcast %cst_91 : f32 to vector<2x256xf32>
    %222 = arith.minimumf %218, %221 : vector<2x256xf32>
    %223 = math.exp %222 : vector<2x256xf32>
    %cst_92 = arith.constant 1.000000e+00 : f32
    %224 = vector.broadcast %cst_92 : f32 to vector<2x256xf32>
    %225 = arith.subf %223, %224 : vector<2x256xf32>
    %226 = arith.select %220, %218, %225 : vector<2x256xi1>, vector<2x256xf32>
    %c2968 = arith.constant 2968 : index
    %c0_93 = arith.constant 0 : index
    %227 = vector.load %arg2[%c2968, %c0_93] : memref<3496x256xf32, #tpu.memory_space<vmem>>, vector<256x256xf32>
    %c3224 = arith.constant 3224 : index
    %c0_94 = arith.constant 0 : index
    %228 = vector.load %arg2[%c3224, %c0_94] : memref<3496x256xf32, #tpu.memory_space<vmem>>, vector<1x256xf32>
    %cst_95 = arith.constant dense<0.000000e+00> : vector<2x256xf32>
    %229 = tpu.matmul %226, %227, %cst_95 {dimension_numbers = #tpu.dot_dimension_numbers<[1], [0], [0], [1], [0, 0, 1, 1], [], []>} : vector<2x256xf32>, vector<256x256xf32>, vector<2x256xf32> -> vector<2x256xf32>
    %230 = vector.broadcast %228 : vector<1x256xf32> to vector<2x256xf32>
    %231 = arith.addf %229, %230 : vector<2x256xf32>
    %cst_96 = arith.constant 0.000000e+00 : f32
    %232 = vector.broadcast %cst_96 : f32 to vector<2x256xf32>
    %233 = arith.cmpf ogt, %231, %232 : vector<2x256xf32>
    %cst_97 = arith.constant 0.000000e+00 : f32
    %234 = vector.broadcast %cst_97 : f32 to vector<2x256xf32>
    %235 = arith.minimumf %231, %234 : vector<2x256xf32>
    %236 = math.exp %235 : vector<2x256xf32>
    %cst_98 = arith.constant 1.000000e+00 : f32
    %237 = vector.broadcast %cst_98 : f32 to vector<2x256xf32>
    %238 = arith.subf %236, %237 : vector<2x256xf32>
    %239 = arith.select %233, %231, %238 : vector<2x256xi1>, vector<2x256xf32>
    %c3232 = arith.constant 3232 : index
    %c0_99 = arith.constant 0 : index
    %240 = vector.load %arg2[%c3232, %c0_99] : memref<3496x256xf32, #tpu.memory_space<vmem>>, vector<256x256xf32>
    %c3488 = arith.constant 3488 : index
    %c0_100 = arith.constant 0 : index
    %241 = vector.load %arg2[%c3488, %c0_100] : memref<3496x256xf32, #tpu.memory_space<vmem>>, vector<1x256xf32>
    %cst_101 = arith.constant dense<0.000000e+00> : vector<2x256xf32>
    %242 = tpu.matmul %239, %240, %cst_101 {dimension_numbers = #tpu.dot_dimension_numbers<[1], [0], [0], [1], [0, 0, 1, 1], [], []>} : vector<2x256xf32>, vector<256x256xf32>, vector<2x256xf32> -> vector<2x256xf32>
    %243 = vector.broadcast %241 : vector<1x256xf32> to vector<2x256xf32>
    %244 = arith.addf %242, %243 : vector<2x256xf32>
    %245 = vector.extract_strided_slice %244 {offsets = [0, 0], sizes = [2, 4], strides = [1, 1]} : vector<2x256xf32> to vector<2x4xf32>
    %cst_102 = arith.constant 0.000000e+00 : f32
    %246 = vector.broadcast %cst_102 : f32 to vector<2x106xf32>
    %247 = vector.extract_strided_slice %74 {offsets = [0, 0], sizes = [2, 3], strides = [1, 1]} : vector<2x256xf32> to vector<2x3xf32>
    %248 = vector.extract_strided_slice %62 {offsets = [0, 0], sizes = [2, 3], strides = [1, 1]} : vector<2x256xf32> to vector<2x3xf32>
    %249 = tpu.concatenate %200, %247, %248, %245, %246 in 1 : vector<2x12xf32>, vector<2x3xf32>, vector<2x3xf32>, vector<2x4xf32>, vector<2x106xf32> -> vector<2x128xf32>
    %c0_103 = arith.constant 0 : index
    %c0_104 = arith.constant 0 : index
    %250 = vector.load %arg3[%c0_103, %c0_104] : memref<2x128xf32, #tpu.memory_space<vmem>>, vector<2x128xf32>
    tpu.vector_store %arg3[%c0_103, %c0_104], %249 {strides = array<i32>} : memref<2x128xf32, #tpu.memory_space<vmem>>, vector<2x128xf32>,
    return
  }
}

</mosaic_0001>

<bundles_post_ra>
// kernel: tpu_custom_call.1
= control target key start
LH: loop header
LB: loop body
LE: loop exit
PB: predicated region body
PF: predicated region fallthrough
CT: control target
= control target key end

     0   :  { %8 = vsyncpa [#allocation3], 0  ;;  %s3815_s0 = inlined_call_operand.hbm [shape: f32[2,64], index: 0, kind: input, shape index: {}]   ;;  %s3816_s1 = inlined_call_operand.hbm [shape: f32[2,64], index: 1, kind: input, shape index: {}]   ;;  %s3817_s2 = inlined_call_operand.hbm [shape: f32[3496,256], index: 2, kind: input, shape index: {}]   ;;  %s3818_s3 = inlined_call_operand.hbm [shape: f32[2,128], index: 3, kind: output, shape index: {}]  }
   0x1   :  { %9 = vsyncpa [#allocation6], 0 }
   0x2   :  { %10 = vsyncpa [#allocation4], 0  ;;  %s3630_s12 = smov [#allocation5]   ;;  %s3631_s14 = smov [#allocation2]  }
   0x3   :  { %s27_s13 = sshll.u32 %s3630_s12, 4  ;;  %s17_s15 = sshll.u32 %s3631_s14, 4  ;;  %s28_s13 = int_to_ptr.vmem [resolvable:$true] %s27_s13  ;;  %s18_s15 = int_to_ptr.vmem [resolvable:$true] %s17_s15 }
   0x4   :  { %s3536_s18 = scalar_lea.hbm %s3816_s1, 32 }
   0x5   :  { %p3537_p0 = scmp.ne.s32.totalorder %s3816_s1, %s3536_s18  ;;  %p3540_p1 = scmp.lt.u32.totalorder %s3536_s18, %s3816_s1 }
   0x7   :  { %p3542_p2 = pnand %p3540_p1, %p3537_p0 }
   0x9   :  { %3545 = shalt.err (!%p3542_p2)
}
   0xa   :  { %s3546_s23 = scalar_lea.vmem %s28_s13, 32  ;;  %p3551_p4 = scmp.lt.s32.totalorder %s28_s13, %s28_s13 }
   0xb   :  { %p3547_p3 = scmp.ne.s32.totalorder %s28_s13, %s3546_s23  ;;  %p3552_p5 = scmp.lt.s32.totalorder %s3546_s23, %s3546_s23 }
   0xd   :  { %p3553_p6 = por %p3552_p5, %p3551_p4 }
   0xf   :  { %p3554_p7 = pnand %p3553_p6, %p3547_p3 }
  0x11   :  { %3557 = shalt.err (!%p3554_p7)
}
  0x12   :  { %30 = dma.hbm_to_vmem [thread:$0]  %s3816_s1, 32, %s28_s13, [#allocation6]  }
  0x13   :  { %s3558_s28 = scalar_lea.hbm %s3815_s0, 32 }
  0x14   :  { %p3559_p8 = scmp.ne.s32.totalorder %s3815_s0, %s3558_s28  ;;  %p3562_p9 = scmp.lt.u32.totalorder %s3558_s28, %s3815_s0 }
  0x16   :  { %p3564_p10 = pnand %p3562_p9, %p3559_p8 }
  0x18   :  { %3567 = shalt.err (!%p3564_p10)
}
  0x19   :  { %s3568_s6 = scalar_lea.vmem %s18_s15, 32  ;;  %p3573_p12 = scmp.lt.s32.totalorder %s18_s15, %s18_s15 }
  0x1a   :  { %p3569_p11 = scmp.ne.s32.totalorder %s18_s15, %s3568_s6  ;;  %p3574_p13 = scmp.lt.s32.totalorder %s3568_s6, %s3568_s6 }
  0x1c   :  { %p3575_p0 = por %p3574_p13, %p3573_p12 }
  0x1e   :  { %p3576_p1 = pnand %p3575_p0, %p3569_p11 }
  0x20   :  { %3579 = shalt.err (!%p3576_p1)
}
  0x21   :  { %20 = dma.hbm_to_vmem [thread:$0]  %s3815_s0, 32, %s18_s15, [#allocation3]  }
  0x22   :  { %s3632_s8 = smov [#allocation7]   ;;  %s3580_s12 = scalar_lea.hbm %s3817_s2, 111872 }
  0x23   :  { %s36_s9 = sshll.u32 %s3632_s8, 4  ;;  %p3581_p2 = scmp.ne.s32.totalorder %s3817_s2, %s3580_s12  ;;  %s37_s9 = int_to_ptr.vmem [resolvable:$true] %s36_s9 }
  0x24   :  { %p3584_p3 = scmp.lt.u32.totalorder %s3580_s12, %s3817_s2 }
  0x26   :  { %p3586_p4 = pnand %p3584_p3, %p3581_p2 }
  0x28   :  { %3589 = shalt.err (!%p3586_p4)
}
  0x29   :  { %s3590_s18 = scalar_lea.vmem %s37_s9, 111872  ;;  %p3595_p6 = scmp.lt.s32.totalorder %s37_s9, %s37_s9 }
  0x2a   :  { %p3591_p5 = scmp.ne.s32.totalorder %s37_s9, %s3590_s18  ;;  %p3596_p7 = scmp.lt.s32.totalorder %s3590_s18, %s3590_s18 }
  0x2c   :  { %p3597_p8 = por %p3596_p7, %p3595_p6 }
  0x2e   :  { %p3598_p9 = pnand %p3597_p8, %p3591_p5 }
  0x30   :  { %3601 = shalt.err (!%p3598_p9)
}
  0x31   :  { %s3633_s0 = smov 256   ;;  %s3634_s15 = smov 16  }
  0x32   :  { %42 = dma.hbm_to_vmem [thread:$0]  %s3817_s2, 111872, %s37_s9, [#allocation6], %s3633_s0, %s3633_s0, %s3634_s15  }
  0x33   :  { %3624 = dma.done.wait [#allocation3], 32  }
  0x34   :  { %3625 = vsyncadd [#allocation3], 4294967264 }
  0x35   :  { %3626 = dma.done.wait [#allocation6], 111904  }
  0x36   :  { %3627 = vsyncadd [#allocation6], 4294855392  ;;  %v3635_v0 = vmov 0.0   ;;  %v55_v1 = vld [vmem:[#allocation7 + $0x8] sm:$0xff]  ;;  %v57_v2 = vld [vmem:[#allocation7 + $0x18] sm:$0xff]  ;;  %vm83_vm0 = vcmask 523264  }
  0x37   :  { %151 = vmatprep.mubr.f32.mxu1 %v3635_v0  ;;  %v54_v3 = vld [vmem:[#allocation7] sm:$0xff]  ;;  %v2617_v4 = vpack.c.bf16 %v57_v2, %v55_v1  ;;  %v56_v5 = vld [vmem:[#allocation7 + $0x10] sm:$0xff]  ;;  %v59_v6 = vld [vmem:[#allocation7 + $0x28] sm:$0xff]  ;;  %vm645_vm7 = vcmask 1041408   ;;  %s3640_s2 = smov 96   ;;  %s3641_s21 = smov 64  }
  0x38   :  { %v61_v7 = vld [vmem:[#allocation7 + $0x38] sm:$0xff]  ;;  %v2619_v8 = vpack.c.bf16 %v56_v5, %v54_v3  ;;  %v58_v10 = vld [vmem:[#allocation7 + $0x20] sm:$0xff]  ;;  %v60_v11 = vld [vmem:[#allocation7 + $0x30] sm:$0xff]  ;;  %s3642_s22 = smov 116   ;;  %s3643_s23 = smov 12  }
  0x39   :  { %v2621_v9 = vpack.c.bf16 %v61_v7, %v59_v6  ;;  %v63_v12 = vld [vmem:[#allocation7 + $0x48] sm:$0xff]  ;;  %2618 = vmatprep.subr.bf16.mxu1 %v2617_v4  ;;  %v65_v13 = vld [vmem:[#allocation7 + $0x58] sm:$0xff]  ;;  %v2623_v14 = vpack.c.bf16 %v60_v11, %v58_v10  ;;  %v62_v16 = vld [vmem:[#allocation7 + $0x40] sm:$0xff]  ;;  %s3644_s24 = smov 15   ;;  %s3645_s25 = smov 18  }
  0x3a   :  { %2620 = vmatpush1.bf16.msra.mxu1 %v2619_v8  ;;  %v2625_v15 = vpack.c.bf16 %v65_v13, %v63_v12  ;;  %v64_v17 = vld [vmem:[#allocation7 + $0x50] sm:$0xff]  ;;  %v67_v18 = vld [vmem:[#allocation7 + $0x68] sm:$0xff]  ;;  %v69_v19 = vld [vmem:[#allocation7 + $0x78] sm:$0xff]  ;;  %s3646_s26 = smov [#allocation8]  }
  0x3b   :  { %2622 = vmatprep.subr.bf16.mxu1 %v2621_v9  ;;  %v2627_v20 = vpack.c.bf16 %v64_v17, %v62_v16  ;;  %v2629_v21 = vpack.c.bf16 %v69_v19, %v67_v18  ;;  %v66_v22 = vld [vmem:[#allocation7 + $0x60] sm:$0xff]  ;;  %v68_v23 = vld [vmem:[#allocation7 + $0x70] sm:$0xff]  ;;  %v171_v24 = vld [vmem:[#allocation7 + $0x98] sm:$0xff]  ;;  %s2575_s27 = sshll.u32 %s3646_s26, 4  ;;  %s2576_s27 = int_to_ptr.vmem [resolvable:$true] %s2575_s27 }
  0x3c   :  { %v173_v25 = vld [vmem:[#allocation7 + $0xa8] sm:$0xff]  ;;  %v2631_v26 = vpack.c.bf16 %v68_v23, %v66_v22  ;;  %v170_v28 = vld [vmem:[#allocation7 + $0x90] sm:$0xff]  ;;  %v172_v29 = vld [vmem:[#allocation7 + $0xa0] sm:$0xff]  ;;  %s3602_s28 = scalar_lea.vmem %s2576_s27, 32  ;;  %p3607_p11 = scmp.lt.s32.totalorder %s2576_s27, %s2576_s27 }
  0x3d   :  { %v2633_v27 = vpack.c.bf16 %v173_v25, %v171_v24  ;;  %v175_v30 = vld [vmem:[#allocation7 + $0xb8] sm:$0xff]  ;;  %v177_v31 = vld [vmem:[#allocation7 + $0xc8] sm:$0xff]  ;;  %v2635_v33 = vpack.c.bf16 %v172_v29, %v170_v28  ;;  %v174_v35 = vld [vmem:[#allocation7 + $0xb0] sm:$0xff]  ;;  %p3603_p10 = scmp.ne.s32.totalorder %s2576_s27, %s3602_s28  ;;  %p3608_p12 = scmp.lt.s32.totalorder %s3602_s28, %s3602_s28 }
  0x3e   :  { %2624 = vmatpush1.bf16.msra.mxu1 %v2623_v14  ;;  %v3704_v32 = vld [vmem:[#allocation2] sm:$0x3]  ;;  %v2637_v34 = vpack.c.bf16 %v177_v31, %v175_v30  ;;  %v176_v36 = vld [vmem:[#allocation7 + $0xc0] sm:$0xff]  ;;  %v181_v38 = vld [vmem:[#allocation7 + $0xe8] sm:$0xff] }
  0x3f   :  { %2626 = vmatprep.subr.bf16.mxu1 %v2625_v15  ;;  %v179_v37 = vld [vmem:[#allocation7 + $0xd8] sm:$0xff]  ;;  %v2639_v39 = vpack.c.bf16 %v176_v36, %v174_v35  ;;  %v178_v41 = vld [vmem:[#allocation7 + $0xd0] sm:$0xff]  ;;  %v180_v42 = vld [vmem:[#allocation7 + $0xe0] sm:$0xff]  ;;  %p3609_p13 = por %p3608_p12, %p3607_p11 }
  0x40   :  { %v2641_v40 = vpack.c.bf16 %v181_v38, %v179_v37  ;;  %v183_v43 = vld [vmem:[#allocation7 + $0xf8] sm:$0xff]  ;;  %v185_v44 = vld [vmem:[#allocation7 + $0x108] sm:$0xff]  ;;  %v2643_v45 = vpack.c.bf16 %v180_v42, %v178_v41  ;;  %v182_v47 = vld [vmem:[#allocation7 + $0xf0] sm:$0xff] }
  0x41   :  { %v2645_v46 = vpack.c.bf16 %v185_v44, %v183_v43  ;;  %v184_v48 = vld [vmem:[#allocation7 + $0x100] sm:$0xff]  ;;  %v187_v49 = vld [vmem:[#allocation7 + $0x118] sm:$0xff]  ;;  %v189_v50 = vld [vmem:[#allocation7 + $0x128] sm:$0xff]  ;;  %p3610_p0 = pnand %p3609_p13, %p3603_p10 }
  0x42   :  { %2628 = vmatpush1.bf16.msra.mxu1 %v2627_v20  ;;  %v2647_v51 = vpack.c.bf16 %v184_v48, %v182_v47  ;;  %v2649_v52 = vpack.c.bf16 %v189_v50, %v187_v49  ;;  %v186_v53 = vld [vmem:[#allocation7 + $0x110] sm:$0xff]  ;;  %v188_v54 = vld [vmem:[#allocation7 + $0x120] sm:$0xff]  ;;  %v191_v55 = vld [vmem:[#allocation7 + $0x138] sm:$0xff] }
  0x43   :  { %2630 = vmatprep.subr.bf16.mxu1 %v2629_v21  ;;  %v193_v56 = vld [vmem:[#allocation7 + $0x148] sm:$0xff]  ;;  %v2651_v57 = vpack.c.bf16 %v188_v54, %v186_v53  ;;  %v190_v59 = vld [vmem:[#allocation7 + $0x130] sm:$0xff]  ;;  %v192_v60 = vld [vmem:[#allocation7 + $0x140] sm:$0xff] }
  0x44   :  { %v2653_v58 = vpack.c.bf16 %v193_v56, %v191_v55  ;;  %v195_v61 = vld [vmem:[#allocation7 + $0x158] sm:$0xff]  ;;  %v197_v62 = vld [vmem:[#allocation7 + $0x168] sm:$0xff]  ;;  %v2655_v63 = vpack.c.bf16 %v192_v60, %v190_v59  ;;  %v194_v2 = vld [vmem:[#allocation7 + $0x150] sm:$0xff] }
  0x45   :  { %v2657_v1 = vpack.c.bf16 %v197_v62, %v195_v61  ;;  %v196_v3 = vld [vmem:[#allocation7 + $0x160] sm:$0xff]  ;;  %v199_v4 = vld [vmem:[#allocation7 + $0x178] sm:$0xff]  ;;  %v201_v5 = vld [vmem:[#allocation7 + $0x188] sm:$0xff] }
  0x46   :  { %2632 = vmatpush1.bf16.msra.mxu1 %v2631_v26  ;;  %v2659_v6 = vpack.c.bf16 %v196_v3, %v194_v2  ;;  %v2661_v7 = vpack.c.bf16 %v201_v5, %v199_v4  ;;  %v198_v8 = vld [vmem:[#allocation7 + $0x170] sm:$0xff]  ;;  %v200_v9 = vld [vmem:[#allocation7 + $0x180] sm:$0xff]  ;;  %v203_v10 = vld [vmem:[#allocation7 + $0x198] sm:$0xff] }
  0x47   :  { %2634 = vmatprep.subr.bf16.mxu1 %v2633_v27  ;;  %v205_v11 = vld [vmem:[#allocation7 + $0x1a8] sm:$0xff]  ;;  %v2663_v12 = vpack.c.bf16 %v200_v9, %v198_v8  ;;  %v202_v14 = vld [vmem:[#allocation7 + $0x190] sm:$0xff]  ;;  %v204_v15 = vld [vmem:[#allocation7 + $0x1a0] sm:$0xff] }
  0x48   :  { %v2665_v13 = vpack.c.bf16 %v205_v11, %v203_v10  ;;  %v207_v16 = vld [vmem:[#allocation7 + $0x1b8] sm:$0xff]  ;;  %v209_v17 = vld [vmem:[#allocation7 + $0x1c8] sm:$0xff]  ;;  %v2667_v18 = vpack.c.bf16 %v204_v15, %v202_v14  ;;  %v206_v20 = vld [vmem:[#allocation7 + $0x1b0] sm:$0xff] }
  0x49   :  { %2585 = vmatmul.mubr.msk.f32.vlgmr.msra.gmra.mrb[0].mxu1 %vm83_vm0, %v3704_v32  ;;  %v2669_v19 = vpack.c.bf16 %v209_v17, %v207_v16  ;;  %v208_v21 = vld [vmem:[#allocation7 + $0x1c0] sm:$0xff]  ;;  %v211_v22 = vld [vmem:[#allocation7 + $0x1d8] sm:$0xff]  ;;  %v213_v23 = vld [vmem:[#allocation7 + $0x1e8] sm:$0xff] }
  0x4a   :  { %2636 = vmatpush1.bf16.msra.mxu1 %v2635_v33  ;;  %v2671_v24 = vpack.c.bf16 %v208_v21, %v206_v20  ;;  %v2673_v25 = vpack.c.bf16 %v213_v23, %v211_v22  ;;  %v210_v26 = vld [vmem:[#allocation7 + $0x1d0] sm:$0xff]  ;;  %v212_v27 = vld [vmem:[#allocation7 + $0x1e0] sm:$0xff]  ;;  %v215_v29 = vld [vmem:[#allocation7 + $0x1f8] sm:$0xff] }
  0x4b   :  { %2638 = vmatprep.subr.bf16.mxu1 %v2637_v34  ;;  %v2675_v28 = vpack.c.bf16 %v212_v27, %v210_v26  ;;  %v217_v30 = vld [vmem:[#allocation7 + $0x208] sm:$0xff]  ;;  %v214_v33 = vld [vmem:[#allocation7 + $0x1f0] sm:$0xff]  ;;  %v216_v34 = vld [vmem:[#allocation7 + $0x200] sm:$0xff] }
  0x4c   :  { %v2677_v31 = vpack.c.bf16 %v217_v30, %v215_v29  ;;  %v2679_v35 = vpack.c.bf16 %v216_v34, %v214_v33  ;;  %v219_v36 = vld [vmem:[#allocation7 + $0x218] sm:$0xff]  ;;  %v221_v37 = vld [vmem:[#allocation7 + $0x228] sm:$0xff]  ;;  %v222_v44 = vld [vmem:[#allocation7 + $0x230] sm:$0xff] }
  0x4d   :  { %v2681_v38 = vpack.c.bf16 %v221_v37, %v219_v36  ;;  %v223_v42 = vld [vmem:[#allocation7 + $0x238] sm:$0xff]  ;;  %v225_v43 = vld [vmem:[#allocation7 + $0x248] sm:$0xff]  ;;  %v330_v62 = vld [vmem:[#allocation7 + $0x2a0] sm:$0xff] }
  0x4e   :  { %2640 = vmatpush1.bf16.msra.mxu1 %v2639_v39  ;;  %v218_v39 = vld [vmem:[#allocation7 + $0x210] sm:$0xff]  ;;  %v227_v47 = vld [vmem:[#allocation7 + $0x258] sm:$0xff]  ;;  %v229_v48 = vld [vmem:[#allocation7 + $0x268] sm:$0xff] }
  0x4f   :  { %2642 = vmatprep.subr.bf16.mxu1 %v2641_v40  ;;  %v220_v40 = vld [vmem:[#allocation7 + $0x220] sm:$0xff]  ;;  %v2689_v50 = vpack.c.bf16 %v229_v48, %v227_v47  ;;  %v231_v53 = vld [vmem:[#allocation7 + $0x278] sm:$0xff]  ;;  %v233_v54 = vld [vmem:[#allocation7 + $0x288] sm:$0xff] }
  0x50   :  { %v2683_v41 = vpack.c.bf16 %v220_v40, %v218_v39  ;;  %v2693_v56 = vpack.c.bf16 %v233_v54, %v231_v53  ;;  %v331_v60 = vld [vmem:[#allocation7 + $0x2a8] sm:$0xff]  ;;  %v333_v61 = vld [vmem:[#allocation7 + $0x2b8] sm:$0xff]  ;;  %v350_v30 = vld [vmem:[#allocation7 + $0x340] sm:$0xff] }
  0x51   :  { %v335_v2 = vld [vmem:[#allocation7 + $0x2c8] sm:$0xff]  ;;  %v337_v3 = vld [vmem:[#allocation7 + $0x2d8] sm:$0xff]  ;;  %v354_v37 = vld [vmem:[#allocation7 + $0x360] sm:$0xff] }
  0x52   :  { %2644 = vmatpush1.bf16.msra.mxu1 %v2643_v45  ;;  %v2685_v45 = vpack.c.bf16 %v225_v43, %v223_v42  ;;  %v2701_v5 = vpack.c.bf16 %v337_v3, %v335_v2  ;;  %v339_v8 = vld [vmem:[#allocation7 + $0x2e8] sm:$0xff]  ;;  %v341_v9 = vld [vmem:[#allocation7 + $0x2f8] sm:$0xff]  ;;  %v358_v43 = vld [vmem:[#allocation7 + $0x380] sm:$0xff] }
  0x53   :  { %2646 = vmatprep.subr.bf16.mxu1 %v2645_v46  ;;  %v224_v46 = vld [vmem:[#allocation7 + $0x240] sm:$0xff]  ;;  %v2705_v11 = vpack.c.bf16 %v341_v9, %v339_v8  ;;  %v343_v14 = vld [vmem:[#allocation7 + $0x308] sm:$0xff]  ;;  %v345_v15 = vld [vmem:[#allocation7 + $0x318] sm:$0xff] }
  0x54   :  { %v2687_v49 = vpack.c.bf16 %v224_v46, %v222_v44  ;;  %v2709_v17 = vpack.c.bf16 %v345_v15, %v343_v14  ;;  %v347_v20 = vld [vmem:[#allocation7 + $0x328] sm:$0xff]  ;;  %v349_v21 = vld [vmem:[#allocation7 + $0x338] sm:$0xff]  ;;  %v360_v44 = vld [vmem:[#allocation7 + $0x390] sm:$0xff] }
  0x55   :  { %v2713_v23 = vpack.c.bf16 %v349_v21, %v347_v20  ;;  %v351_v26 = vld [vmem:[#allocation7 + $0x348] sm:$0xff]  ;;  %v353_v27 = vld [vmem:[#allocation7 + $0x358] sm:$0xff]  ;;  %v2727_v47 = vpack.c.bf16 %v360_v44, %v358_v43  ;;  %v372_v20 = vld [vmem:[#allocation7 + $0x3f0] sm:$0xff] }
  0x56   :  { %2648 = vmatpush1.bf16.msra.mxu1 %v2647_v51  ;;  %v226_v51 = vld [vmem:[#allocation7 + $0x250] sm:$0xff]  ;;  %v2717_v29 = vpack.c.bf16 %v353_v27, %v351_v26  ;;  %v355_v33 = vld [vmem:[#allocation7 + $0x368] sm:$0xff]  ;;  %v357_v34 = vld [vmem:[#allocation7 + $0x378] sm:$0xff] }
  0x57   :  { %2650 = vmatprep.subr.bf16.mxu1 %v2649_v52  ;;  %v228_v52 = vld [vmem:[#allocation7 + $0x260] sm:$0xff]  ;;  %v2721_v36 = vpack.c.bf16 %v357_v34, %v355_v33  ;;  %v359_v39 = vld [vmem:[#allocation7 + $0x388] sm:$0xff]  ;;  %v361_v40 = vld [vmem:[#allocation7 + $0x398] sm:$0xff] }
  0x58   :  { %v2691_v55 = vpack.c.bf16 %v228_v52, %v226_v51  ;;  %v2725_v42 = vpack.c.bf16 %v361_v40, %v359_v39  ;;  %v365_v46 = vld [vmem:[#allocation7 + $0x3b8] sm:$0xff]  ;;  %v367_v51 = vld [vmem:[#allocation7 + $0x3c8] sm:$0xff]  ;;  %v376_v26 = vld [vmem:[#allocation7 + $0x410] sm:$0xff] }
  0x59   :  { %v369_v52 = vld [vmem:[#allocation7 + $0x3d8] sm:$0xff]  ;;  %v380_v33 = vld [vmem:[#allocation7 + $0x430] sm:$0xff]  ;;  %v387_v40 = vld [vmem:[#allocation7 + $0x468] sm:$0xff] }
  0x5a   :  { %2652 = vmatpush1.bf16.msra.mxu1 %v2651_v57  ;;  %v230_v57 = vld [vmem:[#allocation7 + $0x270] sm:$0xff]  ;;  %v2733_v54 = vpack.c.bf16 %v369_v52, %v367_v51  ;;  %v386_v44 = vld [vmem:[#allocation7 + $0x460] sm:$0xff] }
  0x5b   :  { %2654 = vmatprep.subr.bf16.mxu1 %v2653_v58  ;;  %v232_v58 = vld [vmem:[#allocation7 + $0x280] sm:$0xff]  ;;  %v384_v39 = vld [vmem:[#allocation7 + $0x450] sm:$0xff] }
  0x5c   :  { %v2695_v59 = vpack.c.bf16 %v232_v58, %v230_v57  ;;  %v371_v57 = vld [vmem:[#allocation7 + $0x3e8] sm:$0xff]  ;;  %v373_v58 = vld [vmem:[#allocation7 + $0x3f8] sm:$0xff]  ;;  %v392_v51 = vld [vmem:[#allocation7 + $0x490] sm:$0xff] }
  0x5e   :  { %2656 = vmatpush1.bf16.msra.mxu1 %v2655_v63  ;;  %v2697_v63 = vpack.c.bf16 %v333_v61, %v331_v60  ;;  %v2737_v60 = vpack.c.bf16 %v373_v58, %v371_v57  ;;  %v73_v61 = vlaneseq  ;;  %v492_v57 = vld [vmem:[#allocation7 + $0x4c0] sm:$0xff]  ;;  %v495_v58 = vld [vmem:[#allocation7 + $0x4d8] sm:$0xff] }
  0x5f   :  { %2658 = vmatprep.subr.bf16.mxu1 %v2657_v1  ;;  %v332_v1 = vld [vmem:[#allocation7 + $0x2b0] sm:$0xff] }
  0x60   :  { %v2699_v4 = vpack.c.bf16 %v332_v1, %v330_v62  ;;  %2698 = vmatprep.subr.bf16.mxu0 %v2697_v63  ;;  %v74_v62 = vshrl.u32 %v73_v61, 7  ;;  %v71_v1 = vld [vmem:[#allocation7 + $0x80] ss:$8 sm:$0x3] }
  0x62   :  { %2660 = vmatpush1.bf16.msra.mxu1 %v2659_v6  ;;  %v334_v6 = vld [vmem:[#allocation7 + $0x2c0] sm:$0xff]  ;;  %2700 = vmatpush1.bf16.msra.mxu0 %v2699_v4  ;;  %v3709_v63 = vsub.s32 0, %v74_v62  ;;  %v3711_v2 = vsub.s32 1, %v74_v62 }
  0x63   :  { %2662 = vmatprep.subr.bf16.mxu1 %v2661_v7  ;;  %v336_v7 = vld [vmem:[#allocation7 + $0x2d0] sm:$0xff]  ;;  %2702 = vmatprep.subr.bf16.mxu0 %v2701_v5 }
  0x64   :  { %v2703_v10 = vpack.c.bf16 %v336_v7, %v334_v6  ;;  %v76_v3 = vrot.slane %v71_v1, %v3709_v63  ;;  %v80_v4 = vrot.slane %v71_v1, %v3711_v2  ;;  %v494_v1 = vld [vmem:[#allocation7 + $0x4d0] sm:$0xff] }
  0x66   :  { %2664 = vmatpush1.bf16.msra.mxu1 %v2663_v12  ;;  %v338_v12 = vld [vmem:[#allocation7 + $0x2e0] sm:$0xff]  ;;  %2704 = vmatpush1.bf16.msra.mxu0 %v2703_v10 }
  0x67   :  { %2666 = vmatprep.subr.bf16.mxu1 %v2665_v13  ;;  %v340_v13 = vld [vmem:[#allocation7 + $0x2f0] sm:$0xff]  ;;  %2706 = vmatprep.subr.bf16.mxu0 %v2705_v11 }
  0x68   :  { %v2707_v16 = vpack.c.bf16 %v340_v13, %v338_v12 }
  0x6a   :  { %2668 = vmatpush1.bf16.msra.mxu1 %v2667_v18  ;;  %v342_v18 = vld [vmem:[#allocation7 + $0x300] sm:$0xff]  ;;  %2708 = vmatpush1.bf16.msra.mxu0 %v2707_v16 }
  0x6b   :  { %2670 = vmatprep.subr.bf16.mxu1 %v2669_v19  ;;  %v344_v19 = vld [vmem:[#allocation7 + $0x310] sm:$0xff]  ;;  %2710 = vmatprep.subr.bf16.mxu0 %v2709_v17 }
  0x6c   :  { %v2711_v22 = vpack.c.bf16 %v344_v19, %v342_v18  ;;  %v370_v19 = vld [vmem:[#allocation7 + $0x3e0] sm:$0xff] }
  0x6d   :  { %v2739_v21 = vpack.c.bf16 %v372_v20, %v370_v19  ;;  %v506_v20 = vld [vmem:[#allocation7 + $0x530] sm:$0xff] }
  0x6e   :  { %2672 = vmatpush1.bf16.msra.mxu1 %v2671_v24  ;;  %v346_v24 = vld [vmem:[#allocation7 + $0x320] sm:$0xff]  ;;  %2712 = vmatpush1.bf16.msra.mxu0 %v2711_v22  ;;  %v375_v22 = vld [vmem:[#allocation7 + $0x408] sm:$0xff] }
  0x6f   :  { %2674 = vmatprep.subr.bf16.mxu1 %v2673_v25  ;;  %v348_v25 = vld [vmem:[#allocation7 + $0x330] sm:$0xff]  ;;  %2714 = vmatprep.subr.bf16.mxu0 %v2713_v23  ;;  %v377_v23 = vld [vmem:[#allocation7 + $0x418] sm:$0xff] }
  0x72   :  { %2676 = vmatpush1.bf16.msra.mxu1 %v2675_v28  ;;  %v2715_v28 = vpack.c.bf16 %v348_v25, %v346_v24  ;;  %v2741_v24 = vpack.c.bf16 %v377_v23, %v375_v22  ;;  %v374_v25 = vld [vmem:[#allocation7 + $0x400] sm:$0xff]  ;;  %v511_v22 = vld [vmem:[#allocation7 + $0x558] sm:$0xff]  ;;  %v513_v23 = vld [vmem:[#allocation7 + $0x568] sm:$0xff] }
  0x73   :  { %2678 = vmatprep.subr.bf16.mxu1 %v2677_v31  ;;  %v352_v31 = vld [vmem:[#allocation7 + $0x350] sm:$0xff]  ;;  %v2743_v27 = vpack.c.bf16 %v376_v26, %v374_v25  ;;  %v2781_v25 = vpack.c.bf16 %v513_v23, %v511_v22  ;;  %v539_v23 = vld [vmem:[#allocation7 + $0x638] sm:$0xff] }
  0x74   :  { %2716 = vmatpush1.bf16.msra.mxu0 %v2715_v28  ;;  %v379_v28 = vld [vmem:[#allocation7 + $0x428] sm:$0xff]  ;;  %v510_v26 = vld [vmem:[#allocation7 + $0x550] sm:$0xff] }
  0x75   :  { %2718 = vmatprep.subr.bf16.mxu0 %v2717_v29  ;;  %v381_v29 = vld [vmem:[#allocation7 + $0x438] sm:$0xff] }
  0x76   :  { %2680 = vmatpush1.bf16.msra.mxu1 %v2679_v35  ;;  %v2719_v35 = vpack.c.bf16 %v352_v31, %v350_v30  ;;  %v2745_v30 = vpack.c.bf16 %v381_v29, %v379_v28  ;;  %v378_v31 = vld [vmem:[#allocation7 + $0x420] sm:$0xff]  ;;  %v515_v28 = vld [vmem:[#allocation7 + $0x578] sm:$0xff]  ;;  %v517_v29 = vld [vmem:[#allocation7 + $0x588] sm:$0xff] }
  0x77   :  { %2682 = vmatprep.subr.bf16.mxu1 %v2681_v38  ;;  %v356_v38 = vld [vmem:[#allocation7 + $0x370] sm:$0xff]  ;;  %v2747_v34 = vpack.c.bf16 %v380_v33, %v378_v31  ;;  %v2785_v31 = vpack.c.bf16 %v517_v29, %v515_v28  ;;  %v543_v29 = vld [vmem:[#allocation7 + $0x658] sm:$0xff] }
  0x78   :  { %2720 = vmatpush1.bf16.msra.mxu0 %v2719_v35  ;;  %v383_v35 = vld [vmem:[#allocation7 + $0x448] sm:$0xff]  ;;  %v514_v33 = vld [vmem:[#allocation7 + $0x570] sm:$0xff] }
  0x79   :  { %2722 = vmatprep.subr.bf16.mxu0 %v2721_v36  ;;  %v385_v36 = vld [vmem:[#allocation7 + $0x458] sm:$0xff] }
  0x7a   :  { %2684 = vmatpush1.bf16.msra.mxu1 %v2683_v41  ;;  %v2723_v41 = vpack.c.bf16 %v356_v38, %v354_v37  ;;  %v382_v37 = vld [vmem:[#allocation7 + $0x440] sm:$0xff]  ;;  %v2749_v38 = vpack.c.bf16 %v385_v36, %v383_v35  ;;  %v519_v35 = vld [vmem:[#allocation7 + $0x598] sm:$0xff]  ;;  %v521_v36 = vld [vmem:[#allocation7 + $0x5a8] sm:$0xff] }
  0x7b   :  { %2686 = vmatprep.subr.bf16.mxu1 %v2685_v45  ;;  %v363_v45 = vld [vmem:[#allocation7 + $0x3a8] sm:$0xff] }
  0x7c   :  { %2724 = vmatpush1.bf16.msra.mxu0 %v2723_v41  ;;  %v2729_v48 = vpack.c.bf16 %v365_v46, %v363_v45  ;;  %v389_v41 = vld [vmem:[#allocation7 + $0x478] sm:$0xff]  ;;  %v388_v45 = vld [vmem:[#allocation7 + $0x470] sm:$0xff]  ;;  %v391_v46 = vld [vmem:[#allocation7 + $0x488] sm:$0xff] }
  0x7d   :  { %2726 = vmatprep.subr.bf16.mxu0 %v2725_v42  ;;  %v2751_v42 = vpack.c.bf16 %v384_v39, %v382_v37  ;;  %v2753_v43 = vpack.c.bf16 %v389_v41, %v387_v40  ;;  %v518_v39 = vld [vmem:[#allocation7 + $0x590] sm:$0xff]  ;;  %v520_v40 = vld [vmem:[#allocation7 + $0x5a0] sm:$0xff]  ;;  %v523_v41 = vld [vmem:[#allocation7 + $0x5b8] sm:$0xff] }
  0x7e   :  { %2688 = vmatpush1.bf16.msra.mxu1 %v2687_v49  ;;  %v362_v49 = vld [vmem:[#allocation7 + $0x3a0] sm:$0xff] }
  0x7f   :  { %2690 = vmatprep.subr.bf16.mxu1 %v2689_v50  ;;  %v364_v50 = vld [vmem:[#allocation7 + $0x3b0] sm:$0xff] }
  0x80   :  { %2728 = vmatpush1.bf16.msra.mxu0 %v2727_v47  ;;  %v2731_v53 = vpack.c.bf16 %v364_v50, %v362_v49  ;;  %v393_v47 = vld [vmem:[#allocation7 + $0x498] sm:$0xff]  ;;  %v390_v50 = vld [vmem:[#allocation7 + $0x480] sm:$0xff] }
  0x81   :  { %2730 = vmatprep.subr.bf16.mxu0 %v2729_v48  ;;  %v2755_v48 = vpack.c.bf16 %v388_v45, %v386_v44  ;;  %v2757_v49 = vpack.c.bf16 %v393_v47, %v391_v46  ;;  %v2759_v52 = vpack.c.bf16 %v392_v51, %v390_v50  ;;  %v522_v45 = vld [vmem:[#allocation7 + $0x5b0] sm:$0xff]  ;;  %v524_v46 = vld [vmem:[#allocation7 + $0x5c0] sm:$0xff]  ;;  %v527_v47 = vld [vmem:[#allocation7 + $0x5d8] sm:$0xff] }
  0x82   :  { %2692 = vmatpush1.bf16.msra.mxu1 %v2691_v55  ;;  %v366_v55 = vld [vmem:[#allocation7 + $0x3c0] sm:$0xff]  ;;  %v526_v51 = vld [vmem:[#allocation7 + $0x5d0] sm:$0xff] }
  0x83   :  { %2694 = vmatprep.subr.bf16.mxu1 %v2693_v56  ;;  %v368_v56 = vld [vmem:[#allocation7 + $0x3d0] sm:$0xff] }
  0x84   :  { %2732 = vmatpush1.bf16.msra.mxu0 %v2731_v53  ;;  %v491_v53 = vld [vmem:[#allocation7 + $0x4b8] sm:$0xff] }
  0x85   :  { %2734 = vmatprep.subr.bf16.mxu0 %v2733_v54  ;;  %v493_v54 = vld [vmem:[#allocation7 + $0x4c8] sm:$0xff] }
  0x86   :  { %2696 = vmatpush1.bf16.msra.mxu1 %v2695_v59  ;;  %v2735_v59 = vpack.c.bf16 %v368_v56, %v366_v55  ;;  %v490_v55 = vld [vmem:[#allocation7 + $0x4b0] sm:$0xff]  ;;  %v2761_v56 = vpack.c.bf16 %v493_v54, %v491_v53  ;;  %v531_v53 = vld [vmem:[#allocation7 + $0x5f8] sm:$0xff]  ;;  %v533_v54 = vld [vmem:[#allocation7 + $0x608] sm:$0xff] }
  0x88   :  { %2736 = vmatpush1.bf16.msra.mxu0 %v2735_v59  ;;  %v497_v59 = vld [vmem:[#allocation7 + $0x4e8] sm:$0xff]  ;;  %2762 = vmatprep.subr.bf16.mxu1 %v2761_v56  ;;  %v2801_v56 = vpack.c.bf16 %v533_v54, %v531_v53  ;;  %v704_v54 = vld [vmem:[#allocation7 + $0x6f8] sm:$0xff] }
  0x89   :  { %2738 = vmatprep.subr.bf16.mxu0 %v2737_v60  ;;  %v2763_v60 = vpack.c.bf16 %v492_v57, %v490_v55  ;;  %v2765_v62 = vpack.c.bf16 %v497_v59, %v495_v58  ;;  %v235_v57 = vld [vmem:[#allocation7 + $0x290] ss:$8 sm:$0x3]  ;;  %v702_v53 = vld [vmem:[#allocation7 + $0x6e8] sm:$0xff] }
  0x8a   :  { %v240_v58 = vrot.slane %v235_v57, %v3709_v63  ;;  %v244_v59 = vrot.slane %v235_v57, %v3711_v2  ;;  %v701_v57 = vld [vmem:[#allocation7 + $0x6e0] sm:$0xff] }
  0x8c   :  { %2740 = vmatpush1.bf16.msra.mxu0 %v2739_v21  ;;  %v508_v21 = vld [vmem:[#allocation7 + $0x540] sm:$0xff] }
  0x8d   :  { %2742 = vmatprep.subr.bf16.mxu0 %v2741_v24  ;;  %v2779_v24 = vpack.c.bf16 %v508_v21, %v506_v20  ;;  %v534_v20 = vld [vmem:[#allocation7 + $0x610] sm:$0xff]  ;;  %v536_v21 = vld [vmem:[#allocation7 + $0x620] sm:$0xff] }
  0x8e   :  { %v2807_v22 = vpack.c.bf16 %v536_v21, %v534_v20 }
  0x90   :  { %2744 = vmatpush1.bf16.msra.mxu0 %v2743_v27  ;;  %v512_v27 = vld [vmem:[#allocation7 + $0x560] sm:$0xff] }
  0x91   :  { %2746 = vmatprep.subr.bf16.mxu0 %v2745_v30  ;;  %v2783_v30 = vpack.c.bf16 %v512_v27, %v510_v26  ;;  %v538_v26 = vld [vmem:[#allocation7 + $0x630] sm:$0xff]  ;;  %v540_v27 = vld [vmem:[#allocation7 + $0x640] sm:$0xff] }
  0x92   :  { %v2811_v28 = vpack.c.bf16 %v540_v27, %v538_v26 }
  0x94   :  { %2748 = vmatpush1.bf16.msra.mxu0 %v2747_v34  ;;  %v516_v34 = vld [vmem:[#allocation7 + $0x580] sm:$0xff] }
  0x95   :  { %2750 = vmatprep.subr.bf16.mxu0 %v2749_v38  ;;  %v2787_v37 = vpack.c.bf16 %v516_v34, %v514_v33  ;;  %v2789_v38 = vpack.c.bf16 %v521_v36, %v519_v35  ;;  %v544_v34 = vld [vmem:[#allocation7 + $0x660] sm:$0xff]  ;;  %v547_v35 = vld [vmem:[#allocation7 + $0x678] sm:$0xff]  ;;  %v549_v36 = vld [vmem:[#allocation7 + $0x688] sm:$0xff] }
  0x98   :  { %2752 = vmatpush1.bf16.msra.mxu0 %v2751_v42  ;;  %v525_v42 = vld [vmem:[#allocation7 + $0x5c8] sm:$0xff] }
  0x99   :  { %2754 = vmatprep.subr.bf16.mxu0 %v2753_v43  ;;  %v2791_v43 = vpack.c.bf16 %v520_v40, %v518_v39  ;;  %v2793_v44 = vpack.c.bf16 %v525_v42, %v523_v41  ;;  %v546_v39 = vld [vmem:[#allocation7 + $0x670] sm:$0xff]  ;;  %v548_v40 = vld [vmem:[#allocation7 + $0x680] sm:$0xff]  ;;  %v551_v41 = vld [vmem:[#allocation7 + $0x698] sm:$0xff] }
  0x9a   :  { %v553_v42 = vld [vmem:[#allocation7 + $0x6a8] sm:$0xff] }
  0x9c   :  { %2756 = vmatpush1.bf16.msra.mxu0 %v2755_v48  ;;  %v529_v48 = vld [vmem:[#allocation7 + $0x5e8] sm:$0xff] }
  0x9d   :  { %2758 = vmatprep.subr.bf16.mxu0 %v2757_v49  ;;  %v2795_v49 = vpack.c.bf16 %v524_v46, %v522_v45  ;;  %v2797_v50 = vpack.c.bf16 %v529_v48, %v527_v47  ;;  %v550_v45 = vld [vmem:[#allocation7 + $0x690] sm:$0xff]  ;;  %v552_v46 = vld [vmem:[#allocation7 + $0x6a0] sm:$0xff]  ;;  %v698_v48 = vld [vmem:[#allocation7 + $0x6c8] sm:$0xff] }
  0x9e   :  { %v2823_v47 = vpack.c.bf16 %v552_v46, %v550_v45  ;;  %v819_v45 = vld [vmem:[#allocation7 + $0x7a0] sm:$0xff]  ;;  %v822_v46 = vld [vmem:[#allocation7 + $0x7b8] sm:$0xff] }
  0xa0   :  { %2760 = vmatpush1.bf16.msra.mxu0 %v2759_v52  ;;  %v528_v52 = vld [vmem:[#allocation7 + $0x5e0] sm:$0xff] }
  0xa1   :  { %v2799_v55 = vpack.c.bf16 %v528_v52, %v526_v51  ;;  %v699_v52 = vld [vmem:[#allocation7 + $0x6d0] sm:$0xff] }
 0x11c   :  { %v153_v5 = vpop.f32.mrb[0].mxu1 }
 0x11d   :  { %v154_v6 = vadd.f32 %v153_v5, %v76_v3  ;;  %v155_v7 = vpop.f32.mrb[1].mxu1  ;;  %v496_v3 = vld [vmem:[#allocation7 + $0x4e0] sm:$0xff]  ;;  %v501_v5 = vld [vmem:[#allocation7 + $0x508] sm:$0xff] }
 0x11e   :  { %v156_v8 = vadd.f32 %v155_v7, %v80_v4  ;;  %v499_v4 = vld [vmem:[#allocation7 + $0x4f8] sm:$0xff] }
 0x11f   :  { %v160_v9 = vmin.f32 %v154_v6, 0.0  ;;  %vm158_vm2 = vcmp.gt.f32.partialorder %v154_v6, 0.0  ;;  %v2769_v7 = vpack.c.bf16 %v501_v5, %v499_v4 }
 0x120   :  { %v161_v10 = vmin.f32 %v156_v8, 0.0  ;;  %vm159_vm1 = vcmp.gt.f32.partialorder %v156_v8, 0.0 }
 0x121   :  { %v162_v11 = vmul.f32 1.442695, %v160_v9  ;;  %v500_v9 = vld [vmem:[#allocation7 + $0x500] sm:$0xff] }
 0x122   :  { %v164_v12 = vmul.f32 1.442695, %v161_v10  ;;  %v503_v10 = vld [vmem:[#allocation7 + $0x518] sm:$0xff] }
 0x123   :  { %3479 = vpow2.f32 %v162_v11  ;;  %v505_v11 = vld [vmem:[#allocation7 + $0x528] sm:$0xff] }
 0x124   :  { %3481 = vpow2.f32 %v164_v12 }
 0x12d   :  { %v3480_v13 = vpop.eup %3479 }
 0x12e   :  { %v3482_v14 = vpop.eup %3481  ;;  %v2586_v15 = vadd.f32 -1.0, %v3480_v13  ;;  %v2773_v13 = vpack.c.bf16 %v505_v11, %v503_v10 }
 0x12f   :  { %v2587_v16 = vadd.f32 -1.0, %v3482_v14  ;;  %v502_v14 = vld [vmem:[#allocation7 + $0x510] sm:$0xff] }
 0x130   :  { %v168_v18 = vsel %vm158_vm2, %v154_v6, %v2586_v15  ;;  %v2767_v6 = vpack.c.bf16 %v496_v3, %v494_v1  ;;  %v504_v15 = vld [vmem:[#allocation7 + $0x520] sm:$0xff] }
 0x131   :  { %v169_v17 = vsel %vm159_vm1, %v156_v8, %v2587_v16  ;;  %v498_v8 = vld [vmem:[#allocation7 + $0x4f0] sm:$0xff]  ;;  %v507_v16 = vld [vmem:[#allocation7 + $0x538] sm:$0xff] }
 0x132   :  { %311 = vmatprep.mubr.f32.mxu1 %v169_v17  ;;  %v2771_v12 = vpack.c.bf16 %v500_v9, %v498_v8  ;;  %v509_v17 = vld [vmem:[#allocation7 + $0x548] sm:$0xff] }
 0x133   :  { %312 = vmatmul.mubr.f32.vlgmr.msra.gmra.mrb[2].mxu1 %v168_v18  ;;  %v2775_v18 = vpack.c.bf16 %v504_v15, %v502_v14  ;;  %v2777_v19 = vpack.c.bf16 %v509_v17, %v507_v16  ;;  %v530_v14 = vld [vmem:[#allocation7 + $0x5f0] sm:$0xff]  ;;  %v532_v15 = vld [vmem:[#allocation7 + $0x600] sm:$0xff]  ;;  %v535_v17 = vld [vmem:[#allocation7 + $0x618] sm:$0xff] }
 0x134   :  { %2764 = vmatpush1.bf16.msra.mxu1 %v2763_v60  ;;  %v2803_v16 = vpack.c.bf16 %v532_v15, %v530_v14 }
 0x135   :  { %2766 = vmatprep.subr.bf16.mxu1 %v2765_v62 }
 0x138   :  { %2768 = vmatpush1.bf16.msra.mxu1 %v2767_v6 }
 0x139   :  { %2770 = vmatprep.subr.bf16.mxu1 %v2769_v7 }
 0x13c   :  { %2772 = vmatpush1.bf16.msra.mxu1 %v2771_v12 }
 0x13d   :  { %2774 = vmatprep.subr.bf16.mxu1 %v2773_v13 }
 0x140   :  { %2776 = vmatpush1.bf16.msra.mxu1 %v2775_v18  ;;  %v537_v18 = vld [vmem:[#allocation7 + $0x628] sm:$0xff] }
 0x141   :  { %2778 = vmatprep.subr.bf16.mxu1 %v2777_v19  ;;  %v2805_v19 = vpack.c.bf16 %v537_v18, %v535_v17 }
 0x144   :  { %2780 = vmatpush1.bf16.msra.mxu1 %v2779_v24  ;;  %v541_v24 = vld [vmem:[#allocation7 + $0x648] sm:$0xff] }
 0x145   :  { %2782 = vmatprep.subr.bf16.mxu1 %v2781_v25  ;;  %v2809_v25 = vpack.c.bf16 %v541_v24, %v539_v23 }
 0x148   :  { %2784 = vmatpush1.bf16.msra.mxu1 %v2783_v30  ;;  %v545_v30 = vld [vmem:[#allocation7 + $0x668] sm:$0xff] }
 0x149   :  { %2786 = vmatprep.subr.bf16.mxu1 %v2785_v31  ;;  %v542_v31 = vld [vmem:[#allocation7 + $0x650] sm:$0xff]  ;;  %v2813_v33 = vpack.c.bf16 %v545_v30, %v543_v29  ;;  %v812_v29 = vld [vmem:[#allocation7 + $0x768] sm:$0xff] }
 0x14a   :  { %v809_v30 = vld [vmem:[#allocation7 + $0x750] sm:$0xff] }
 0x14c   :  { %2788 = vmatpush1.bf16.msra.mxu1 %v2787_v37  ;;  %v2815_v37 = vpack.c.bf16 %v544_v34, %v542_v31  ;;  %v814_v34 = vld [vmem:[#allocation7 + $0x778] sm:$0xff] }
 0x14d   :  { %2790 = vmatprep.subr.bf16.mxu1 %v2789_v38  ;;  %v2817_v38 = vpack.c.bf16 %v549_v36, %v547_v35  ;;  %v816_v35 = vld [vmem:[#allocation7 + $0x788] sm:$0xff] }
 0x150   :  { %2792 = vmatpush1.bf16.msra.mxu1 %v2791_v43  ;;  %v2819_v43 = vpack.c.bf16 %v548_v40, %v546_v39  ;;  %v815_v39 = vld [vmem:[#allocation7 + $0x780] sm:$0xff]  ;;  %v818_v40 = vld [vmem:[#allocation7 + $0x798] sm:$0xff] }
 0x151   :  { %2794 = vmatprep.subr.bf16.mxu1 %v2793_v44  ;;  %v2821_v44 = vpack.c.bf16 %v553_v42, %v551_v41  ;;  %v820_v41 = vld [vmem:[#allocation7 + $0x7a8] sm:$0xff] }
 0x154   :  { %2796 = vmatpush1.bf16.msra.mxu1 %v2795_v49  ;;  %v700_v49 = vld [vmem:[#allocation7 + $0x6d8] sm:$0xff] }
 0x155   :  { %2798 = vmatprep.subr.bf16.mxu1 %v2797_v50  ;;  %v697_v50 = vld [vmem:[#allocation7 + $0x6c0] sm:$0xff]  ;;  %v2825_v51 = vpack.c.bf16 %v700_v49, %v698_v48 }
 0x157   :  { %2826 = vmatprep.subr.bf16.mxu0 %v2825_v51  ;;  %v823_v51 = vld [vmem:[#allocation7 + $0x7c0] sm:$0xff] }
 0x158   :  { %2800 = vmatpush1.bf16.msra.mxu1 %v2799_v55  ;;  %v2827_v55 = vpack.c.bf16 %v699_v52, %v697_v50  ;;  %v821_v50 = vld [vmem:[#allocation7 + $0x7b0] sm:$0xff]  ;;  %v826_v52 = vld [vmem:[#allocation7 + $0x7d8] sm:$0xff] }
 0x159   :  { %2802 = vmatprep.subr.bf16.mxu1 %v2801_v56  ;;  %v2829_v56 = vpack.c.bf16 %v704_v54, %v702_v53  ;;  %v828_v53 = vld [vmem:[#allocation7 + $0x7e8] sm:$0xff]  ;;  %v2855_v54 = vpack.c.bf16 %v823_v51, %v821_v50 }
 0x15c   :  { %2804 = vmatpush1.bf16.msra.mxu1 %v2803_v16 }
 0x15d   :  { %2806 = vmatprep.subr.bf16.mxu1 %v2805_v19 }
 0x160   :  { %2808 = vmatpush1.bf16.msra.mxu1 %v2807_v22 }
 0x161   :  { %2810 = vmatprep.subr.bf16.mxu1 %v2809_v25 }
 0x164   :  { %2812 = vmatpush1.bf16.msra.mxu1 %v2811_v28  ;;  %v810_v28 = vld [vmem:[#allocation7 + $0x758] sm:$0xff] }
 0x165   :  { %2814 = vmatprep.subr.bf16.mxu1 %v2813_v33  ;;  %v2841_v31 = vpack.c.bf16 %v812_v29, %v810_v28  ;;  %v811_v33 = vld [vmem:[#allocation7 + $0x760] sm:$0xff]  ;;  %v850_v29 = vld [vmem:[#allocation7 + $0x898] sm:$0xff] }
 0x166   :  { %v2843_v36 = vpack.c.bf16 %v811_v33, %v809_v30  ;;  %v847_v28 = vld [vmem:[#allocation7 + $0x880] sm:$0xff]  ;;  %v852_v30 = vld [vmem:[#allocation7 + $0x8a8] sm:$0xff] }
 0x167   :  { %v2881_v33 = vpack.c.bf16 %v852_v30, %v850_v29 }
 0x168   :  { %2816 = vmatpush1.bf16.msra.mxu1 %v2815_v37  ;;  %v2845_v37 = vpack.c.bf16 %v816_v35, %v814_v34  ;;  %v849_v34 = vld [vmem:[#allocation7 + $0x890] sm:$0xff]  ;;  %v851_v35 = vld [vmem:[#allocation7 + $0x8a0] sm:$0xff] }
 0x169   :  { %2818 = vmatprep.subr.bf16.mxu1 %v2817_v38  ;;  %v813_v38 = vld [vmem:[#allocation7 + $0x770] sm:$0xff] }
 0x16a   :  { %v2847_v42 = vpack.c.bf16 %v815_v39, %v813_v38  ;;  %v2883_v38 = vpack.c.bf16 %v851_v35, %v849_v34 }
 0x16c   :  { %2820 = vmatpush1.bf16.msra.mxu1 %v2819_v43  ;;  %v2849_v43 = vpack.c.bf16 %v820_v41, %v818_v40  ;;  %v853_v40 = vld [vmem:[#allocation7 + $0x8b0] sm:$0xff]  ;;  %v855_v41 = vld [vmem:[#allocation7 + $0x8c0] sm:$0xff] }
 0x16d   :  { %2822 = vmatprep.subr.bf16.mxu1 %v2821_v44  ;;  %v817_v44 = vld [vmem:[#allocation7 + $0x790] sm:$0xff] }
 0x16e   :  { %v2851_v48 = vpack.c.bf16 %v819_v45, %v817_v44  ;;  %v2887_v44 = vpack.c.bf16 %v855_v41, %v853_v40  ;;  %v969_v41 = vld [vmem:[#allocation7 + $0x960] sm:$0xff] }
 0x170   :  { %2824 = vmatpush1.bf16.msra.mxu1 %v2823_v47  ;;  %v824_v47 = vld [vmem:[#allocation7 + $0x7c8] sm:$0xff] }
 0x171   :  { %v2853_v49 = vpack.c.bf16 %v824_v47, %v822_v46  ;;  %v857_v46 = vld [vmem:[#allocation7 + $0x8d0] sm:$0xff]  ;;  %v859_v47 = vld [vmem:[#allocation7 + $0x8e0] sm:$0xff] }
 0x172   :  { %v2891_v50 = vpack.c.bf16 %v859_v47, %v857_v46  ;;  %v973_v46 = vld [vmem:[#allocation7 + $0x980] sm:$0xff] }
 0x206   :  { %v313_v60 = vpop.f32.mrb[2].mxu1 }
 0x207   :  { %v314_v62 = vadd.f32 %v313_v60, %v240_v58  ;;  %v315_v1 = vpop.f32.mrb[3].mxu1  ;;  %v703_v58 = vld [vmem:[#allocation7 + $0x6f0] sm:$0xff]  ;;  %v708_v60 = vld [vmem:[#allocation7 + $0x718] sm:$0xff] }
 0x208   :  { %v316_v3 = vadd.f32 %v315_v1, %v244_v59  ;;  %v706_v59 = vld [vmem:[#allocation7 + $0x708] sm:$0xff] }
 0x209   :  { %v320_v4 = vmin.f32 %v314_v62, 0.0  ;;  %vm318_vm4 = vcmp.gt.f32.partialorder %v314_v62, 0.0  ;;  %v2833_v1 = vpack.c.bf16 %v708_v60, %v706_v59  ;;  %v830_v60 = vld [vmem:[#allocation7 + $0x7f8] sm:$0xff] }
 0x20a   :  { %v321_v5 = vmin.f32 %v316_v3, 0.0  ;;  %vm319_vm3 = vcmp.gt.f32.partialorder %v316_v3, 0.0 }
 0x20b   :  { %v322_v6 = vmul.f32 1.442695, %v320_v4  ;;  %v707_v4 = vld [vmem:[#allocation7 + $0x710] sm:$0xff] }
 0x20c   :  { %v324_v7 = vmul.f32 1.442695, %v321_v5  ;;  %v710_v5 = vld [vmem:[#allocation7 + $0x728] sm:$0xff] }
 0x20d   :  { %3483 = vpow2.f32 %v322_v6  ;;  %v712_v6 = vld [vmem:[#allocation7 + $0x738] sm:$0xff] }
 0x20e   :  { %3485 = vpow2.f32 %v324_v7 }
 0x217   :  { %v3484_v8 = vpop.eup %3483 }
 0x218   :  { %v3486_v9 = vpop.eup %3485  ;;  %v2588_v10 = vadd.f32 -1.0, %v3484_v8  ;;  %v2837_v8 = vpack.c.bf16 %v712_v6, %v710_v5  ;;  %v831_v5 = vld [vmem:[#allocation7 + $0x800] sm:$0xff]  ;;  %v834_v6 = vld [vmem:[#allocation7 + $0x818] sm:$0xff] }
 0x219   :  { %v2589_v11 = vadd.f32 -1.0, %v3486_v9  ;;  %v709_v9 = vld [vmem:[#allocation7 + $0x720] sm:$0xff] }
 0x21a   :  { %v328_v13 = vsel %vm318_vm4, %v314_v62, %v2588_v10  ;;  %v2831_v62 = vpack.c.bf16 %v703_v58, %v701_v57  ;;  %v711_v10 = vld [vmem:[#allocation7 + $0x730] sm:$0xff]  ;;  %v827_v58 = vld [vmem:[#allocation7 + $0x7e0] sm:$0xff] }
 0x21b   :  { %v329_v12 = vsel %vm319_vm3, %v316_v3, %v2589_v11  ;;  %v705_v3 = vld [vmem:[#allocation7 + $0x700] sm:$0xff]  ;;  %v2839_v11 = vpack.c.bf16 %v711_v10, %v709_v9  ;;  %v825_v57 = vld [vmem:[#allocation7 + $0x7d0] sm:$0xff] }
 0x21c   :  { %471 = vmatprep.mubr.f32.mxu0 %v329_v12  ;;  %v2835_v7 = vpack.c.bf16 %v707_v4, %v705_v3  ;;  %v395_v12 = vld [vmem:[#allocation7 + $0x4a0] ss:$8 sm:$0x3]  ;;  %v829_v4 = vld [vmem:[#allocation7 + $0x7f0] sm:$0xff] }
 0x21d   :  { %472 = vmatmul.mubr.f32.vlgmr.msra.gmra.mrb[0].mxu0 %v328_v13  ;;  %v400_v13 = vrot.slane %v395_v12, %v3709_v63  ;;  %v404_v14 = vrot.slane %v395_v12, %v3711_v2  ;;  %v833_v10 = vld [vmem:[#allocation7 + $0x810] sm:$0xff]  ;;  %v838_v12 = vld [vmem:[#allocation7 + $0x838] sm:$0xff] }
 0x21e   :  { %790 = vmatprep.mubr.f32.mxu0 %v3635_v0  ;;  %2828 = vmatpush1.bf16.msra.mxu0 %v2827_v55 }
 0x21f   :  { %2830 = vmatprep.subr.bf16.mxu0 %v2829_v56  ;;  %v2857_v56 = vpack.c.bf16 %v828_v53, %v826_v52  ;;  %v861_v52 = vld [vmem:[#allocation7 + $0x8f0] sm:$0xff]  ;;  %v863_v53 = vld [vmem:[#allocation7 + $0x900] sm:$0xff] }
 0x222   :  { %2832 = vmatpush1.bf16.msra.mxu0 %v2831_v62  ;;  %v832_v62 = vld [vmem:[#allocation7 + $0x808] sm:$0xff] }
 0x223   :  { %2834 = vmatprep.subr.bf16.mxu0 %v2833_v1  ;;  %v2859_v1 = vpack.c.bf16 %v827_v58, %v825_v57  ;;  %v2861_v3 = vpack.c.bf16 %v832_v62, %v830_v60  ;;  %v2895_v57 = vpack.c.bf16 %v863_v53, %v861_v52  ;;  %v865_v60 = vld [vmem:[#allocation7 + $0x910] sm:$0xff]  ;;  %v867_v62 = vld [vmem:[#allocation7 + $0x920] sm:$0xff] }
 0x224   :  { %v977_v53 = vld [vmem:[#allocation7 + $0x9a0] sm:$0xff] }
 0x226   :  { %2836 = vmatpush1.bf16.msra.mxu0 %v2835_v7  ;;  %v836_v7 = vld [vmem:[#allocation7 + $0x828] sm:$0xff] }
 0x227   :  { %2838 = vmatprep.subr.bf16.mxu0 %v2837_v8  ;;  %v2863_v8 = vpack.c.bf16 %v831_v5, %v829_v4  ;;  %v2865_v9 = vpack.c.bf16 %v836_v7, %v834_v6  ;;  %v555_v4 = vld [vmem:[#allocation7 + $0x6b0] ss:$8 sm:$0x3]  ;;  %v3729_v7 = vand.u32 127, %v73_v61 }
 0x229   :  { %vm641_vm8 = vcmp.lt.s32.totalorder %v3729_v7, 3 }
 0x22a   :  { %2840 = vmatpush1.bf16.msra.mxu0 %v2839_v11  ;;  %v835_v11 = vld [vmem:[#allocation7 + $0x820] sm:$0xff] }
 0x22b   :  { %2842 = vmatprep.subr.bf16.mxu0 %v2841_v31 }
 0x22d   :  { %2593 = vmatmul.mubr.msk.f32.vlgmr.msra.gmra.mrb[2].mxu0 %vm83_vm0, %v3704_v32 }
 0x22e   :  { %2844 = vmatpush1.bf16.msra.mxu0 %v2843_v36  ;;  %v854_v36 = vld [vmem:[#allocation7 + $0x8b8] sm:$0xff] }
 0x22f   :  { %2846 = vmatprep.subr.bf16.mxu0 %v2845_v37  ;;  %v856_v37 = vld [vmem:[#allocation7 + $0x8c8] sm:$0xff] }
 0x230   :  { %v2885_v39 = vpack.c.bf16 %v856_v37, %v854_v36 }
 0x232   :  { %2848 = vmatpush1.bf16.msra.mxu0 %v2847_v42  ;;  %v858_v42 = vld [vmem:[#allocation7 + $0x8d8] sm:$0xff] }
 0x233   :  { %2850 = vmatprep.subr.bf16.mxu0 %v2849_v43  ;;  %v860_v43 = vld [vmem:[#allocation7 + $0x8e8] sm:$0xff] }
 0x234   :  { %v2889_v45 = vpack.c.bf16 %v860_v43, %v858_v42  ;;  %v971_v42 = vld [vmem:[#allocation7 + $0x970] sm:$0xff] }
 0x235   :  { %v2907_v43 = vpack.c.bf16 %v971_v42, %v969_v41  ;;  %v1009_v42 = vld [vmem:[#allocation7 + $0xaa0] sm:$0xff] }
 0x236   :  { %2852 = vmatpush1.bf16.msra.mxu0 %v2851_v48  ;;  %v862_v48 = vld [vmem:[#allocation7 + $0x8f8] sm:$0xff] }
 0x237   :  { %2854 = vmatprep.subr.bf16.mxu0 %v2853_v49  ;;  %v864_v49 = vld [vmem:[#allocation7 + $0x908] sm:$0xff] }
 0x238   :  { %v2893_v51 = vpack.c.bf16 %v864_v49, %v862_v48  ;;  %v975_v48 = vld [vmem:[#allocation7 + $0x990] sm:$0xff]  ;;  %v978_v49 = vld [vmem:[#allocation7 + $0x9a8] sm:$0xff] }
 0x23a   :  { %2856 = vmatpush1.bf16.msra.mxu0 %v2855_v54  ;;  %v866_v54 = vld [vmem:[#allocation7 + $0x918] sm:$0xff] }
 0x23b   :  { %2858 = vmatprep.subr.bf16.mxu0 %v2857_v56  ;;  %v868_v56 = vld [vmem:[#allocation7 + $0x928] sm:$0xff] }
 0x23c   :  { %v2897_v58 = vpack.c.bf16 %v868_v56, %v866_v54  ;;  %v979_v54 = vld [vmem:[#allocation7 + $0x9b0] sm:$0xff]  ;;  %v982_v56 = vld [vmem:[#allocation7 + $0x9c8] sm:$0xff] }
 0x23e   :  { %2860 = vmatpush1.bf16.msra.mxu0 %v2859_v1  ;;  %v2899_v1 = vpack.c.bf16 %v867_v62, %v865_v60  ;;  %v981_v62 = vld [vmem:[#allocation7 + $0x9c0] sm:$0xff] }
 0x23f   :  { %2862 = vmatprep.subr.bf16.mxu0 %v2861_v3  ;;  %v714_v3 = vld [vmem:[#allocation7 + $0x740] ss:$8 sm:$0x3] }
 0x240   :  { %v723_v5 = vrot.slane %v714_v3, %v3711_v2  ;;  %v719_v6 = vrot.slane %v714_v3, %v3709_v63  ;;  %v986_v3 = vld [vmem:[#allocation7 + $0x9e8] sm:$0xff] }
 0x242   :  { %2864 = vmatpush1.bf16.msra.mxu0 %v2863_v8  ;;  %v560_v8 = vrot.slane %v555_v4, %v3709_v63  ;;  %v988_v4 = vld [vmem:[#allocation7 + $0x9f8] sm:$0xff] }
 0x243   :  { %2866 = vmatprep.subr.bf16.mxu0 %v2865_v9 }
 0x2f0   :  { %v473_v15 = vpop.f32.mrb[0].mxu0 }
 0x2f1   :  { %v474_v16 = vadd.f32 %v473_v15, %v400_v13  ;;  %v475_v17 = vpop.f32.mrb[1].mxu0  ;;  %v840_v13 = vld [vmem:[#allocation7 + $0x848] sm:$0xff] }
 0x2f2   :  { %v476_v18 = vadd.f32 %v475_v17, %v404_v14  ;;  %v2867_v14 = vpack.c.bf16 %v835_v11, %v833_v10  ;;  %v2869_v15 = vpack.c.bf16 %v840_v13, %v838_v12  ;;  %v839_v17 = vld [vmem:[#allocation7 + $0x840] sm:$0xff] }
 0x2f3   :  { %v480_v19 = vmin.f32 %v474_v16, 0.0  ;;  %vm478_vm6 = vcmp.gt.f32.partialorder %v474_v16, 0.0 }
 0x2f4   :  { %v481_v20 = vmin.f32 %v476_v18, 0.0  ;;  %vm479_vm5 = vcmp.gt.f32.partialorder %v476_v18, 0.0  ;;  %2868 = vmatpush1.bf16.msra.mxu0 %v2867_v14  ;;  %v3636_v14 = vmov -inf  }
 0x2f5   :  { %v482_v21 = vmul.f32 1.442695, %v480_v19  ;;  %v844_v19 = vld [vmem:[#allocation7 + $0x868] sm:$0xff]  ;;  %2870 = vmatprep.subr.bf16.mxu0 %v2869_v15  ;;  %v647_v15 = vsel %vm645_vm7, -1e+30, %v3636_v14  ;;  %v989_v14 = vld [vmem:[#allocation7 + $0xa00] sm:$0xff] }
 0x2f6   :  { %v484_v22 = vmul.f32 1.442695, %v481_v20 }
 0x2f7   :  { %3487 = vpow2.f32 %v482_v21 }
 0x2f8   :  { %3489 = vpow2.f32 %v484_v22  ;;  %v841_v22 = vld [vmem:[#allocation7 + $0x850] sm:$0xff] }
 0x300   :  { %v3722_v55 = vpop.f32.mrb[2].mxu0 }
 0x301   :  { %v3488_v23 = vpop.eup %3487  ;;  %v3724_v59 = vpop.f32.mrb[3].mxu0  ;;  %v793_v10 = vadd.f32 %v3722_v55, %v719_v6  ;;  %v2921_v6 = vpack.c.bf16 %v988_v4, %v986_v3  ;;  %v1019_v3 = vld [vmem:[#allocation7 + $0xaf0] sm:$0xff] }
 0x302   :  { %v3490_v24 = vpop.eup %3489  ;;  %v2590_v25 = vadd.f32 -1.0, %v3488_v23  ;;  %v843_v23 = vld [vmem:[#allocation7 + $0x860] sm:$0xff]  ;;  %v795_v9 = vadd.f32 %v3724_v59, %v723_v5 }
 0x303   :  { %v2591_v26 = vadd.f32 -1.0, %v3490_v24  ;;  %v846_v24 = vld [vmem:[#allocation7 + $0x878] sm:$0xff]  ;;  %vm797_vm9 = vcmp.gt.f32.partialorder %v793_v10, 0.0 }
 0x304   :  { %v488_v27 = vsel %vm478_vm6, %v474_v16, %v2590_v25  ;;  %v837_v16 = vld [vmem:[#allocation7 + $0x830] sm:$0xff]  ;;  %v848_v25 = vld [vmem:[#allocation7 + $0x888] sm:$0xff]  ;;  %vm798_vm10 = vcmp.gt.f32.partialorder %v795_v9, 0.0 }
 0x305   :  { %v489_v32 = vsel %vm479_vm5, %v476_v18, %v2591_v26  ;;  %v842_v18 = vld [vmem:[#allocation7 + $0x858] sm:$0xff]  ;;  %v2871_v20 = vpack.c.bf16 %v839_v17, %v837_v16  ;;  %v2875_v26 = vpack.c.bf16 %v843_v23, %v841_v22  ;;  %v800_v16 = vmin.f32 %v795_v9, 0.0  ;;  %v872_v22 = vld [vmem:[#allocation7 + $0x948] sm:$0xff] }
 0x306   :  { %631 = vmatprep.mubr.f32.mxu1 %v489_v32  ;;  %v2873_v21 = vpack.c.bf16 %v844_v19, %v842_v18  ;;  %v2877_v32 = vpack.c.bf16 %v848_v25, %v846_v24  ;;  %v799_v17 = vmin.f32 %v793_v10, 0.0  ;;  %v869_v25 = vld [vmem:[#allocation7 + $0x930] sm:$0xff]  ;;  %vm1321_vm5 = vcmask 261120  }
 0x307   :  { %632 = vmatmul.mubr.f32.vlgmr.msra.gmra.mrb[4].mxu1 %v488_v27  ;;  %2872 = vmatpush1.bf16.msra.mxu0 %v2871_v20  ;;  %v845_v27 = vld [vmem:[#allocation7 + $0x870] sm:$0xff]  ;;  %v803_v59 = vmul.f32 1.442695, %v800_v16  ;;  %v994_v16 = vld [vmem:[#allocation7 + $0xa28] sm:$0xff] }
 0x308   :  { %2874 = vmatprep.subr.bf16.mxu0 %v2873_v21  ;;  %v2879_v31 = vpack.c.bf16 %v847_v28, %v845_v27  ;;  %v801_v20 = vmul.f32 1.442695, %v799_v17  ;;  %v870_v21 = vld [vmem:[#allocation7 + $0x938] sm:$0xff] }
 0x309   :  { %3491 = vpow2.f32 %v803_v59  ;;  %v2901_v24 = vpack.c.bf16 %v872_v22, %v870_v21  ;;  %v995_v59 = vld [vmem:[#allocation7 + $0xa30] sm:$0xff] }
 0x30a   :  { %3493 = vpow2.f32 %v801_v20  ;;  %v998_v20 = vld [vmem:[#allocation7 + $0xa48] sm:$0xff] }
 0x30b   :  { %2876 = vmatpush1.bf16.msra.mxu0 %v2875_v26  ;;  %v871_v26 = vld [vmem:[#allocation7 + $0x940] sm:$0xff] }
 0x30c   :  { %2878 = vmatprep.subr.bf16.mxu0 %v2877_v32  ;;  %v2903_v32 = vpack.c.bf16 %v871_v26, %v869_v25  ;;  %v1002_v25 = vld [vmem:[#allocation7 + $0xa68] sm:$0xff]  ;;  %v1004_v26 = vld [vmem:[#allocation7 + $0xa78] sm:$0xff] }
 0x30f   :  { %2880 = vmatpush1.bf16.msra.mxu0 %v2879_v31 }
 0x310   :  { %2882 = vmatprep.subr.bf16.mxu0 %v2881_v33 }
 0x313   :  { %2884 = vmatpush1.bf16.msra.mxu0 %v2883_v38  ;;  %v3492_v55 = vpop.eup %3491  ;;  %v970_v38 = vld [vmem:[#allocation7 + $0x968] sm:$0xff] }
 0x314   :  { %2886 = vmatprep.subr.bf16.mxu0 %v2885_v39  ;;  %v3494_v23 = vpop.eup %3493  ;;  %v2595_v27 = vadd.f32 -1.0, %v3492_v55  ;;  %v972_v39 = vld [vmem:[#allocation7 + $0x978] sm:$0xff] }
 0x315   :  { %v2594_v28 = vadd.f32 -1.0, %v3494_v23  ;;  %v2905_v40 = vpack.c.bf16 %v972_v39, %v970_v38  ;;  %v1000_v55 = vld [vmem:[#allocation7 + $0xa58] sm:$0xff]  ;;  %v997_v23 = vld [vmem:[#allocation7 + $0xa40] sm:$0xff]  ;;  %v1010_v38 = vld [vmem:[#allocation7 + $0xaa8] sm:$0xff] }
 0x316   :  { %v808_v29 = vsel %vm798_vm10, %v795_v9, %v2595_v27  ;;  %v987_v9 = vld [vmem:[#allocation7 + $0x9f0] sm:$0xff]  ;;  %v2933_v22 = vpack.c.bf16 %v1000_v55, %v998_v20  ;;  %v2937_v27 = vpack.c.bf16 %v1004_v26, %v1002_v25  ;;  %v1012_v39 = vld [vmem:[#allocation7 + $0xab8] sm:$0xff]  ;;  %v1030_v20 = vld [vmem:[#allocation7 + $0xb48] sm:$0xff] }
 0x317   :  { %2888 = vmatpush1.bf16.msra.mxu0 %v2887_v44  ;;  %950 = vmatprep.mubr.f32.mxu0 %v808_v29  ;;  %v807_v30 = vsel %vm797_vm9, %v793_v10, %v2594_v28  ;;  %v974_v44 = vld [vmem:[#allocation7 + $0x988] sm:$0xff]  ;;  %v1001_v28 = vld [vmem:[#allocation7 + $0xa60] sm:$0xff]  ;;  %v1003_v29 = vld [vmem:[#allocation7 + $0xa70] sm:$0xff]  ;;  %v2945_v41 = vpack.c.bf16 %v1012_v39, %v1010_v38 }
 0x318   :  { %2890 = vmatprep.subr.bf16.mxu0 %v2889_v45  ;;  %v976_v45 = vld [vmem:[#allocation7 + $0x998] sm:$0xff]  ;;  %2906 = vmatprep.subr.bf16.mxu1 %v2905_v40  ;;  %v990_v10 = vld [vmem:[#allocation7 + $0xa08] sm:$0xff] }
 0x319   :  { %v2909_v47 = vpack.c.bf16 %v976_v45, %v974_v44  ;;  %2908 = vmatpush1.bf16.msra.mxu1 %v2907_v43  ;;  %v1011_v43 = vld [vmem:[#allocation7 + $0xab0] sm:$0xff]  ;;  %v1014_v45 = vld [vmem:[#allocation7 + $0xac8] sm:$0xff]  ;;  %v1032_v55 = vld [vmem:[#allocation7 + $0xb58] sm:$0xff] }
 0x31a   :  { %v874_v44 = vld [vmem:[#allocation7 + $0x950] ss:$8 sm:$0x3] }
 0x31b   :  { %2892 = vmatpush1.bf16.msra.mxu0 %v2891_v50  ;;  %v980_v50 = vld [vmem:[#allocation7 + $0x9b8] sm:$0xff]  ;;  %2910 = vmatprep.subr.bf16.mxu1 %v2909_v47  ;;  %v2947_v47 = vpack.c.bf16 %v1011_v43, %v1009_v42  ;;  %v1129_v42 = vld [vmem:[#allocation7 + $0xb70] sm:$0xff] }
 0x31c   :  { %2894 = vmatprep.subr.bf16.mxu0 %v2893_v51  ;;  %v2911_v51 = vpack.c.bf16 %v975_v48, %v973_v46  ;;  %v2913_v52 = vpack.c.bf16 %v980_v50, %v978_v49  ;;  %v1016_v46 = vld [vmem:[#allocation7 + $0xad8] sm:$0xff]  ;;  %v879_v48 = vrot.slane %v874_v44, %v3709_v63  ;;  %v1013_v50 = vld [vmem:[#allocation7 + $0xac0] sm:$0xff] }
 0x31d   :  { %v2949_v49 = vpack.c.bf16 %v1016_v46, %v1014_v45  ;;  %v1134_v45 = vld [vmem:[#allocation7 + $0xb98] sm:$0xff]  ;;  %v1136_v46 = vld [vmem:[#allocation7 + $0xba8] sm:$0xff] }
 0x31e   :  { %2912 = vmatpush1.bf16.msra.mxu1 %v2911_v51  ;;  %v1015_v51 = vld [vmem:[#allocation7 + $0xad0] sm:$0xff] }
 0x31f   :  { %2896 = vmatpush1.bf16.msra.mxu0 %v2895_v57  ;;  %v984_v57 = vld [vmem:[#allocation7 + $0x9d8] sm:$0xff]  ;;  %2914 = vmatprep.subr.bf16.mxu1 %v2913_v52  ;;  %v883_v52 = vrot.slane %v874_v44, %v3711_v2  ;;  %v1131_v44 = vld [vmem:[#allocation7 + $0xb80] sm:$0xff] }
 0x320   :  { %2898 = vmatprep.subr.bf16.mxu0 %v2897_v58  ;;  %v2915_v58 = vpack.c.bf16 %v979_v54, %v977_v53  ;;  %v2917_v60 = vpack.c.bf16 %v984_v57, %v982_v56  ;;  %v1018_v53 = vld [vmem:[#allocation7 + $0xae8] sm:$0xff]  ;;  %v1020_v54 = vld [vmem:[#allocation7 + $0xaf8] sm:$0xff]  ;;  %v2951_v57 = vpack.c.bf16 %v1015_v51, %v1013_v50 }
 0x321   :  { %v1138_v50 = vld [vmem:[#allocation7 + $0xbb8] sm:$0xff]  ;;  %v1140_v51 = vld [vmem:[#allocation7 + $0xbc8] sm:$0xff] }
 0x322   :  { %2916 = vmatpush1.bf16.msra.mxu1 %v2915_v58 }
 0x323   :  { %2900 = vmatpush1.bf16.msra.mxu0 %v2899_v1  ;;  %v983_v1 = vld [vmem:[#allocation7 + $0x9d0] sm:$0xff]  ;;  %2918 = vmatprep.subr.bf16.mxu1 %v2917_v60 }
 0x324   :  { %2902 = vmatprep.subr.bf16.mxu0 %v2901_v24  ;;  %v2919_v5 = vpack.c.bf16 %v983_v1, %v981_v62  ;;  %v999_v24 = vld [vmem:[#allocation7 + $0xa50] sm:$0xff]  ;;  %v2953_v62 = vpack.c.bf16 %v1020_v54, %v1018_v53  ;;  %v1017_v1 = vld [vmem:[#allocation7 + $0xae0] sm:$0xff]  ;;  %v2977_v53 = vpack.c.bf16 %v1140_v51, %v1138_v50 }
 0x325   :  { %v1137_v54 = vld [vmem:[#allocation7 + $0xbb0] sm:$0xff]  ;;  %v1175_v51 = vld [vmem:[#allocation7 + $0xce0] sm:$0xff] }
 0x326   :  { %2920 = vmatpush1.bf16.msra.mxu1 %v2919_v5  ;;  %v1022_v5 = vld [vmem:[#allocation7 + $0xb08] sm:$0xff]  ;;  %v1173_v50 = vld [vmem:[#allocation7 + $0xcd0] sm:$0xff] }
 0x327   :  { %2904 = vmatpush1.bf16.msra.mxu0 %v2903_v32  ;;  %2922 = vmatprep.subr.bf16.mxu1 %v2921_v6  ;;  %v2935_v32 = vpack.c.bf16 %v999_v24, %v997_v23  ;;  %v1024_v6 = vld [vmem:[#allocation7 + $0xb18] sm:$0xff]  ;;  %v1029_v23 = vld [vmem:[#allocation7 + $0xb40] sm:$0xff]  ;;  %v1031_v24 = vld [vmem:[#allocation7 + $0xb50] sm:$0xff] }
 0x328   :  { %v2967_v25 = vpack.c.bf16 %v1031_v24, %v1029_v23  ;;  %v1157_v24 = vld [vmem:[#allocation7 + $0xc50] sm:$0xff] }
 0x32a   :  { %951 = vmatmul.mubr.f32.vlgmr.msra.gmra.mrb[4].mxu0 %v807_v30  ;;  %v1006_v30 = vld [vmem:[#allocation7 + $0xa88] sm:$0xff] }
 0x3da   :  { %v633_v11 = vpop.f32.mrb[4].mxu1 }
 0x3db   :  { %v634_v12 = vadd.f32 %v633_v11, %v560_v8  ;;  %v635_v13 = vpop.f32.mrb[5].mxu1  ;;  %v985_v8 = vld [vmem:[#allocation7 + $0x9e0] sm:$0xff]  ;;  %v992_v11 = vld [vmem:[#allocation7 + $0xa18] sm:$0xff] }
 0x3dc   :  { %v2925_v13 = vpack.c.bf16 %v992_v11, %v990_v10  ;;  %v2955_v10 = vpack.c.bf16 %v1019_v3, %v1017_v1  ;;  %v1141_v1 = vld [vmem:[#allocation7 + $0xbd0] sm:$0xff]  ;;  %v1143_v3 = vld [vmem:[#allocation7 + $0xbe0] sm:$0xff] }
 0x3dd   :  { %v643_v61 = vsel %vm641_vm8, %v634_v12, -1e+30  ;;  %v2923_v12 = vpack.c.bf16 %v987_v9, %v985_v8 }
 0x3de   :  { %v646_v18 = vsel %vm645_vm7, %v643_v61, -inf }
 0x3df   :  { %v648_v19 = vmax.f32 %v646_v18, %v647_v15  ;;  %v991_v15 = vld [vmem:[#allocation7 + $0xa10] sm:$0xff]  ;;  %2924 = vmatpush1.bf16.msra.mxu1 %v2923_v12  ;;  %v2957_v12 = vpack.c.bf16 %v1024_v6, %v1022_v5  ;;  %v1148_v5 = vld [vmem:[#allocation7 + $0xc08] sm:$0xff]  ;;  %v2983_v6 = vpack.c.bf16 %v1143_v3, %v1141_v1 }
 0x3e0   :  { %v2927_v17 = vpack.c.bf16 %v991_v15, %v989_v14  ;;  %2926 = vmatprep.subr.bf16.mxu1 %v2925_v13  ;;  %v1021_v13 = vld [vmem:[#allocation7 + $0xb00] sm:$0xff]  ;;  %v1023_v14 = vld [vmem:[#allocation7 + $0xb10] sm:$0xff] }
 0x3e1   :  { %649 = vmax.xlane.f32.xlu0 %v648_v19  ;;  %v993_v19 = vld [vmem:[#allocation7 + $0xa20] sm:$0xff] }
 0x3e2   :  { %v2931_v21 = vpack.c.bf16 %v995_v59, %v993_v19  ;;  %v1025_v19 = vld [vmem:[#allocation7 + $0xb20] sm:$0xff]  ;;  %v1027_v59 = vld [vmem:[#allocation7 + $0xb30] sm:$0xff] }
 0x3e3   :  { %2928 = vmatpush1.bf16.msra.mxu1 %v2927_v17  ;;  %v2959_v17 = vpack.c.bf16 %v1023_v14, %v1021_v13 }
 0x3fd   :  { %v952_v56 = vpop.f32.mrb[4].mxu0 }
 0x3fe   :  { %v953_v58 = vadd.f32 %v952_v56, %v879_v48  ;;  %v954_v60 = vpop.f32.mrb[5].mxu0  ;;  %v1133_v48 = vld [vmem:[#allocation7 + $0xb90] sm:$0xff]  ;;  %v1139_v56 = vld [vmem:[#allocation7 + $0xbc0] sm:$0xff] }
 0x3ff   :  { %v955_v4 = vadd.f32 %v954_v60, %v883_v52  ;;  %v2979_v60 = vpack.c.bf16 %v1139_v56, %v1137_v54  ;;  %v3015_v54 = vpack.c.bf16 %v1175_v51, %v1173_v50 }
 0x400   :  { %v959_v8 = vmin.f32 %v953_v58, 0.0  ;;  %vm957_vm11 = vcmp.gt.f32.partialorder %v953_v58, 0.0 }
 0x401   :  { %v960_v9 = vmin.f32 %v955_v4, 0.0  ;;  %vm958_vm12 = vcmp.gt.f32.partialorder %v955_v4, 0.0 }
 0x402   :  { %v961_v11 = vmul.f32 1.442695, %v959_v8 }
 0x403   :  { %v963_v15 = vmul.f32 1.442695, %v960_v9  ;;  %v1145_v9 = vld [vmem:[#allocation7 + $0xbf0] sm:$0xff] }
 0x46e   :  { %v650_v31 = vpop.xlane.xlu0 %649 }
 0x46f   :  { %v651_v33 = vsub.f32 %v643_v61, %v650_v31  ;;  %v996_v61 = vld [vmem:[#allocation7 + $0xa38] sm:$0xff] }
 0x470   :  { %v2929_v18 = vpack.c.bf16 %v996_v61, %v994_v16  ;;  %v1008_v31 = vld [vmem:[#allocation7 + $0xa98] sm:$0xff]  ;;  %v1026_v16 = vld [vmem:[#allocation7 + $0xb28] sm:$0xff] }
 0x471   :  { %v653_v34 = vmul.f32 1.442695, %v651_v33  ;;  %v2939_v33 = vpack.c.bf16 %v1003_v29, %v1001_v28  ;;  %v1028_v61 = vld [vmem:[#allocation7 + $0xb38] sm:$0xff] }
 0x472   :  { %2930 = vmatprep.subr.bf16.mxu1 %v2929_v18  ;;  %v2961_v18 = vpack.c.bf16 %v1028_v61, %v1026_v16  ;;  %v1151_v16 = vld [vmem:[#allocation7 + $0xc20] sm:$0xff]  ;;  %v1154_v61 = vld [vmem:[#allocation7 + $0xc38] sm:$0xff] }
 0x473   :  { %3495 = vpow2.f32 %v653_v34  ;;  %2932 = vmatpush1.bf16.msra.mxu1 %v2931_v21  ;;  %v2941_v34 = vpack.c.bf16 %v1008_v31, %v1006_v30  ;;  %v2963_v21 = vpack.c.bf16 %v1027_v59, %v1025_v19  ;;  %v1153_v59 = vld [vmem:[#allocation7 + $0xc30] sm:$0xff] }
 0x474   :  { %2934 = vmatprep.subr.bf16.mxu1 %v2933_v22  ;;  %3497 = vpow2.f32 %v961_v11  ;;  %v2965_v22 = vpack.c.bf16 %v1032_v55, %v1030_v20  ;;  %v1150_v11 = vld [vmem:[#allocation7 + $0xc18] sm:$0xff]  ;;  %v1155_v20 = vld [vmem:[#allocation7 + $0xc40] sm:$0xff] }
 0x475   :  { %3499 = vpow2.f32 %v963_v15  ;;  %v1149_v15 = vld [vmem:[#allocation7 + $0xc10] sm:$0xff]  ;;  %v1158_v55 = vld [vmem:[#allocation7 + $0xc58] sm:$0xff] }
 0x477   :  { %2936 = vmatpush1.bf16.msra.mxu1 %v2935_v32 }
 0x478   :  { %2938 = vmatprep.subr.bf16.mxu1 %v2937_v27 }
 0x47b   :  { %2940 = vmatpush1.bf16.msra.mxu1 %v2939_v33 }
 0x47c   :  { %2942 = vmatprep.subr.bf16.mxu1 %v2941_v34 }
 0x47d   :  { %v3496_v35 = vpop.eup %3495 }
 0x47e   :  { %v3741_v36 = vsel %vm641_vm8, %v3496_v35, 0.0  ;;  %v1005_v35 = vld [vmem:[#allocation7 + $0xa80] sm:$0xff]  ;;  %v3498_v26 = vpop.eup %3497 }
 0x47f   :  { %v659_v37 = vsel %vm645_vm7, %v3741_v36, 0.0  ;;  %v3500_v32 = vpop.eup %3499  ;;  %v2596_v27 = vadd.f32 -1.0, %v3498_v26  ;;  %v1162_v26 = vld [vmem:[#allocation7 + $0xc78] sm:$0xff] }
 0x480   :  { %662 = vadd.xlane.f32.xlu0 %v659_v37  ;;  %v1007_v37 = vld [vmem:[#allocation7 + $0xa90] sm:$0xff]  ;;  %v2597_v28 = vadd.f32 -1.0, %v3500_v32  ;;  %v1164_v32 = vld [vmem:[#allocation7 + $0xc88] sm:$0xff] }
 0x481   :  { %v2943_v40 = vpack.c.bf16 %v1007_v37, %v1005_v35  ;;  %v967_v29 = vsel %vm957_vm11, %v953_v58, %v2596_v27  ;;  %v1144_v58 = vld [vmem:[#allocation7 + $0xbe8] sm:$0xff] }
 0x482   :  { %v968_v30 = vsel %vm958_vm12, %v955_v4, %v2597_v28  ;;  %v1146_v4 = vld [vmem:[#allocation7 + $0xbf8] sm:$0xff]  ;;  %v3001_v28 = vpack.c.bf16 %v1164_v32, %v1162_v26 }
 0x483   :  { %2944 = vmatpush1.bf16.msra.mxu1 %v2943_v40  ;;  %1110 = vmatprep.mubr.f32.mxu1 %v968_v30  ;;  %v1130_v40 = vld [vmem:[#allocation7 + $0xb78] sm:$0xff]  ;;  %v2985_v8 = vpack.c.bf16 %v1148_v5, %v1146_v4  ;;  %v1163_v30 = vld [vmem:[#allocation7 + $0xc80] sm:$0xff]  ;;  %v1181_v4 = vld [vmem:[#allocation7 + $0xd10] sm:$0xff] }
 0x484   :  { %2946 = vmatprep.subr.bf16.mxu1 %v2945_v41  ;;  %v1132_v41 = vld [vmem:[#allocation7 + $0xb88] sm:$0xff]  ;;  %v1183_v5 = vld [vmem:[#allocation7 + $0xd20] sm:$0xff] }
 0x485   :  { %v2969_v43 = vpack.c.bf16 %v1132_v41, %v1130_v40  ;;  %v1167_v40 = vld [vmem:[#allocation7 + $0xca0] sm:$0xff]  ;;  %v1170_v41 = vld [vmem:[#allocation7 + $0xcb8] sm:$0xff] }
 0x487   :  { %2948 = vmatpush1.bf16.msra.mxu1 %v2947_v47  ;;  %v2971_v47 = vpack.c.bf16 %v1131_v44, %v1129_v42  ;;  %2970 = vmatprep.subr.bf16.mxu0 %v2969_v43  ;;  %v1172_v42 = vld [vmem:[#allocation7 + $0xcc8] sm:$0xff] }
 0x488   :  { %2950 = vmatprep.subr.bf16.mxu1 %v2949_v49  ;;  %v1135_v49 = vld [vmem:[#allocation7 + $0xba0] sm:$0xff]  ;;  %v3009_v44 = vpack.c.bf16 %v1172_v42, %v1170_v41 }
 0x489   :  { %2972 = vmatpush1.bf16.msra.mxu0 %v2971_v47  ;;  %v2975_v52 = vpack.c.bf16 %v1135_v49, %v1133_v48  ;;  %v1174_v47 = vld [vmem:[#allocation7 + $0xcd8] sm:$0xff] }
 0x48b   :  { %2952 = vmatpush1.bf16.msra.mxu1 %v2951_v57  ;;  %v1142_v57 = vld [vmem:[#allocation7 + $0xbd8] sm:$0xff] }
 0x48c   :  { %2954 = vmatprep.subr.bf16.mxu1 %v2953_v62  ;;  %v2981_v62 = vpack.c.bf16 %v1144_v58, %v1142_v57  ;;  %v1177_v57 = vld [vmem:[#allocation7 + $0xcf0] sm:$0xff]  ;;  %v1179_v58 = vld [vmem:[#allocation7 + $0xd00] sm:$0xff] }
 0x48d   :  { %v3019_v1 = vpack.c.bf16 %v1179_v58, %v1177_v57 }
 0x48f   :  { %2956 = vmatpush1.bf16.msra.mxu1 %v2955_v10  ;;  %v1147_v10 = vld [vmem:[#allocation7 + $0xc00] sm:$0xff] }
 0x490   :  { %2958 = vmatprep.subr.bf16.mxu1 %v2957_v12  ;;  %v1152_v12 = vld [vmem:[#allocation7 + $0xc28] sm:$0xff]  ;;  %v2987_v13 = vpack.c.bf16 %v1147_v10, %v1145_v9  ;;  %v3023_v9 = vpack.c.bf16 %v1183_v5, %v1181_v4  ;;  %v1315_v5 = vld [vmem:[#allocation7 + $0xe20] sm:$0xff] }
 0x491   :  { %v2989_v14 = vpack.c.bf16 %v1152_v12, %v1150_v11  ;;  %v1185_v11 = vld [vmem:[#allocation7 + $0xd30] sm:$0xff]  ;;  %v1187_v12 = vld [vmem:[#allocation7 + $0xd40] sm:$0xff] }
 0x493   :  { %2960 = vmatpush1.bf16.msra.mxu1 %v2959_v17  ;;  %v1156_v17 = vld [vmem:[#allocation7 + $0xc48] sm:$0xff] }
 0x494   :  { %2962 = vmatprep.subr.bf16.mxu1 %v2961_v18  ;;  %v2991_v18 = vpack.c.bf16 %v1151_v16, %v1149_v15  ;;  %v2993_v19 = vpack.c.bf16 %v1156_v17, %v1154_v61  ;;  %v1034_v16 = vld [vmem:[#allocation7 + $0xb60] ss:$8 sm:$0x3] }
 0x497   :  { %2964 = vmatpush1.bf16.msra.mxu1 %v2963_v21  ;;  %v1160_v21 = vld [vmem:[#allocation7 + $0xc68] sm:$0xff] }
 0x498   :  { %2966 = vmatprep.subr.bf16.mxu1 %v2965_v22  ;;  %v2995_v22 = vpack.c.bf16 %v1155_v20, %v1153_v59  ;;  %v2997_v23 = vpack.c.bf16 %v1160_v21, %v1158_v55  ;;  %v1039_v59 = vrot.slane %v1034_v16, %v3709_v63  ;;  %v1043_v55 = vrot.slane %v1034_v16, %v3711_v2 }
 0x49b   :  { %2968 = vmatpush1.bf16.msra.mxu1 %v2967_v25  ;;  %v1159_v25 = vld [vmem:[#allocation7 + $0xc60] sm:$0xff] }
 0x49c   :  { %v2999_v27 = vpack.c.bf16 %v1159_v25, %v1157_v24 }
 0x49e   :  { %1111 = vmatmul.mubr.f32.vlgmr.msra.gmra.mrb[6].mxu1 %v967_v29  ;;  %v1161_v29 = vld [vmem:[#allocation7 + $0xc70] sm:$0xff] }
 0x49f   :  { %1389 = vmatprep.mubr.f32.mxu1 %v3635_v0 }
 0x50d   :  { %v663_v31 = vpop.xlane.xlu0 %662 }
 0x50e   :  { %3501 = vrcp.f32 %v663_v31  ;;  %v1166_v31 = vld [vmem:[#allocation7 + $0xc98] sm:$0xff] }
 0x518   :  { %v3502_v33 = vpop.eup %3501 }
 0x519   :  { %v3749_v34 = vmul.f32 %v3502_v33, %v3741_v36  ;;  %v3751_v35 = vmul.f32 0.0, %v3502_v33  ;;  %v2973_v36 = vpack.c.bf16 %v1136_v46, %v1134_v45  ;;  %v1168_v33 = vld [vmem:[#allocation7 + $0xca8] sm:$0xff]  ;;  %v1169_v45 = vld [vmem:[#allocation7 + $0xcb0] sm:$0xff]  ;;  %v1171_v46 = vld [vmem:[#allocation7 + $0xcc0] sm:$0xff] }
 0x51a   :  { %v3011_v48 = vpack.c.bf16 %v1171_v46, %v1169_v45 }
 0x51b   :  { %v667_v37 = vsel %vm645_vm7, %v3749_v34, -inf  ;;  %v668_v38 = vsel %vm645_vm7, %v3751_v35, -inf  ;;  %2974 = vmatprep.subr.bf16.mxu0 %v2973_v36  ;;  %v1176_v36 = vld [vmem:[#allocation7 + $0xce8] sm:$0xff] }
 0x51c   :  { %v669_v39 = vmax.f32 %v667_v37, %v668_v38  ;;  %2976 = vmatpush1.bf16.msra.mxu0 %v2975_v52  ;;  %v3003_v37 = vpack.c.bf16 %v1163_v30, %v1161_v29  ;;  %v3005_v38 = vpack.c.bf16 %v1168_v33, %v1166_v31  ;;  %v3013_v49 = vpack.c.bf16 %v1176_v36, %v1174_v47  ;;  %v1178_v52 = vld [vmem:[#allocation7 + $0xcf8] sm:$0xff]  ;;  %v1192_v30 = vld [vmem:[#allocation7 + $0xd68] sm:$0xff] }
 0x51d   :  { %2978 = vmatprep.subr.bf16.mxu0 %v2977_v53  ;;  %v1180_v53 = vld [vmem:[#allocation7 + $0xd08] sm:$0xff]  ;;  %v1190_v29 = vld [vmem:[#allocation7 + $0xd58] sm:$0xff] }
 0x51e   :  { %670 = vmax.xlane.f32.xlu1 %v669_v39  ;;  %v1165_v39 = vld [vmem:[#allocation7 + $0xc90] sm:$0xff]  ;;  %v3017_v56 = vpack.c.bf16 %v1180_v53, %v1178_v52  ;;  %v3029_v33 = vpack.c.bf16 %v1192_v30, %v1190_v29  ;;  %v1301_v30 = vld [vmem:[#allocation7 + $0xda0] sm:$0xff] }
 0x51f   :  { %v3007_v43 = vpack.c.bf16 %v1167_v40, %v1165_v39 }
 0x520   :  { %2980 = vmatpush1.bf16.msra.mxu0 %v2979_v60  ;;  %v1182_v60 = vld [vmem:[#allocation7 + $0xd18] sm:$0xff] }
 0x521   :  { %2982 = vmatprep.subr.bf16.mxu0 %v2981_v62  ;;  %v1184_v62 = vld [vmem:[#allocation7 + $0xd28] sm:$0xff] }
 0x522   :  { %v3021_v3 = vpack.c.bf16 %v1184_v62, %v1182_v60  ;;  %v3639_v60 = vmov 0   ;;  %v1314_v62 = vld [vmem:[#allocation7 + $0xe18] sm:$0xff] }
 0x524   :  { %2984 = vmatpush1.bf16.msra.mxu0 %v2983_v6  ;;  %v1186_v6 = vld [vmem:[#allocation7 + $0xd38] sm:$0xff] }
 0x525   :  { %2986 = vmatprep.subr.bf16.mxu0 %v2985_v8  ;;  %v1188_v8 = vld [vmem:[#allocation7 + $0xd48] sm:$0xff] }
 0x526   :  { %v3025_v10 = vpack.c.bf16 %v1188_v8, %v1186_v6  ;;  %v1320_v8 = vld [vmem:[#allocation7 + $0xe48] sm:$0xff] }
 0x528   :  { %2988 = vmatpush1.bf16.msra.mxu0 %v2987_v13  ;;  %v3027_v13 = vpack.c.bf16 %v1187_v12, %v1185_v11  ;;  %v1319_v11 = vld [vmem:[#allocation7 + $0xe40] sm:$0xff] }
 0x529   :  { %2990 = vmatprep.subr.bf16.mxu0 %v2989_v14  ;;  %v640_v14 = vadd.s32 128, %v3729_v7 }
 0x52c   :  { %2992 = vmatpush1.bf16.msra.mxu0 %v2991_v18 }
 0x52d   :  { %2994 = vmatprep.subr.bf16.mxu0 %v2993_v19 }
 0x530   :  { %2996 = vmatpush1.bf16.msra.mxu0 %v2995_v22 }
 0x531   :  { %2998 = vmatprep.subr.bf16.mxu0 %v2997_v23 }
 0x534   :  { %3000 = vmatpush1.bf16.msra.mxu0 %v2999_v27 }
 0x535   :  { %3002 = vmatprep.subr.bf16.mxu0 %v3001_v28 }
 0x538   :  { %3004 = vmatpush1.bf16.msra.mxu0 %v3003_v37  ;;  %v1189_v37 = vld [vmem:[#allocation7 + $0xd50] sm:$0xff] }
 0x539   :  { %3006 = vmatprep.subr.bf16.mxu0 %v3005_v38  ;;  %v1191_v38 = vld [vmem:[#allocation7 + $0xd60] sm:$0xff] }
 0x53a   :  { %v3031_v40 = vpack.c.bf16 %v1191_v38, %v1189_v37  ;;  %v1308_v37 = vld [vmem:[#allocation7 + $0xdd8] sm:$0xff] }
 0x53c   :  { %3008 = vmatpush1.bf16.msra.mxu0 %v3007_v43 }
 0x53d   :  { %3010 = vmatprep.subr.bf16.mxu0 %v3009_v44 }
 0x540   :  { %3012 = vmatpush1.bf16.msra.mxu0 %v3011_v48  ;;  %v3637_v48 = vmov 2  }
 0x541   :  { %3014 = vmatprep.subr.bf16.mxu0 %v3013_v49  ;;  %3477 = vset.pattern.permute.xlu0 %v3637_v48  ;;  %v3638_v49 = vmov 1   ;;  %v1497_v48 = vld [vmem:[#allocation7 + $0xe78] sm:$0xff] }
 0x542   :  { %3476 = vset.pattern.permute.xlu1 %v3638_v49 }
 0x544   :  { %3016 = vmatpush1.bf16.msra.mxu0 %v3015_v54 }
 0x545   :  { %3018 = vmatprep.subr.bf16.mxu0 %v3017_v56 }
 0x548   :  { %3020 = vmatpush1.bf16.msra.mxu0 %v3019_v1  ;;  %v1316_v1 = vld [vmem:[#allocation7 + $0xe28] sm:$0xff] }
 0x549   :  { %3022 = vmatprep.subr.bf16.mxu0 %v3021_v3  ;;  %v1313_v3 = vld [vmem:[#allocation7 + $0xe10] sm:$0xff]  ;;  %v3033_v4 = vpack.c.bf16 %v1316_v1, %v1314_v62  ;;  %v1503_v1 = vld [vmem:[#allocation7 + $0xea8] sm:$0xff] }
 0x54a   :  { %v3035_v6 = vpack.c.bf16 %v1315_v5, %v1313_v3  ;;  %v1500_v62 = vld [vmem:[#allocation7 + $0xe90] sm:$0xff]  ;;  %v1505_v3 = vld [vmem:[#allocation7 + $0xeb8] sm:$0xff] }
 0x54b   :  { %3034 = vmatprep.subr.bf16.mxu1 %v3033_v4  ;;  %v3535_v4 = vld [vmem:[#allocation2] sm:$0x3] }
 0x54c   :  { %3024 = vmatpush1.bf16.msra.mxu0 %v3023_v9  ;;  %3036 = vmatpush1.bf16.msra.mxu1 %v3035_v6  ;;  %v3065_v6 = vpack.c.bf16 %v1505_v3, %v1503_v1  ;;  %v1538_v1 = vld [vmem:[#allocation7 + $0xfc0] sm:$0xff]  ;;  %v1540_v3 = vld [vmem:[#allocation7 + $0xfd0] sm:$0xff] }
 0x54d   :  { %3026 = vmatprep.subr.bf16.mxu0 %v3025_v10  ;;  %v1317_v10 = vld [vmem:[#allocation7 + $0xe30] sm:$0xff] }
 0x54e   :  { %v3039_v12 = vpack.c.bf16 %v1319_v11, %v1317_v10  ;;  %v1509_v10 = vld [vmem:[#allocation7 + $0xed8] sm:$0xff] }
 0x550   :  { %3028 = vmatpush1.bf16.msra.mxu0 %v3027_v13  ;;  %v1194_v13 = vld [vmem:[#allocation7 + $0xd70] ss:$8 sm:$0x3] }
 0x551   :  { %3030 = vmatprep.subr.bf16.mxu0 %v3029_v33  ;;  %v1306_v33 = vld [vmem:[#allocation7 + $0xdc8] sm:$0xff] }
 0x554   :  { %3032 = vmatpush1.bf16.msra.mxu0 %v3031_v40  ;;  %v1305_v40 = vld [vmem:[#allocation7 + $0xdc0] sm:$0xff] }
 0x571   :  { %v1112_v22 = vpop.f32.mrb[6].mxu1 }
 0x572   :  { %v1113_v24 = vadd.f32 %v1112_v22, %v1039_v59  ;;  %v1114_v25 = vpop.f32.mrb[7].mxu1 }
 0x574   :  { %v1119_v26 = vmin.f32 %v1113_v24, 0.0  ;;  %vm1117_vm1 = vcmp.gt.f32.partialorder %v1113_v24, 0.0 }
 0x576   :  { %v1121_v27 = vmul.f32 1.442695, %v1119_v26 }
 0x578   :  { %3503 = vpow2.f32 %v1121_v27 }
 0x582   :  { %v3504_v31 = vpop.eup %3503 }
 0x583   :  { %v2598_v42 = vadd.f32 -1.0, %v3504_v31  ;;  %v1303_v31 = vld [vmem:[#allocation7 + $0xdb0] sm:$0xff] }
 0x584   :  { %v3047_v38 = vpack.c.bf16 %v1303_v31, %v1301_v30 }
 0x585   :  { %v1127_v44 = vsel %vm1117_vm1, %v1113_v24, %v2598_v42  ;;  %v1299_v24 = vld [vmem:[#allocation7 + $0xd90] sm:$0xff]  ;;  %v1310_v42 = vld [vmem:[#allocation7 + $0xde8] sm:$0xff] }
 0x5ab   :  { %v671_v15 = vpop.xlane.xlu1 %670 }
 0x5ac   :  { %vm672_vm13 = vcmp.ge.f32.partialorder %v3749_v34, %v671_v15  ;;  %vm673_vm14 = vcmp.ge.f32.partialorder %v3751_v35, %v671_v15  ;;  %v1115_v35 = vadd.f32 %v1114_v25, %v1043_v55  ;;  %v1300_v15 = vld [vmem:[#allocation7 + $0xd98] sm:$0xff]  ;;  %v1302_v25 = vld [vmem:[#allocation7 + $0xda8] sm:$0xff] }
 0x5ad   :  { %v674_v61 = vsel %vm672_vm13, %v3729_v7, 256  ;;  %v675_v17 = vsel %vm673_vm14, %v640_v14, 256  ;;  %v1298_v14 = vld [vmem:[#allocation7 + $0xd88] sm:$0xff] }
 0x5ae   :  { %v676_v18 = vsel %vm645_vm7, %v674_v61, 2147483647  ;;  %v677_v19 = vsel %vm645_vm7, %v675_v17, 2147483647  ;;  %v1120_v32 = vmin.f32 %v1115_v35, 0.0  ;;  %vm1118_vm2 = vcmp.gt.f32.partialorder %v1115_v35, 0.0 }
 0x5af   :  { %vm678_vm15 = vcmp.lt.s32.totalorder %v676_v18, %v677_v19  ;;  %v3041_v16 = vpack.c.bf16 %v1300_v15, %v1298_v14  ;;  %v1199_v61 = vrot.slane %v1194_v13, %v3709_v63  ;;  %v1506_v13 = vld [vmem:[#allocation7 + $0xec0] sm:$0xff]  ;;  %v1508_v14 = vld [vmem:[#allocation7 + $0xed0] sm:$0xff]  ;;  %v1511_v15 = vld [vmem:[#allocation7 + $0xee8] sm:$0xff] }
 0x5b0   :  { %v679_v20 = vsel %vm678_vm15, %v676_v18, %v677_v19  ;;  %v1123_v28 = vmul.f32 1.442695, %v1120_v32 }
 0x5b1   :  { %v681_v21 = vshra.s32 %v679_v20, 16  ;;  %v680_v45 = vand.u32 65535, %v679_v20 }
 0x5b2   :  { %3505 = vpow2.f32 %v1123_v28 }
 0x5b3   :  { %v683_v23 = vcvt.s32.f32 %v681_v21  ;;  %v682_v47 = vcvt.s32.f32 %v680_v45 }
 0x5b5   :  { %684 = vmin.xlane.f32.xlu1 %v683_v23 }
 0x5bc   :  { %v3506_v39 = vpop.eup %3505 }
 0x5bd   :  { %v2599_v41 = vadd.f32 -1.0, %v3506_v39  ;;  %v3049_v39 = vpack.c.bf16 %v1308_v37, %v1306_v33  ;;  %v1522_v33 = vld [vmem:[#allocation7 + $0xf40] sm:$0xff]  ;;  %v1524_v37 = vld [vmem:[#allocation7 + $0xf50] sm:$0xff] }
 0x5bf   :  { %v1128_v43 = vsel %vm1118_vm2, %v1115_v35, %v2599_v41  ;;  %v1304_v35 = vld [vmem:[#allocation7 + $0xdb8] sm:$0xff]  ;;  %v1307_v41 = vld [vmem:[#allocation7 + $0xdd0] sm:$0xff] }
 0x5c0   :  { %1265 = vmatprep.mubr.f32.mxu0 %v1128_v43  ;;  %v3045_v29 = vpack.c.bf16 %v1304_v35, %v1302_v25  ;;  %v1312_v43 = vld [vmem:[#allocation7 + $0xdf8] sm:$0xff] }
 0x5c1   :  { %1266 = vmatmul.mubr.f32.vlgmr.msra.gmra.mrb[6].mxu0 %v1127_v44  ;;  %v3051_v44 = vpack.c.bf16 %v1307_v41, %v1305_v40  ;;  %v3053_v45 = vpack.c.bf16 %v1312_v43, %v1310_v42  ;;  %v1521_v25 = vld [vmem:[#allocation7 + $0xf38] sm:$0xff]  ;;  %v3087_v40 = vpack.c.bf16 %v1524_v37, %v1522_v33  ;;  %v1526_v42 = vld [vmem:[#allocation7 + $0xf60] sm:$0xff]  ;;  %v1528_v43 = vld [vmem:[#allocation7 + $0xf70] sm:$0xff] }
 0x5c2   :  { %v1658_v37 = vld [vmem:[#allocation7 + $0x1090] sm:$0xff] }
 0x642   :  { %v685_v46 = vpop.xlane.xlu1 %684 }
 0x643   :  { %vm686_vm3 = vcmp.eq.f32.partialorder %v683_v23, %v685_v46  ;;  %v691_v52 = vcvt.f32.s32 %v685_v46  ;;  %v1297_v23 = vld [vmem:[#allocation7 + $0xd80] sm:$0xff] }
 0x644   :  { %v687_v36 = vsel %vm686_vm3, %v682_v47, inf  ;;  %v3043_v27 = vpack.c.bf16 %v1299_v24, %v1297_v23  ;;  %v1309_v46 = vld [vmem:[#allocation7 + $0xde0] sm:$0xff]  ;;  %v1311_v47 = vld [vmem:[#allocation7 + $0xdf0] sm:$0xff]  ;;  %v1519_v24 = vld [vmem:[#allocation7 + $0xf28] sm:$0xff]  ;;  %vm2560_vm3 = vcmask 97280  }
 0x645   :  { %688 = vmin.xlane.f32.xlu0 %v687_v36  ;;  %v692_v54 = vshll.u32 %v691_v52, 16  ;;  %v1495_v36 = vld [vmem:[#allocation7 + $0xe68] sm:$0xff]  ;;  %v3055_v49 = vpack.c.bf16 %v1311_v47, %v1309_v46  ;;  %v1496_v52 = vld [vmem:[#allocation7 + $0xe70] sm:$0xff]  ;;  %v3091_v46 = vpack.c.bf16 %v1528_v43, %v1526_v42 }
 0x646   :  { %v1516_v23 = vld [vmem:[#allocation7 + $0xf10] sm:$0xff] }
 0x647   :  { %v1662_v43 = vld [vmem:[#allocation7 + $0x10b0] sm:$0xff] }
 0x694   :  { %v1267_v50 = vpop.f32.mrb[6].mxu0 }
 0x695   :  { %v1269_v51 = vpop.f32.mrb[7].mxu0  ;;  %v1268_v17 = vadd.f32 %v1267_v50, %v1199_v61  ;;  %v3057_v50 = vpack.c.bf16 %v1497_v48, %v1495_v36  ;;  %v3071_v61 = vpack.c.bf16 %v1508_v14, %v1506_v13  ;;  %v1530_v36 = vld [vmem:[#allocation7 + $0xf80] sm:$0xff]  ;;  %v1532_v48 = vld [vmem:[#allocation7 + $0xf90] sm:$0xff] }
 0x696   :  { %v1494_v51 = vld [vmem:[#allocation7 + $0xe60] sm:$0xff] }
 0x697   :  { %v1546_v13 = vld [vmem:[#allocation7 + $0x1000] sm:$0xff] }
 0x6d2   :  { %v689_v53 = vpop.xlane.xlu0 %688 }
 0x6d3   :  { %v690_v56 = vcvt.f32.s32 %v689_v53  ;;  %v1499_v53 = vld [vmem:[#allocation7 + $0xe88] sm:$0xff] }
 0x6d5   :  { %v693_v57 = vadd.s32 %v692_v54, %v690_v56  ;;  %v1501_v54 = vld [vmem:[#allocation7 + $0xe98] sm:$0xff]  ;;  %v3059_v56 = vpack.c.bf16 %v1496_v52, %v1494_v51  ;;  %v3095_v51 = vpack.c.bf16 %v1532_v48, %v1530_v36  ;;  %v1666_v48 = vld [vmem:[#allocation7 + $0x10d0] sm:$0xff] }
 0x6d7   :  { %vm694_vm4 = vcmp.eq.s32.totalorder %v3729_v7, %v693_v57  ;;  %v1318_v7 = vld [vmem:[#allocation7 + $0xe38] sm:$0xff]  ;;  %v3061_v57 = vpack.c.bf16 %v1501_v54, %v1499_v53  ;;  %v1534_v53 = vld [vmem:[#allocation7 + $0xfa0] sm:$0xff]  ;;  %v1536_v54 = vld [vmem:[#allocation7 + $0xfb0] sm:$0xff] }
 0x6d8   :  { %v3767_v58 = vsel %vm694_vm4, 1.0, %v3635_v0  ;;  %v3037_v9 = vpack.c.bf16 %v1320_v8, %v1318_v7  ;;  %v1502_v7 = vld [vmem:[#allocation7 + $0xea0] sm:$0xff]  ;;  %v1504_v8 = vld [vmem:[#allocation7 + $0xeb0] sm:$0xff]  ;;  %vm2562_vm4 = vcmask 121856  }
 0x6d9   :  { %1288 = vperm.xlu0 %3477, %v3767_v58   ;;  %1278 = vperm.xlu1 %3476, %v3767_v58   ;;  %v3067_v11 = vpack.c.bf16 %v1504_v8, %v1502_v7  ;;  %v1542_v8 = vld [vmem:[#allocation7 + $0xfe0] sm:$0xff] }
 0x6da   :  { %3038 = vmatprep.subr.bf16.mxu1 %v3037_v9  ;;  %v1507_v9 = vld [vmem:[#allocation7 + $0xec8] sm:$0xff] }
 0x6db   :  { %3040 = vmatpush1.bf16.msra.mxu1 %v3039_v12  ;;  %v3069_v12 = vpack.c.bf16 %v1509_v10, %v1507_v9  ;;  %v1544_v9 = vld [vmem:[#allocation7 + $0xff0] sm:$0xff] }
 0x6dc   :  { %3042 = vmatprep.subr.bf16.mxu1 %v3041_v16  ;;  %v1513_v16 = vld [vmem:[#allocation7 + $0xef8] sm:$0xff]  ;;  %v3107_v10 = vpack.c.bf16 %v1544_v9, %v1542_v8  ;;  %v1678_v9 = vld [vmem:[#allocation7 + $0x1130] sm:$0xff] }
 0x6dd   :  { %3478 = vset.pattern.permute.xlu1 %v3639_v60  ;;  %v1498_v60 = vld [vmem:[#allocation7 + $0xe80] sm:$0xff] }
 0x6de   :  { %1273 = vperm.xlu1 %3478, %v3767_v58   ;;  %v3063_v5 = vpack.c.bf16 %v1500_v62, %v1498_v60  ;;  %v1541_v60 = vld [vmem:[#allocation7 + $0xfd8] sm:$0xff] }
 0x758   :  { %v1279_v18 = vpop.permute.xlu1 %1278  ;;  %v1289_v59 = vpop.permute.xlu0 %1288 }
 0x759   :  { %v1281_v19 = vmul.f32 %v1279_v18, %v1268_v17  ;;  %v1291_v20 = vmul.f32 %v1289_v59, %v1268_v17  ;;  %v1510_v18 = vld [vmem:[#allocation7 + $0xee0] sm:$0xff]  ;;  %v1515_v59 = vld [vmem:[#allocation7 + $0xf08] sm:$0xff] }
 0x75b   :  { %1283 = vrot.lane.b32.xlu1 %v1281_v19, %s3640_s2  ;;  %v1512_v19 = vld [vmem:[#allocation7 + $0xef0] sm:$0xff] }
 0x75d   :  { %v1274_v55 = vpop.permute.xlu1 %1273 }
 0x75e   :  { %v1276_v22 = vmul.f32 %v1274_v55, %v1268_v17  ;;  %v3073_v17 = vpack.c.bf16 %v1513_v16, %v1511_v15  ;;  %v3075_v55 = vpack.c.bf16 %v1512_v19, %v1510_v18  ;;  %v1548_v15 = vld [vmem:[#allocation7 + $0x1010] sm:$0xff]  ;;  %v1551_v16 = vld [vmem:[#allocation7 + $0x1028] sm:$0xff]  ;;  %v1550_v19 = vld [vmem:[#allocation7 + $0x1020] sm:$0xff] }
 0x75f   :  { %1293 = vrot.lane.b32.xlu1 %v1291_v20, %s3641_s21  ;;  %v1517_v20 = vld [vmem:[#allocation7 + $0xf18] sm:$0xff] }
 0x7cd   :  { %v1284_v21 = vpop.permute.xlu1 %1283 }
 0x7ce   :  { %v1286_v26 = vadd.f32 %v1284_v21, %v1276_v22  ;;  %v3077_v21 = vpack.c.bf16 %v1517_v20, %v1515_v59  ;;  %v1514_v22 = vld [vmem:[#allocation7 + $0xf00] sm:$0xff]  ;;  %v1552_v59 = vld [vmem:[#allocation7 + $0x1030] sm:$0xff]  ;;  %v1555_v20 = vld [vmem:[#allocation7 + $0x1048] sm:$0xff] }
 0x7cf   :  { %v3079_v35 = vpack.c.bf16 %v1516_v23, %v1514_v22  ;;  %v1554_v23 = vld [vmem:[#allocation7 + $0x1040] sm:$0xff] }
 0x7d1   :  { %v1294_v32 = vpop.permute.xlu1 %1293 }
 0x7d2   :  { %v1296_v28 = vadd.f32 %v1294_v32, %v1286_v26  ;;  %v3081_v26 = vpack.c.bf16 %v1521_v25, %v1519_v24  ;;  %v1518_v32 = vld [vmem:[#allocation7 + $0xf20] sm:$0xff]  ;;  %v1556_v24 = vld [vmem:[#allocation7 + $0x1050] sm:$0xff] }
 0x7d3   :  { %v3119_v25 = vpack.c.bf16 %v1556_v24, %v1554_v23  ;;  %v1690_v24 = vld [vmem:[#allocation7 + $0x1190] sm:$0xff] }
 0x7d4   :  { %2600 = vmatmul.mubr.msk.f32.vlgmr.msra.gmra.mrb[8].mxu1 %vm1321_vm5, %v1296_v28  ;;  %v1523_v28 = vld [vmem:[#allocation7 + $0xf48] sm:$0xff]  ;;  %vm2564_vm5 = vcmask 146432  }
 0x7d5   :  { %3044 = vmatpush1.bf16.msra.mxu1 %v3043_v27  ;;  %1460 = vmatprep.mubr.f32.mxu1 %v3635_v0  ;;  %v1520_v27 = vld [vmem:[#allocation7 + $0xf30] sm:$0xff] }
 0x7d6   :  { %3046 = vmatprep.subr.bf16.mxu1 %v3045_v29  ;;  %v1525_v29 = vld [vmem:[#allocation7 + $0xf58] sm:$0xff]  ;;  %v3083_v30 = vpack.c.bf16 %v1520_v27, %v1518_v32  ;;  %v1654_v32 = vld [vmem:[#allocation7 + $0x1070] sm:$0xff] }
 0x7d7   :  { %v3085_v31 = vpack.c.bf16 %v1525_v29, %v1523_v28  ;;  %v1656_v28 = vld [vmem:[#allocation7 + $0x1080] sm:$0xff]  ;;  %v1659_v29 = vld [vmem:[#allocation7 + $0x1098] sm:$0xff] }
 0x7d9   :  { %3048 = vmatpush1.bf16.msra.mxu1 %v3047_v38  ;;  %v1527_v38 = vld [vmem:[#allocation7 + $0xf68] sm:$0xff] }
 0x7da   :  { %3050 = vmatprep.subr.bf16.mxu1 %v3049_v39  ;;  %v1529_v39 = vld [vmem:[#allocation7 + $0xf78] sm:$0xff] }
 0x7db   :  { %v3089_v41 = vpack.c.bf16 %v1529_v39, %v1527_v38  ;;  %v1660_v38 = vld [vmem:[#allocation7 + $0x10a0] sm:$0xff]  ;;  %v1663_v39 = vld [vmem:[#allocation7 + $0x10b8] sm:$0xff] }
 0x7dd   :  { %3052 = vmatpush1.bf16.msra.mxu1 %v3051_v44  ;;  %v1531_v44 = vld [vmem:[#allocation7 + $0xf88] sm:$0xff] }
 0x7de   :  { %3054 = vmatprep.subr.bf16.mxu1 %v3053_v45  ;;  %v1533_v45 = vld [vmem:[#allocation7 + $0xf98] sm:$0xff] }
 0x7df   :  { %v3093_v47 = vpack.c.bf16 %v1533_v45, %v1531_v44  ;;  %v1664_v44 = vld [vmem:[#allocation7 + $0x10c0] sm:$0xff]  ;;  %v1667_v45 = vld [vmem:[#allocation7 + $0x10d8] sm:$0xff] }
 0x7e1   :  { %3056 = vmatpush1.bf16.msra.mxu1 %v3055_v49  ;;  %v1535_v49 = vld [vmem:[#allocation7 + $0xfa8] sm:$0xff] }
 0x7e2   :  { %3058 = vmatprep.subr.bf16.mxu1 %v3057_v50  ;;  %v1537_v50 = vld [vmem:[#allocation7 + $0xfb8] sm:$0xff] }
 0x7e3   :  { %v3097_v52 = vpack.c.bf16 %v1537_v50, %v1535_v49  ;;  %v1668_v49 = vld [vmem:[#allocation7 + $0x10e0] sm:$0xff]  ;;  %v1671_v50 = vld [vmem:[#allocation7 + $0x10f8] sm:$0xff] }
 0x7e4   :  { %2601 = vmatmul.mubr.msk.f32.vlgmr.msra.gmra.mrb[8].mxu1 %vm83_vm0, %v3535_v4  ;;  %v3103_v4 = vpack.c.bf16 %v1540_v3, %v1538_v1  ;;  %v1674_v3 = vld [vmem:[#allocation7 + $0x1110] sm:$0xff] }
 0x7e5   :  { %3060 = vmatpush1.bf16.msra.mxu1 %v3059_v56  ;;  %v3099_v56 = vpack.c.bf16 %v1536_v54, %v1534_v53  ;;  %v1670_v54 = vld [vmem:[#allocation7 + $0x10f0] sm:$0xff] }
 0x7e6   :  { %3062 = vmatprep.subr.bf16.mxu1 %v3061_v57  ;;  %v1539_v57 = vld [vmem:[#allocation7 + $0xfc8] sm:$0xff] }
 0x7e7   :  { %v3101_v62 = vpack.c.bf16 %v1541_v60, %v1539_v57  ;;  %v1675_v57 = vld [vmem:[#allocation7 + $0x1118] sm:$0xff]  ;;  %v1677_v60 = vld [vmem:[#allocation7 + $0x1128] sm:$0xff] }
 0x7e8   :  { %v3141_v1 = vpack.c.bf16 %v1677_v60, %v1675_v57  ;;  %v1703_v60 = vld [vmem:[#allocation7 + $0x11f8] sm:$0xff] }
 0x7e9   :  { %3064 = vmatpush1.bf16.msra.mxu1 %v3063_v5  ;;  %v1543_v5 = vld [vmem:[#allocation7 + $0xfe8] sm:$0xff] }
 0x7ea   :  { %3066 = vmatprep.subr.bf16.mxu1 %v3065_v6  ;;  %v1545_v6 = vld [vmem:[#allocation7 + $0xff8] sm:$0xff] }
 0x7eb   :  { %v3105_v7 = vpack.c.bf16 %v1545_v6, %v1543_v5  ;;  %v1679_v5 = vld [vmem:[#allocation7 + $0x1138] sm:$0xff]  ;;  %v1681_v6 = vld [vmem:[#allocation7 + $0x1148] sm:$0xff] }
 0x7ec   :  { %v3145_v8 = vpack.c.bf16 %v1681_v6, %v1679_v5  ;;  %v1707_v6 = vld [vmem:[#allocation7 + $0x1218] sm:$0xff] }
 0x7ed   :  { %3068 = vmatpush1.bf16.msra.mxu1 %v3067_v11  ;;  %v1547_v11 = vld [vmem:[#allocation7 + $0x1008] sm:$0xff] }
 0x7ee   :  { %3070 = vmatprep.subr.bf16.mxu1 %v3069_v12  ;;  %v1549_v12 = vld [vmem:[#allocation7 + $0x1018] sm:$0xff] }
 0x7ef   :  { %v3109_v14 = vpack.c.bf16 %v1549_v12, %v1547_v11  ;;  %v1683_v11 = vld [vmem:[#allocation7 + $0x1158] sm:$0xff]  ;;  %v1685_v12 = vld [vmem:[#allocation7 + $0x1168] sm:$0xff] }
 0x7f1   :  { %3072 = vmatpush1.bf16.msra.mxu1 %v3071_v61  ;;  %v1553_v61 = vld [vmem:[#allocation7 + $0x1038] sm:$0xff] }
 0x7f2   :  { %3074 = vmatprep.subr.bf16.mxu1 %v3073_v17  ;;  %v3111_v17 = vpack.c.bf16 %v1548_v15, %v1546_v13  ;;  %v3113_v18 = vpack.c.bf16 %v1553_v61, %v1551_v16  ;;  %v1682_v15 = vld [vmem:[#allocation7 + $0x1150] sm:$0xff]  ;;  %v1684_v16 = vld [vmem:[#allocation7 + $0x1160] sm:$0xff]  ;;  %v1687_v61 = vld [vmem:[#allocation7 + $0x1178] sm:$0xff] }
 0x7f5   :  { %3076 = vmatpush1.bf16.msra.mxu1 %v3075_v55  ;;  %v1557_v55 = vld [vmem:[#allocation7 + $0x1058] sm:$0xff] }
 0x7f6   :  { %3078 = vmatprep.subr.bf16.mxu1 %v3077_v21  ;;  %v3115_v21 = vpack.c.bf16 %v1552_v59, %v1550_v19  ;;  %v3117_v22 = vpack.c.bf16 %v1557_v55, %v1555_v20  ;;  %v1686_v59 = vld [vmem:[#allocation7 + $0x1170] sm:$0xff]  ;;  %v1688_v20 = vld [vmem:[#allocation7 + $0x1180] sm:$0xff]  ;;  %v1691_v55 = vld [vmem:[#allocation7 + $0x1198] sm:$0xff] }
 0x7f9   :  { %3080 = vmatpush1.bf16.msra.mxu1 %v3079_v35  ;;  %v1655_v35 = vld [vmem:[#allocation7 + $0x1078] sm:$0xff] }
 0x7fa   :  { %3082 = vmatprep.subr.bf16.mxu1 %v3081_v26  ;;  %v1657_v26 = vld [vmem:[#allocation7 + $0x1088] sm:$0xff] }
 0x7fb   :  { %v3121_v27 = vpack.c.bf16 %v1657_v26, %v1655_v35  ;;  %v1695_v35 = vld [vmem:[#allocation7 + $0x11b8] sm:$0xff]  ;;  %v1697_v26 = vld [vmem:[#allocation7 + $0x11c8] sm:$0xff] }
 0x7fd   :  { %3084 = vmatpush1.bf16.msra.mxu1 %v3083_v30  ;;  %v1661_v30 = vld [vmem:[#allocation7 + $0x10a8] sm:$0xff]  ;;  %3122 = vmatprep.subr.bf16.mxu0 %v3121_v27  ;;  %v3161_v27 = vpack.c.bf16 %v1697_v26, %v1695_v35  ;;  %v1814_v35 = vld [vmem:[#allocation7 + $0x1280] sm:$0xff] }
 0x7fe   :  { %3086 = vmatprep.subr.bf16.mxu1 %v3085_v31  ;;  %v3123_v31 = vpack.c.bf16 %v1656_v28, %v1654_v32  ;;  %v3125_v33 = vpack.c.bf16 %v1661_v30, %v1659_v29  ;;  %v1694_v28 = vld [vmem:[#allocation7 + $0x11b0] sm:$0xff]  ;;  %v1696_v29 = vld [vmem:[#allocation7 + $0x11c0] sm:$0xff] }
 0x7ff   :  { %v3163_v30 = vpack.c.bf16 %v1696_v29, %v1694_v28  ;;  %v1821_v28 = vld [vmem:[#allocation7 + $0x12b8] sm:$0xff] }
 0x800   :  { %3124 = vmatpush1.bf16.msra.mxu0 %v3123_v31  ;;  %v1468_v31 = vld [vmem:[#allocation7 + $0xe00] ss:$8 sm:$0x3] }
 0x801   :  { %3088 = vmatpush1.bf16.msra.mxu1 %v3087_v40  ;;  %v1665_v40 = vld [vmem:[#allocation7 + $0x10c8] sm:$0xff]  ;;  %3126 = vmatprep.subr.bf16.mxu0 %v3125_v33  ;;  %v1473_v33 = vrot.slane %v1468_v31, %v3709_v63 }
 0x802   :  { %3090 = vmatprep.subr.bf16.mxu1 %v3089_v41  ;;  %v3127_v41 = vpack.c.bf16 %v1660_v38, %v1658_v37  ;;  %v3129_v42 = vpack.c.bf16 %v1665_v40, %v1663_v39  ;;  %v1477_v37 = vrot.slane %v1468_v31, %v3711_v2  ;;  %v1818_v31 = vld [vmem:[#allocation7 + $0x12a0] sm:$0xff] }
 0x804   :  { %3128 = vmatpush1.bf16.msra.mxu0 %v3127_v41 }
 0x805   :  { %3092 = vmatpush1.bf16.msra.mxu1 %v3091_v46  ;;  %v1669_v46 = vld [vmem:[#allocation7 + $0x10e8] sm:$0xff]  ;;  %3130 = vmatprep.subr.bf16.mxu0 %v3129_v42 }
 0x806   :  { %3094 = vmatprep.subr.bf16.mxu1 %v3093_v47  ;;  %v3131_v47 = vpack.c.bf16 %v1664_v44, %v1662_v43  ;;  %v3133_v36 = vpack.c.bf16 %v1669_v46, %v1667_v45 }
 0x808   :  { %3132 = vmatpush1.bf16.msra.mxu0 %v3131_v47 }
 0x809   :  { %3096 = vmatpush1.bf16.msra.mxu1 %v3095_v51  ;;  %v1673_v51 = vld [vmem:[#allocation7 + $0x1108] sm:$0xff]  ;;  %3134 = vmatprep.subr.bf16.mxu0 %v3133_v36 }
 0x80a   :  { %3098 = vmatprep.subr.bf16.mxu1 %v3097_v52  ;;  %v3135_v52 = vpack.c.bf16 %v1668_v49, %v1666_v48  ;;  %v3137_v53 = vpack.c.bf16 %v1673_v51, %v1671_v50  ;;  %v1699_v51 = vld [vmem:[#allocation7 + $0x11d8] sm:$0xff] }
 0x80c   :  { %3136 = vmatpush1.bf16.msra.mxu0 %v3135_v52  ;;  %v1701_v52 = vld [vmem:[#allocation7 + $0x11e8] sm:$0xff] }
 0x80d   :  { %3100 = vmatpush1.bf16.msra.mxu1 %v3099_v56  ;;  %v1672_v56 = vld [vmem:[#allocation7 + $0x1100] sm:$0xff]  ;;  %3138 = vmatprep.subr.bf16.mxu0 %v3137_v53  ;;  %v3165_v53 = vpack.c.bf16 %v1701_v52, %v1699_v51 }
 0x80e   :  { %3102 = vmatprep.subr.bf16.mxu1 %v3101_v62  ;;  %v3139_v62 = vpack.c.bf16 %v1672_v56, %v1670_v54  ;;  %v1698_v54 = vld [vmem:[#allocation7 + $0x11d0] sm:$0xff]  ;;  %v1700_v56 = vld [vmem:[#allocation7 + $0x11e0] sm:$0xff] }
 0x80f   :  { %v3167_v57 = vpack.c.bf16 %v1700_v56, %v1698_v54  ;;  %v1830_v52 = vld [vmem:[#allocation7 + $0x1300] sm:$0xff]  ;;  %v1835_v54 = vld [vmem:[#allocation7 + $0x1328] sm:$0xff]  ;;  %v1837_v56 = vld [vmem:[#allocation7 + $0x1338] sm:$0xff] }
 0x810   :  { %3140 = vmatpush1.bf16.msra.mxu0 %v3139_v62  ;;  %v1705_v62 = vld [vmem:[#allocation7 + $0x1208] sm:$0xff] }
 0x811   :  { %3104 = vmatpush1.bf16.msra.mxu1 %v3103_v4  ;;  %v1676_v4 = vld [vmem:[#allocation7 + $0x1120] sm:$0xff]  ;;  %3142 = vmatprep.subr.bf16.mxu0 %v3141_v1  ;;  %v3169_v1 = vpack.c.bf16 %v1705_v62, %v1703_v60  ;;  %v3205_v60 = vpack.c.bf16 %v1837_v56, %v1835_v54  ;;  %v1981_v54 = vld [vmem:[#allocation7 + $0x14d8] sm:$0xff]  ;;  %v1983_v56 = vld [vmem:[#allocation7 + $0x14e8] sm:$0xff] }
 0x812   :  { %3106 = vmatprep.subr.bf16.mxu1 %v3105_v7  ;;  %v3143_v7 = vpack.c.bf16 %v1676_v4, %v1674_v3  ;;  %v1702_v3 = vld [vmem:[#allocation7 + $0x11f0] sm:$0xff]  ;;  %v1704_v4 = vld [vmem:[#allocation7 + $0x1200] sm:$0xff] }
 0x813   :  { %v3171_v5 = vpack.c.bf16 %v1704_v4, %v1702_v3  ;;  %v1834_v62 = vld [vmem:[#allocation7 + $0x1320] sm:$0xff]  ;;  %v1839_v3 = vld [vmem:[#allocation7 + $0x1348] sm:$0xff]  ;;  %v1841_v4 = vld [vmem:[#allocation7 + $0x1358] sm:$0xff] }
 0x814   :  { %3144 = vmatpush1.bf16.msra.mxu0 %v3143_v7  ;;  %v1709_v7 = vld [vmem:[#allocation7 + $0x1228] sm:$0xff] }
 0x815   :  { %3108 = vmatpush1.bf16.msra.mxu1 %v3107_v10  ;;  %v1680_v10 = vld [vmem:[#allocation7 + $0x1140] sm:$0xff]  ;;  %3146 = vmatprep.subr.bf16.mxu0 %v3145_v8  ;;  %v3173_v8 = vpack.c.bf16 %v1709_v7, %v1707_v6  ;;  %v3209_v6 = vpack.c.bf16 %v1841_v4, %v1839_v3  ;;  %v1985_v3 = vld [vmem:[#allocation7 + $0x14f8] sm:$0xff]  ;;  %v1987_v4 = vld [vmem:[#allocation7 + $0x1508] sm:$0xff] }
 0x816   :  { %3110 = vmatprep.subr.bf16.mxu1 %v3109_v14  ;;  %v3147_v13 = vpack.c.bf16 %v1680_v10, %v1678_v9  ;;  %v3149_v14 = vpack.c.bf16 %v1685_v12, %v1683_v11  ;;  %v1706_v9 = vld [vmem:[#allocation7 + $0x1210] sm:$0xff]  ;;  %v1708_v10 = vld [vmem:[#allocation7 + $0x1220] sm:$0xff]  ;;  %v1711_v11 = vld [vmem:[#allocation7 + $0x1238] sm:$0xff] }
 0x817   :  { %v3175_v12 = vpack.c.bf16 %v1708_v10, %v1706_v9  ;;  %v1838_v7 = vld [vmem:[#allocation7 + $0x1340] sm:$0xff]  ;;  %v1843_v9 = vld [vmem:[#allocation7 + $0x1368] sm:$0xff]  ;;  %v1845_v10 = vld [vmem:[#allocation7 + $0x1378] sm:$0xff] }
 0x818   :  { %3148 = vmatpush1.bf16.msra.mxu0 %v3147_v13  ;;  %v1713_v13 = vld [vmem:[#allocation7 + $0x1248] sm:$0xff] }
 0x819   :  { %3112 = vmatpush1.bf16.msra.mxu1 %v3111_v17  ;;  %v1689_v17 = vld [vmem:[#allocation7 + $0x1188] sm:$0xff]  ;;  %3150 = vmatprep.subr.bf16.mxu0 %v3149_v14  ;;  %v1710_v14 = vld [vmem:[#allocation7 + $0x1230] sm:$0xff] }
 0x81a   :  { %3114 = vmatprep.subr.bf16.mxu1 %v3113_v18  ;;  %v3151_v18 = vpack.c.bf16 %v1684_v16, %v1682_v15  ;;  %v3153_v19 = vpack.c.bf16 %v1689_v17, %v1687_v61  ;;  %v1712_v15 = vld [vmem:[#allocation7 + $0x1240] sm:$0xff]  ;;  %v3177_v16 = vpack.c.bf16 %v1713_v13, %v1711_v11  ;;  %v1715_v61 = vld [vmem:[#allocation7 + $0x1258] sm:$0xff]  ;;  %v1717_v17 = vld [vmem:[#allocation7 + $0x1268] sm:$0xff] }
 0x81b   :  { %v1842_v13 = vld [vmem:[#allocation7 + $0x1360] sm:$0xff] }
 0x81c   :  { %3152 = vmatpush1.bf16.msra.mxu0 %v3151_v18  ;;  %v3179_v18 = vpack.c.bf16 %v1712_v15, %v1710_v14  ;;  %v1844_v14 = vld [vmem:[#allocation7 + $0x1370] sm:$0xff]  ;;  %v1847_v15 = vld [vmem:[#allocation7 + $0x1388] sm:$0xff] }
 0x81d   :  { %3116 = vmatpush1.bf16.msra.mxu1 %v3115_v21  ;;  %v1693_v21 = vld [vmem:[#allocation7 + $0x11a8] sm:$0xff]  ;;  %3154 = vmatprep.subr.bf16.mxu0 %v3153_v19  ;;  %v3181_v19 = vpack.c.bf16 %v1717_v17, %v1715_v61  ;;  %v3215_v61 = vpack.c.bf16 %v1844_v14, %v1842_v13  ;;  %v2087_v13 = vld [vmem:[#allocation7 + $0x1520] sm:$0xff] }
 0x81e   :  { %3118 = vmatprep.subr.bf16.mxu1 %v3117_v22  ;;  %v3155_v22 = vpack.c.bf16 %v1688_v20, %v1686_v59  ;;  %v3157_v23 = vpack.c.bf16 %v1693_v21, %v1691_v55  ;;  %v1714_v59 = vld [vmem:[#allocation7 + $0x1250] sm:$0xff]  ;;  %v1716_v20 = vld [vmem:[#allocation7 + $0x1260] sm:$0xff]  ;;  %v1973_v21 = vld [vmem:[#allocation7 + $0x1498] sm:$0xff] }
 0x81f   :  { %v3183_v55 = vpack.c.bf16 %v1716_v20, %v1714_v59  ;;  %v1851_v59 = vld [vmem:[#allocation7 + $0x13a8] sm:$0xff]  ;;  %v1853_v20 = vld [vmem:[#allocation7 + $0x13b8] sm:$0xff] }
 0x820   :  { %3156 = vmatpush1.bf16.msra.mxu0 %v3155_v22  ;;  %v1975_v22 = vld [vmem:[#allocation7 + $0x14a8] sm:$0xff] }
 0x821   :  { %3120 = vmatpush1.bf16.msra.mxu1 %v3119_v25  ;;  %v1692_v25 = vld [vmem:[#allocation7 + $0x11a0] sm:$0xff]  ;;  %3158 = vmatprep.subr.bf16.mxu0 %v3157_v23  ;;  %v3249_v23 = vpack.c.bf16 %v1975_v22, %v1973_v21  ;;  %v3221_v21 = vpack.c.bf16 %v1853_v20, %v1851_v59  ;;  %v2092_v14 = vld [vmem:[#allocation7 + $0x1548] sm:$0xff]  ;;  %v2098_v20 = vld [vmem:[#allocation7 + $0x1578] sm:$0xff] }
 0x822   :  { %v3159_v32 = vpack.c.bf16 %v1692_v25, %v1690_v24  ;;  %v1815_v24 = vld [vmem:[#allocation7 + $0x1288] sm:$0xff]  ;;  %v1817_v25 = vld [vmem:[#allocation7 + $0x1298] sm:$0xff]  ;;  %v1850_v22 = vld [vmem:[#allocation7 + $0x13a0] sm:$0xff] }
 0x823   :  { %v3185_v26 = vpack.c.bf16 %v1817_v25, %v1815_v24  ;;  %v1855_v24 = vld [vmem:[#allocation7 + $0x13c8] sm:$0xff]  ;;  %v1857_v25 = vld [vmem:[#allocation7 + $0x13d8] sm:$0xff] }
 0x824   :  { %3160 = vmatpush1.bf16.msra.mxu0 %v3159_v32  ;;  %v1816_v32 = vld [vmem:[#allocation7 + $0x1290] sm:$0xff]  ;;  %v2096_v59 = vld [vmem:[#allocation7 + $0x1568] sm:$0xff] }
 0x825   :  { %3162 = vmatprep.subr.bf16.mxu0 %v3161_v27  ;;  %v1819_v27 = vld [vmem:[#allocation7 + $0x12a8] sm:$0xff]  ;;  %v3187_v29 = vpack.c.bf16 %v1816_v32, %v1814_v35  ;;  %3186 = vmatprep.subr.bf16.mxu1 %v3185_v26  ;;  %v3225_v26 = vpack.c.bf16 %v1857_v25, %v1855_v24  ;;  %v2102_v25 = vld [vmem:[#allocation7 + $0x1598] sm:$0xff] }
 0x826   :  { %v1559_v32 = vld [vmem:[#allocation7 + $0x1060] ss:$8 sm:$0x3] }
 0x827   :  { %v2100_v24 = vld [vmem:[#allocation7 + $0x1588] sm:$0xff] }
 0x828   :  { %3164 = vmatpush1.bf16.msra.mxu0 %v3163_v30  ;;  %v3189_v30 = vpack.c.bf16 %v1821_v28, %v1819_v27  ;;  %v1564_v27 = vrot.slane %v1559_v32, %v3709_v63  ;;  %v1568_v28 = vrot.slane %v1559_v32, %v3711_v2  ;;  %v2099_v32 = vld [vmem:[#allocation7 + $0x1580] sm:$0xff] }
 0x829   :  { %3166 = vmatprep.subr.bf16.mxu0 %v3165_v53  ;;  %v1832_v53 = vld [vmem:[#allocation7 + $0x1310] sm:$0xff] }
 0x82c   :  { %3168 = vmatpush1.bf16.msra.mxu0 %v3167_v57  ;;  %v3203_v57 = vpack.c.bf16 %v1832_v53, %v1830_v52  ;;  %v1978_v52 = vld [vmem:[#allocation7 + $0x14c0] sm:$0xff] }
 0x82d   :  { %3170 = vmatprep.subr.bf16.mxu0 %v3169_v1  ;;  %v1836_v1 = vld [vmem:[#allocation7 + $0x1330] sm:$0xff] }
 0x830   :  { %3172 = vmatpush1.bf16.msra.mxu0 %v3171_v5  ;;  %v3207_v5 = vpack.c.bf16 %v1836_v1, %v1834_v62  ;;  %v1980_v62 = vld [vmem:[#allocation7 + $0x14d0] sm:$0xff]  ;;  %v1982_v1 = vld [vmem:[#allocation7 + $0x14e0] sm:$0xff] }
 0x831   :  { %3174 = vmatprep.subr.bf16.mxu0 %v3173_v8  ;;  %v1840_v8 = vld [vmem:[#allocation7 + $0x1350] sm:$0xff] }
 0x832   :  { %v3211_v11 = vpack.c.bf16 %v1840_v8, %v1838_v7  ;;  %v1984_v7 = vld [vmem:[#allocation7 + $0x14f0] sm:$0xff]  ;;  %v1986_v8 = vld [vmem:[#allocation7 + $0x1500] sm:$0xff] }
 0x834   :  { %3176 = vmatpush1.bf16.msra.mxu0 %v3175_v12  ;;  %v3213_v12 = vpack.c.bf16 %v1845_v10, %v1843_v9  ;;  %v2088_v9 = vld [vmem:[#allocation7 + $0x1528] sm:$0xff]  ;;  %v2090_v10 = vld [vmem:[#allocation7 + $0x1538] sm:$0xff] }
 0x835   :  { %3178 = vmatprep.subr.bf16.mxu0 %v3177_v16  ;;  %v1849_v16 = vld [vmem:[#allocation7 + $0x1398] sm:$0xff] }
 0x836   :  { %v3217_v17 = vpack.c.bf16 %v1849_v16, %v1847_v15  ;;  %v2094_v15 = vld [vmem:[#allocation7 + $0x1558] sm:$0xff] }
 0x837   :  { %v53_v16 = vld [vmem:[#allocation5] sm:$0x3] }
 0x838   :  { %3180 = vmatpush1.bf16.msra.mxu0 %v3179_v18  ;;  %v1846_v18 = vld [vmem:[#allocation7 + $0x1380] sm:$0xff] }
 0x839   :  { %3182 = vmatprep.subr.bf16.mxu0 %v3181_v19  ;;  %v1848_v19 = vld [vmem:[#allocation7 + $0x1390] sm:$0xff] }
 0x83c   :  { %3184 = vmatpush1.bf16.msra.mxu0 %v3183_v55  ;;  %v3219_v55 = vpack.c.bf16 %v1848_v19, %v1846_v18  ;;  %v2091_v18 = vld [vmem:[#allocation7 + $0x1540] sm:$0xff]  ;;  %v2093_v19 = vld [vmem:[#allocation7 + $0x1550] sm:$0xff] }
 0x83d   :  { %3250 = vmatprep.subr.bf16.mxu0 %v3249_v23  ;;  %v1852_v23 = vld [vmem:[#allocation7 + $0x13b0] sm:$0xff] }
 0x83e   :  { %v3223_v35 = vpack.c.bf16 %v1852_v23, %v1850_v22  ;;  %v2095_v22 = vld [vmem:[#allocation7 + $0x1560] sm:$0xff]  ;;  %v2097_v23 = vld [vmem:[#allocation7 + $0x1570] sm:$0xff] }
 0x8b7   :  { %v1462_v38 = vpop.f32.mrb[8].mxu1 }
 0x8b8   :  { %v1480_v39 = vadd.f32 %v1473_v33, %v1462_v38  ;;  %v1464_v40 = vpop.f32.mrb[9].mxu1  ;;  %v1820_v33 = vld [vmem:[#allocation7 + $0x12b0] sm:$0xff]  ;;  %v1825_v38 = vld [vmem:[#allocation7 + $0x12d8] sm:$0xff] }
 0x8b9   :  { %v1481_v41 = vadd.f32 %v1477_v37, %v1464_v40  ;;  %v1823_v37 = vld [vmem:[#allocation7 + $0x12c8] sm:$0xff] }
 0x8ba   :  { %v1484_v42 = vmin.f32 %v1480_v39, 0.0  ;;  %vm1482_vm7 = vcmp.gt.f32.partialorder %v1480_v39, 0.0  ;;  %v3193_v40 = vpack.c.bf16 %v1825_v38, %v1823_v37 }
 0x8bb   :  { %v1485_v43 = vmin.f32 %v1481_v41, 0.0  ;;  %vm1483_vm6 = vcmp.gt.f32.partialorder %v1481_v41, 0.0 }
 0x8bc   :  { %v1486_v44 = vmul.f32 1.442695, %v1484_v42  ;;  %v1824_v42 = vld [vmem:[#allocation7 + $0x12d0] sm:$0xff] }
 0x8bd   :  { %v1488_v45 = vmul.f32 1.442695, %v1485_v43  ;;  %v1827_v43 = vld [vmem:[#allocation7 + $0x12e8] sm:$0xff] }
 0x8be   :  { %3507 = vpow2.f32 %v1486_v44  ;;  %v1829_v44 = vld [vmem:[#allocation7 + $0x12f8] sm:$0xff] }
 0x8bf   :  { %3509 = vpow2.f32 %v1488_v45 }
 0x8c8   :  { %v3508_v46 = vpop.eup %3507 }
 0x8c9   :  { %v3510_v47 = vpop.eup %3509  ;;  %v2602_v36 = vadd.f32 -1.0, %v3508_v46  ;;  %v3197_v46 = vpack.c.bf16 %v1829_v44, %v1827_v43  ;;  %v1974_v43 = vld [vmem:[#allocation7 + $0x14a0] sm:$0xff] }
 0x8ca   :  { %v2603_v48 = vadd.f32 -1.0, %v3510_v47  ;;  %v1826_v47 = vld [vmem:[#allocation7 + $0x12e0] sm:$0xff] }
 0x8cb   :  { %v1492_v50 = vsel %vm1482_vm7, %v1480_v39, %v2602_v36  ;;  %v3191_v39 = vpack.c.bf16 %v1820_v33, %v1818_v31  ;;  %v1828_v36 = vld [vmem:[#allocation7 + $0x12f0] sm:$0xff] }
 0x8cc   :  { %v1493_v49 = vsel %vm1483_vm6, %v1481_v41, %v2603_v48  ;;  %v1822_v41 = vld [vmem:[#allocation7 + $0x12c0] sm:$0xff]  ;;  %v1831_v48 = vld [vmem:[#allocation7 + $0x1308] sm:$0xff]  ;;  %vm2566_vm6 = vcmask 179200  }
 0x8cd   :  { %1635 = vmatprep.mubr.f32.mxu1 %v1493_v49  ;;  %v3195_v45 = vpack.c.bf16 %v1824_v42, %v1822_v41  ;;  %v1833_v49 = vld [vmem:[#allocation7 + $0x1318] sm:$0xff]  ;;  %v1972_v42 = vld [vmem:[#allocation7 + $0x1490] sm:$0xff] }
 0x8ce   :  { %1636 = vmatmul.mubr.f32.vlgmr.msra.gmra.mrb[10].mxu1 %v1492_v50  ;;  %v3199_v50 = vpack.c.bf16 %v1828_v36, %v1826_v47  ;;  %v3201_v51 = vpack.c.bf16 %v1833_v49, %v1831_v48  ;;  %v1979_v47 = vld [vmem:[#allocation7 + $0x14c8] sm:$0xff]  ;;  %v3251_v48 = vpack.c.bf16 %v1974_v43, %v1972_v42  ;;  %v2107_v42 = vld [vmem:[#allocation7 + $0x15c0] sm:$0xff]  ;;  %v2109_v43 = vld [vmem:[#allocation7 + $0x15d0] sm:$0xff] }
 0x8cf   :  { %3188 = vmatpush1.bf16.msra.mxu1 %v3187_v29 }
 0x8d0   :  { %3190 = vmatprep.subr.bf16.mxu1 %v3189_v30 }
 0x8d3   :  { %3192 = vmatpush1.bf16.msra.mxu1 %v3191_v39 }
 0x8d4   :  { %3194 = vmatprep.subr.bf16.mxu1 %v3193_v40 }
 0x8d7   :  { %3196 = vmatpush1.bf16.msra.mxu1 %v3195_v45 }
 0x8d8   :  { %3198 = vmatprep.subr.bf16.mxu1 %v3197_v46  ;;  %v1977_v46 = vld [vmem:[#allocation7 + $0x14b8] sm:$0xff] }
 0x8db   :  { %3200 = vmatpush1.bf16.msra.mxu1 %v3199_v50  ;;  %v3253_v50 = vpack.c.bf16 %v1979_v47, %v1977_v46  ;;  %v3287_v46 = vpack.c.bf16 %v2109_v43, %v2107_v42  ;;  %v2132_v42 = vld [vmem:[#allocation7 + $0x1688] sm:$0xff]  ;;  %v2134_v43 = vld [vmem:[#allocation7 + $0x1698] sm:$0xff] }
 0x8dc   :  { %3202 = vmatprep.subr.bf16.mxu1 %v3201_v51  ;;  %v1976_v51 = vld [vmem:[#allocation7 + $0x14b0] sm:$0xff] }
 0x8df   :  { %3204 = vmatpush1.bf16.msra.mxu1 %v3203_v57  ;;  %v3255_v57 = vpack.c.bf16 %v1978_v52, %v1976_v51  ;;  %v1856_v51 = vld [vmem:[#allocation7 + $0x13d0] sm:$0xff] }
 0x8e0   :  { %3206 = vmatprep.subr.bf16.mxu1 %v3205_v60  ;;  %v3257_v60 = vpack.c.bf16 %v1983_v56, %v1981_v54  ;;  %v2118_v54 = vld [vmem:[#allocation7 + $0x1618] sm:$0xff] }
 0x8e3   :  { %3208 = vmatpush1.bf16.msra.mxu1 %v3207_v5  ;;  %v3259_v5 = vpack.c.bf16 %v1982_v1, %v1980_v62  ;;  %v2115_v62 = vld [vmem:[#allocation7 + $0x1600] sm:$0xff] }
 0x8e4   :  { %3210 = vmatprep.subr.bf16.mxu1 %v3209_v6  ;;  %v3261_v6 = vpack.c.bf16 %v1987_v4, %v1985_v3  ;;  %v2117_v3 = vld [vmem:[#allocation7 + $0x1610] sm:$0xff]  ;;  %v1858_v4 = vld [vmem:[#allocation7 + $0x13e0] sm:$0xff] }
 0x8e7   :  { %3212 = vmatpush1.bf16.msra.mxu1 %v3211_v11  ;;  %v3263_v11 = vpack.c.bf16 %v1986_v8, %v1984_v7  ;;  %v2120_v8 = vld [vmem:[#allocation7 + $0x1628] sm:$0xff] }
 0x8e8   :  { %3214 = vmatprep.subr.bf16.mxu1 %v3213_v12  ;;  %v3265_v12 = vpack.c.bf16 %v2090_v10, %v2088_v9  ;;  %v2122_v9 = vld [vmem:[#allocation7 + $0x1638] sm:$0xff] }
 0x8e9   :  { %v3297_v10 = vpack.c.bf16 %v2122_v9, %v2120_v8  ;;  %v2146_v8 = vld [vmem:[#allocation7 + $0x16f8] sm:$0xff] }
 0x8eb   :  { %3216 = vmatpush1.bf16.msra.mxu1 %v3215_v61 }
 0x8ec   :  { %3218 = vmatprep.subr.bf16.mxu1 %v3217_v17  ;;  %v3269_v17 = vpack.c.bf16 %v2094_v15, %v2092_v14  ;;  %v2121_v14 = vld [vmem:[#allocation7 + $0x1630] sm:$0xff]  ;;  %v1862_v15 = vld [vmem:[#allocation7 + $0x1400] sm:$0xff] }
 0x8ef   :  { %3220 = vmatpush1.bf16.msra.mxu1 %v3219_v55  ;;  %v3271_v55 = vpack.c.bf16 %v2093_v19, %v2091_v18  ;;  %v2124_v18 = vld [vmem:[#allocation7 + $0x1648] sm:$0xff]  ;;  %v2126_v19 = vld [vmem:[#allocation7 + $0x1658] sm:$0xff] }
 0x8f0   :  { %3222 = vmatprep.subr.bf16.mxu1 %v3221_v21  ;;  %v3273_v21 = vpack.c.bf16 %v2098_v20, %v2096_v59  ;;  %v1867_v59 = vld [vmem:[#allocation7 + $0x1428] sm:$0xff]  ;;  %v3301_v20 = vpack.c.bf16 %v2126_v19, %v2124_v18  ;;  %v2248_v18 = vld [vmem:[#allocation7 + $0x1738] sm:$0xff] }
 0x8f1   :  { %v2250_v19 = vld [vmem:[#allocation7 + $0x1748] sm:$0xff] }
 0x8f3   :  { %3224 = vmatpush1.bf16.msra.mxu1 %v3223_v35  ;;  %v3275_v35 = vpack.c.bf16 %v2097_v23, %v2095_v22  ;;  %v2125_v22 = vld [vmem:[#allocation7 + $0x1650] sm:$0xff] }
 0x8f4   :  { %3226 = vmatprep.subr.bf16.mxu1 %v3225_v26  ;;  %v3277_v26 = vpack.c.bf16 %v2102_v25, %v2100_v24  ;;  %v1866_v25 = vld [vmem:[#allocation7 + $0x1420] sm:$0xff] }
 0x9a1   :  { %v1637_v29 = vpop.f32.mrb[10].mxu1 }
 0x9a2   :  { %v1638_v30 = vadd.f32 %v1637_v29, %v1564_v27  ;;  %v1639_v31 = vpop.f32.mrb[11].mxu1  ;;  %v2101_v27 = vld [vmem:[#allocation7 + $0x1590] sm:$0xff]  ;;  %v2106_v29 = vld [vmem:[#allocation7 + $0x15b8] sm:$0xff] }
 0x9a3   :  { %v1640_v33 = vadd.f32 %v1639_v31, %v1568_v28  ;;  %v2104_v28 = vld [vmem:[#allocation7 + $0x15a8] sm:$0xff] }
 0x9a4   :  { %v1644_v37 = vmin.f32 %v1638_v30, 0.0  ;;  %vm1642_vm9 = vcmp.gt.f32.partialorder %v1638_v30, 0.0  ;;  %v3281_v31 = vpack.c.bf16 %v2106_v29, %v2104_v28  ;;  %v1871_v28 = vld [vmem:[#allocation7 + $0x1448] sm:$0xff]  ;;  %v1873_v29 = vld [vmem:[#allocation7 + $0x1458] sm:$0xff] }
 0x9a5   :  { %v1645_v38 = vmin.f32 %v1640_v33, 0.0  ;;  %vm1643_vm8 = vcmp.gt.f32.partialorder %v1640_v33, 0.0 }
 0x9a6   :  { %v1646_v39 = vmul.f32 1.442695, %v1644_v37  ;;  %v2105_v37 = vld [vmem:[#allocation7 + $0x15b0] sm:$0xff] }
 0x9a7   :  { %v1648_v40 = vmul.f32 1.442695, %v1645_v38  ;;  %v2108_v38 = vld [vmem:[#allocation7 + $0x15c8] sm:$0xff] }
 0x9a8   :  { %3511 = vpow2.f32 %v1646_v39  ;;  %v2110_v39 = vld [vmem:[#allocation7 + $0x15d8] sm:$0xff] }
 0x9a9   :  { %3513 = vpow2.f32 %v1648_v40 }
 0x9b2   :  { %v3512_v41 = vpop.eup %3511 }
 0x9b3   :  { %v3514_v44 = vpop.eup %3513  ;;  %v2604_v45 = vadd.f32 -1.0, %v3512_v41  ;;  %v3285_v41 = vpack.c.bf16 %v2110_v39, %v2108_v38  ;;  %v1870_v39 = vld [vmem:[#allocation7 + $0x1440] sm:$0xff] }
 0x9b4   :  { %v2605_v36 = vadd.f32 -1.0, %v3514_v44  ;;  %v2112_v44 = vld [vmem:[#allocation7 + $0x15e8] sm:$0xff] }
 0x9b5   :  { %v1652_v53 = vsel %vm1642_vm9, %v1638_v30, %v2604_v45  ;;  %v3279_v30 = vpack.c.bf16 %v2101_v27, %v2099_v32  ;;  %v2114_v45 = vld [vmem:[#allocation7 + $0x15f8] sm:$0xff] }
 0x9b6   :  { %v1653_v49 = vsel %vm1643_vm8, %v1640_v33, %v2605_v36  ;;  %v2103_v33 = vld [vmem:[#allocation7 + $0x15a0] sm:$0xff]  ;;  %v3289_v47 = vpack.c.bf16 %v2114_v45, %v2112_v44  ;;  %v2130_v27 = vld [vmem:[#allocation7 + $0x1678] sm:$0xff]  ;;  %v3309_v44 = vpack.c.bf16 %v2134_v43, %v2132_v42  ;;  %v1875_v45 = vld [vmem:[#allocation7 + $0x1468] sm:$0xff] }
 0x9b7   :  { %1795 = vmatprep.mubr.f32.mxu0 %v1653_v49  ;;  %v3283_v40 = vpack.c.bf16 %v2105_v37, %v2103_v33  ;;  %v2111_v36 = vld [vmem:[#allocation7 + $0x15e0] sm:$0xff]  ;;  %v2129_v37 = vld [vmem:[#allocation7 + $0x1670] sm:$0xff] }
 0x9b8   :  { %1796 = vmatmul.mubr.f32.vlgmr.msra.gmra.mrb[8].mxu0 %v1652_v53  ;;  %v2116_v53 = vld [vmem:[#allocation7 + $0x1608] sm:$0xff]  ;;  %v2127_v33 = vld [vmem:[#allocation7 + $0x1660] sm:$0xff] }
 0x9b9   :  { %3252 = vmatpush1.bf16.msra.mxu0 %v3251_v48  ;;  %2068 = vmatprep.mubr.f32.mxu0 %v3635_v0  ;;  %v2089_v0 = vld [vmem:[#allocation7 + $0x1530] sm:$0xff]  ;;  %v3293_v56 = vpack.c.bf16 %v2118_v54, %v2116_v53  ;;  %v3307_v38 = vpack.c.bf16 %v2129_v37, %v2127_v33  ;;  %v2136_v53 = vld [vmem:[#allocation7 + $0x16a8] sm:$0xff]  ;;  %v2138_v54 = vld [vmem:[#allocation7 + $0x16b8] sm:$0xff] }
 0x9ba   :  { %3254 = vmatprep.subr.bf16.mxu0 %v3253_v50  ;;  %v3267_v61 = vpack.c.bf16 %v2089_v0, %v2087_v13  ;;  %v2113_v48 = vld [vmem:[#allocation7 + $0x15f0] sm:$0xff]  ;;  %v1854_v50 = vld [vmem:[#allocation7 + $0x13c0] sm:$0xff] }
 0x9bb   :  { %v3291_v49 = vpack.c.bf16 %v2113_v48, %v2111_v36  ;;  %v3227_v52 = vpack.c.bf16 %v1856_v51, %v1854_v50  ;;  %v2119_v13 = vld [vmem:[#allocation7 + $0x1620] sm:$0xff]  ;;  %v2133_v48 = vld [vmem:[#allocation7 + $0x1690] sm:$0xff] }
 0x9bc   :  { %v1876_v50 = vld [vmem:[#allocation7 + $0x1470] sm:$0xff] }
 0x9bd   :  { %3256 = vmatpush1.bf16.msra.mxu0 %v3255_v57  ;;  %3228 = vmatpush1.bf16.msra.mxu1 %v3227_v52  ;;  %v1859_v57 = vld [vmem:[#allocation7 + $0x13e8] sm:$0xff] }
 0x9be   :  { %3258 = vmatprep.subr.bf16.mxu0 %v3257_v60  ;;  %v1861_v60 = vld [vmem:[#allocation7 + $0x13f8] sm:$0xff] }
 0x9bf   :  { %v3229_v1 = vpack.c.bf16 %v1861_v60, %v1859_v57  ;;  %v2135_v57 = vld [vmem:[#allocation7 + $0x16a0] sm:$0xff]  ;;  %v2137_v60 = vld [vmem:[#allocation7 + $0x16b0] sm:$0xff] }
 0x9c1   :  { %3260 = vmatpush1.bf16.msra.mxu0 %v3259_v5  ;;  %v1860_v5 = vld [vmem:[#allocation7 + $0x13f0] sm:$0xff]  ;;  %3230 = vmatprep.subr.bf16.mxu1 %v3229_v1  ;;  %v2140_v1 = vld [vmem:[#allocation7 + $0x16c8] sm:$0xff] }
 0x9c2   :  { %3262 = vmatprep.subr.bf16.mxu0 %v3261_v6  ;;  %v3295_v6 = vpack.c.bf16 %v2117_v3, %v2115_v62  ;;  %v3231_v7 = vpack.c.bf16 %v1860_v5, %v1858_v4  ;;  %v3315_v62 = vpack.c.bf16 %v2137_v60, %v2135_v57  ;;  %v2142_v3 = vld [vmem:[#allocation7 + $0x16d8] sm:$0xff]  ;;  %v2139_v4 = vld [vmem:[#allocation7 + $0x16c0] sm:$0xff]  ;;  %v2258_v60 = vld [vmem:[#allocation7 + $0x1788] sm:$0xff] }
 0x9c3   :  { %v3317_v5 = vpack.c.bf16 %v2142_v3, %v2140_v1  ;;  %v2256_v57 = vld [vmem:[#allocation7 + $0x1778] sm:$0xff]  ;;  %v2255_v3 = vld [vmem:[#allocation7 + $0x1770] sm:$0xff] }
 0x9c4   :  { %3232 = vmatpush1.bf16.msra.mxu1 %v3231_v7  ;;  %v2144_v7 = vld [vmem:[#allocation7 + $0x16e8] sm:$0xff]  ;;  %v3337_v1 = vpack.c.bf16 %v2258_v60, %v2256_v57  ;;  %v2292_v60 = vld [vmem:[#allocation7 + $0x1898] sm:$0xff] }
 0x9c5   :  { %3264 = vmatpush1.bf16.msra.mxu0 %v3263_v11  ;;  %v1863_v11 = vld [vmem:[#allocation7 + $0x1408] sm:$0xff] }
 0x9c6   :  { %3266 = vmatprep.subr.bf16.mxu0 %v3265_v12  ;;  %v1865_v12 = vld [vmem:[#allocation7 + $0x1418] sm:$0xff] }
 0x9c7   :  { %v3233_v0 = vpack.c.bf16 %v1865_v12, %v1863_v11  ;;  %v2143_v11 = vld [vmem:[#allocation7 + $0x16e0] sm:$0xff]  ;;  %v2145_v12 = vld [vmem:[#allocation7 + $0x16f0] sm:$0xff] }
 0x9c8   :  { %2610 = vmatmul.mubr.msk.f32.vlgmr.msra.gmra.mrb[10].mxu0 %vm83_vm0, %v53_v16  ;;  %v1864_v16 = vld [vmem:[#allocation7 + $0x1410] sm:$0xff] }
 0x9c9   :  { %3268 = vmatpush1.bf16.msra.mxu0 %v3267_v61  ;;  %v3299_v61 = vpack.c.bf16 %v2121_v14, %v2119_v13  ;;  %3234 = vmatprep.subr.bf16.mxu1 %v3233_v0  ;;  %v2148_v13 = vld [vmem:[#allocation7 + $0x1708] sm:$0xff]  ;;  %v2150_v0 = vld [vmem:[#allocation7 + $0x1718] sm:$0xff]  ;;  %v3323_v14 = vpack.c.bf16 %v2145_v12, %v2143_v11 }
 0x9ca   :  { %3270 = vmatprep.subr.bf16.mxu0 %v3269_v17  ;;  %v3235_v17 = vpack.c.bf16 %v1864_v16, %v1862_v15  ;;  %v3325_v15 = vpack.c.bf16 %v2150_v0, %v2148_v13  ;;  %v2147_v16 = vld [vmem:[#allocation7 + $0x1700] sm:$0xff]  ;;  %v2264_v11 = vld [vmem:[#allocation7 + $0x17b8] sm:$0xff]  ;;  %v2266_v12 = vld [vmem:[#allocation7 + $0x17c8] sm:$0xff] }
 0x9cc   :  { %3236 = vmatpush1.bf16.msra.mxu1 %v3235_v17 }
 0x9cd   :  { %3272 = vmatpush1.bf16.msra.mxu0 %v3271_v55  ;;  %v1869_v55 = vld [vmem:[#allocation7 + $0x1438] sm:$0xff] }
 0x9ce   :  { %3274 = vmatprep.subr.bf16.mxu0 %v3273_v21  ;;  %v2123_v21 = vld [vmem:[#allocation7 + $0x1640] sm:$0xff]  ;;  %v3237_v23 = vpack.c.bf16 %v1869_v55, %v1867_v59  ;;  %v3329_v59 = vpack.c.bf16 %v2250_v19, %v2248_v18  ;;  %v2268_v18 = vld [vmem:[#allocation7 + $0x17d8] sm:$0xff]  ;;  %v2270_v19 = vld [vmem:[#allocation7 + $0x17e8] sm:$0xff] }
 0x9cf   :  { %v3303_v24 = vpack.c.bf16 %v2125_v22, %v2123_v21 }
 0x9d0   :  { %3238 = vmatprep.subr.bf16.mxu1 %v3237_v23 }
 0x9d1   :  { %3276 = vmatpush1.bf16.msra.mxu0 %v3275_v35  ;;  %v1868_v35 = vld [vmem:[#allocation7 + $0x1430] sm:$0xff] }
 0x9d2   :  { %3278 = vmatprep.subr.bf16.mxu0 %v3277_v26  ;;  %v2128_v26 = vld [vmem:[#allocation7 + $0x1668] sm:$0xff]  ;;  %v3239_v32 = vpack.c.bf16 %v1868_v35, %v1866_v25 }
 0x9d4   :  { %3240 = vmatpush1.bf16.msra.mxu1 %v3239_v32 }
 0x9d5   :  { %3280 = vmatpush1.bf16.msra.mxu0 %v3279_v30  ;;  %v3305_v30 = vpack.c.bf16 %v2130_v27, %v2128_v26 }
 0x9d6   :  { %3282 = vmatprep.subr.bf16.mxu0 %v3281_v31  ;;  %v3241_v31 = vpack.c.bf16 %v1873_v29, %v1871_v28  ;;  %v1989_v28 = vld [vmem:[#allocation7 + $0x1510] ss:$8 sm:$0x3] }
 0x9d7   :  { %v1994_v29 = vrot.slane %v1989_v28, %v3709_v63 }
 0x9d8   :  { %3242 = vmatprep.subr.bf16.mxu1 %v3241_v31 }
 0x9d9   :  { %3284 = vmatpush1.bf16.msra.mxu0 %v3283_v40  ;;  %v1872_v40 = vld [vmem:[#allocation7 + $0x1450] sm:$0xff] }
 0x9da   :  { %3286 = vmatprep.subr.bf16.mxu0 %v3285_v41  ;;  %v3243_v41 = vpack.c.bf16 %v1872_v40, %v1870_v39  ;;  %v2247_v39 = vld [vmem:[#allocation7 + $0x1730] sm:$0xff]  ;;  %v2249_v40 = vld [vmem:[#allocation7 + $0x1740] sm:$0xff] }
 0x9dc   :  { %3244 = vmatpush1.bf16.msra.mxu1 %v3243_v41 }
 0x9dd   :  { %3288 = vmatpush1.bf16.msra.mxu0 %v3287_v46  ;;  %v1877_v46 = vld [vmem:[#allocation7 + $0x1478] sm:$0xff] }
 0x9de   :  { %3290 = vmatprep.subr.bf16.mxu0 %v3289_v47  ;;  %v2131_v47 = vld [vmem:[#allocation7 + $0x1680] sm:$0xff]  ;;  %v3245_v36 = vpack.c.bf16 %v1877_v46, %v1875_v45  ;;  %v2254_v45 = vld [vmem:[#allocation7 + $0x1768] sm:$0xff] }
 0x9df   :  { %v3311_v51 = vpack.c.bf16 %v2133_v48, %v2131_v47  ;;  %v3331_v48 = vpack.c.bf16 %v2249_v40, %v2247_v39  ;;  %v2277_v39 = vld [vmem:[#allocation7 + $0x1820] sm:$0xff] }
 0x9e0   :  { %3246 = vmatprep.subr.bf16.mxu1 %v3245_v36 }
 0x9e1   :  { %3292 = vmatpush1.bf16.msra.mxu0 %v3291_v49  ;;  %v1874_v49 = vld [vmem:[#allocation7 + $0x1460] sm:$0xff] }
 0x9e2   :  { %3294 = vmatprep.subr.bf16.mxu0 %v3293_v56  ;;  %v3247_v52 = vpack.c.bf16 %v1876_v50, %v1874_v49  ;;  %v3313_v56 = vpack.c.bf16 %v2138_v54, %v2136_v53  ;;  %v2253_v53 = vld [vmem:[#allocation7 + $0x1760] sm:$0xff] }
 0x9e4   :  { %3248 = vmatpush1.bf16.msra.mxu1 %v3247_v52  ;;  %v2251_v52 = vld [vmem:[#allocation7 + $0x1750] sm:$0xff] }
 0x9e5   :  { %3296 = vmatpush1.bf16.msra.mxu0 %v3295_v6  ;;  %v2141_v6 = vld [vmem:[#allocation7 + $0x16d0] sm:$0xff]  ;;  %3330 = vmatprep.subr.bf16.mxu1 %v3329_v59 }
 0x9e6   :  { %3298 = vmatprep.subr.bf16.mxu0 %v3297_v10  ;;  %v3319_v9 = vpack.c.bf16 %v2141_v6, %v2139_v4  ;;  %v3321_v10 = vpack.c.bf16 %v2146_v8, %v2144_v7  ;;  %v2257_v4 = vld [vmem:[#allocation7 + $0x1780] sm:$0xff]  ;;  %v2262_v6 = vld [vmem:[#allocation7 + $0x17a8] sm:$0xff] }
 0x9e7   :  { %v3339_v7 = vpack.c.bf16 %v2257_v4, %v2255_v3  ;;  %v2291_v3 = vld [vmem:[#allocation7 + $0x1890] sm:$0xff]  ;;  %v2293_v4 = vld [vmem:[#allocation7 + $0x18a0] sm:$0xff] }
 0x9e9   :  { %3300 = vmatpush1.bf16.msra.mxu0 %v3299_v61  ;;  %v2149_v61 = vld [vmem:[#allocation7 + $0x1710] sm:$0xff] }
 0x9ea   :  { %3302 = vmatprep.subr.bf16.mxu0 %v3301_v20  ;;  %v3327_v17 = vpack.c.bf16 %v2149_v61, %v2147_v16  ;;  %v1719_v20 = vld [vmem:[#allocation7 + $0x1270] ss:$8 sm:$0x3]  ;;  %v2265_v16 = vld [vmem:[#allocation7 + $0x17c0] sm:$0xff] }
 0x9eb   :  { %v1724_v55 = vrot.slane %v1719_v20, %v3709_v63  ;;  %v1728_v21 = vrot.slane %v1719_v20, %v3711_v2 }
 0x9ed   :  { %3304 = vmatpush1.bf16.msra.mxu0 %v3303_v24 }
 0x9ee   :  { %3306 = vmatprep.subr.bf16.mxu0 %v3305_v30  ;;  %v1998_v30 = vrot.slane %v1989_v28, %v3711_v2  ;;  %v2273_v28 = vld [vmem:[#allocation7 + $0x1800] sm:$0xff] }
 0x9f1   :  { %3308 = vmatpush1.bf16.msra.mxu0 %v3307_v38 }
 0x9f2   :  { %3310 = vmatprep.subr.bf16.mxu0 %v3309_v44  ;;  %v2252_v44 = vld [vmem:[#allocation7 + $0x1758] sm:$0xff] }
 0x9f5   :  { %3312 = vmatpush1.bf16.msra.mxu0 %v3311_v51  ;;  %v3333_v51 = vpack.c.bf16 %v2254_v45, %v2252_v44  ;;  %v2281_v44 = vld [vmem:[#allocation7 + $0x1840] sm:$0xff] }
 0x9f6   :  { %3314 = vmatprep.subr.bf16.mxu0 %v3313_v56 }
 0x9f9   :  { %3316 = vmatpush1.bf16.msra.mxu0 %v3315_v62  ;;  %v3335_v62 = vpack.c.bf16 %v2253_v53, %v2251_v52 }
 0x9fa   :  { %3318 = vmatprep.subr.bf16.mxu0 %v3317_v5  ;;  %v2260_v5 = vld [vmem:[#allocation7 + $0x1798] sm:$0xff] }
 0x9fb   :  { %v3341_v8 = vpack.c.bf16 %v2262_v6, %v2260_v5  ;;  %v3375_v5 = vpack.c.bf16 %v2293_v4, %v2291_v3  ;;  %v2296_v6 = vld [vmem:[#allocation7 + $0x18b8] sm:$0xff]  ;;  %v2416_v3 = vld [vmem:[#allocation7 + $0x1988] sm:$0xff] }
 0x9fd   :  { %3320 = vmatpush1.bf16.msra.mxu0 %v3319_v9  ;;  %v2259_v9 = vld [vmem:[#allocation7 + $0x1790] sm:$0xff] }
 0x9fe   :  { %3322 = vmatprep.subr.bf16.mxu0 %v3321_v10  ;;  %v2261_v10 = vld [vmem:[#allocation7 + $0x17a0] sm:$0xff] }
 0x9ff   :  { %v3343_v13 = vpack.c.bf16 %v2261_v10, %v2259_v9  ;;  %v2295_v9 = vld [vmem:[#allocation7 + $0x18b0] sm:$0xff]  ;;  %v2297_v10 = vld [vmem:[#allocation7 + $0x18c0] sm:$0xff] }
 0xa01   :  { %3324 = vmatpush1.bf16.msra.mxu0 %v3323_v14  ;;  %v3345_v14 = vpack.c.bf16 %v2266_v12, %v2264_v11  ;;  %v3379_v11 = vpack.c.bf16 %v2297_v10, %v2295_v9  ;;  %v2300_v12 = vld [vmem:[#allocation7 + $0x18d8] sm:$0xff]  ;;  %v2417_v10 = vld [vmem:[#allocation7 + $0x1990] sm:$0xff] }
 0xa02   :  { %3326 = vmatprep.subr.bf16.mxu0 %v3325_v15  ;;  %v2263_v15 = vld [vmem:[#allocation7 + $0x17b0] sm:$0xff] }
 0xa03   :  { %v3347_v20 = vpack.c.bf16 %v2265_v16, %v2263_v15  ;;  %v2301_v15 = vld [vmem:[#allocation7 + $0x18e0] sm:$0xff] }
 0xa05   :  { %3328 = vmatpush1.bf16.msra.mxu0 %v3327_v17 }
 0xa8b   :  { %v1797_v22 = vpop.f32.mrb[8].mxu0 }
 0xa8c   :  { %v1798_v23 = vadd.f32 %v1797_v22, %v1724_v55  ;;  %v1799_v24 = vpop.f32.mrb[9].mxu0  ;;  %v2267_v22 = vld [vmem:[#allocation7 + $0x17d0] sm:$0xff] }
 0xa8d   :  { %v1800_v25 = vadd.f32 %v1799_v24, %v1728_v21  ;;  %v3349_v21 = vpack.c.bf16 %v2270_v19, %v2268_v18  ;;  %v2303_v18 = vld [vmem:[#allocation7 + $0x18f0] sm:$0xff] }
 0xa8e   :  { %v1804_v35 = vmin.f32 %v1798_v23, 0.0  ;;  %vm1802_vm10 = vcmp.gt.f32.partialorder %v1798_v23, 0.0 }
 0xa8f   :  { %v1805_v26 = vmin.f32 %v1800_v25, 0.0  ;;  %vm1803_vm0 = vcmp.gt.f32.partialorder %v1800_v25, 0.0 }
 0xa90   :  { %v1806_v32 = vmul.f32 1.442695, %v1804_v35  ;;  %v2274_v35 = vld [vmem:[#allocation7 + $0x1808] sm:$0xff] }
 0xa91   :  { %v1808_v27 = vmul.f32 1.442695, %v1805_v26 }
 0xa92   :  { %3515 = vpow2.f32 %v1806_v32 }
 0xa93   :  { %3517 = vpow2.f32 %v1808_v27  ;;  %v2271_v27 = vld [vmem:[#allocation7 + $0x17f0] sm:$0xff] }
 0xa9b   :  { %v2070_v31 = vpop.f32.mrb[10].mxu0 }
 0xa9c   :  { %v3516_v33 = vpop.eup %3515  ;;  %v3785_v37 = vadd.f32 %v2070_v31, %v1994_v29  ;;  %v2072_v38 = vpop.f32.mrb[11].mxu0  ;;  %v3355_v29 = vpack.c.bf16 %v2273_v28, %v2271_v27  ;;  %v2278_v31 = vld [vmem:[#allocation7 + $0x1828] sm:$0xff] }
 0xa9d   :  { %v3518_v41 = vpop.eup %3517  ;;  %v2073_v42 = vadd.f32 %v2072_v38, %v1998_v30  ;;  %v2606_v43 = vadd.f32 -1.0, %v3516_v33  ;;  %v2276_v30 = vld [vmem:[#allocation7 + $0x1818] sm:$0xff]  ;;  %v2275_v38 = vld [vmem:[#allocation7 + $0x1810] sm:$0xff] }
 0xa9e   :  { %v2077_v46 = vmin.f32 %v3785_v37, 0.0  ;;  %v2607_v47 = vadd.f32 -1.0, %v3518_v41  ;;  %vm2075_vm12 = vcmp.gt.f32.partialorder %v3785_v37, 0.0  ;;  %v3357_v33 = vpack.c.bf16 %v2278_v31, %v2276_v30  ;;  %v2282_v41 = vld [vmem:[#allocation7 + $0x1848] sm:$0xff] }
 0xa9f   :  { %v2078_v36 = vmin.f32 %v2073_v42, 0.0  ;;  %v1812_v56 = vsel %vm1802_vm10, %v1798_v23, %v2606_v43  ;;  %vm2076_vm11 = vcmp.gt.f32.partialorder %v2073_v42, 0.0  ;;  %v2269_v23 = vld [vmem:[#allocation7 + $0x17e0] sm:$0xff]  ;;  %v3359_v40 = vpack.c.bf16 %v2277_v39, %v2275_v38  ;;  %v2279_v43 = vld [vmem:[#allocation7 + $0x1830] sm:$0xff] }
 0xaa0   :  { %v2079_v49 = vmul.f32 1.442695, %v2077_v46  ;;  %v1813_v50 = vsel %vm1803_vm0, %v1800_v25, %v2607_v47  ;;  %v2272_v25 = vld [vmem:[#allocation7 + $0x17f8] sm:$0xff]  ;;  %v3351_v26 = vpack.c.bf16 %v2269_v23, %v2267_v22  ;;  %v3363_v45 = vpack.c.bf16 %v2281_v44, %v2279_v43  ;;  %v2286_v47 = vld [vmem:[#allocation7 + $0x1868] sm:$0xff]  ;;  %v2307_v22 = vld [vmem:[#allocation7 + $0x1910] sm:$0xff] }
 0xaa1   :  { %v2081_v54 = vmul.f32 1.442695, %v2078_v36  ;;  %1950 = vmatprep.mubr.f32.mxu1 %v1813_v50  ;;  %v3353_v32 = vpack.c.bf16 %v2274_v35, %v2272_v25  ;;  %v2284_v46 = vld [vmem:[#allocation7 + $0x1858] sm:$0xff]  ;;  %v2283_v36 = vld [vmem:[#allocation7 + $0x1850] sm:$0xff] }
 0xaa2   :  { %3519 = vpow2.f32 %v2079_v49  ;;  %1951 = vmatmul.mubr.f32.vlgmr.msra.gmra.mrb[12].mxu1 %v1812_v56  ;;  %v2285_v49 = vld [vmem:[#allocation7 + $0x1860] sm:$0xff]  ;;  %v2288_v50 = vld [vmem:[#allocation7 + $0x1878] sm:$0xff] }
 0xaa3   :  { %3521 = vpow2.f32 %v2081_v54  ;;  %3332 = vmatpush1.bf16.msra.mxu1 %v3331_v48  ;;  %v3365_v48 = vpack.c.bf16 %v2286_v47, %v2284_v46  ;;  %v3367_v52 = vpack.c.bf16 %v2285_v49, %v2283_v36  ;;  %v2287_v54 = vld [vmem:[#allocation7 + $0x1870] sm:$0xff]  ;;  %v2289_v56 = vld [vmem:[#allocation7 + $0x1880] sm:$0xff]  ;;  %v2408_v49 = vld [vmem:[#allocation7 + $0x1948] sm:$0xff] }
 0xaa4   :  { %3334 = vmatprep.subr.bf16.mxu1 %v3333_v51  ;;  %v2290_v51 = vld [vmem:[#allocation7 + $0x1888] sm:$0xff]  ;;  %v3371_v57 = vpack.c.bf16 %v2289_v56, %v2287_v54  ;;  %v2414_v56 = vld [vmem:[#allocation7 + $0x1978] sm:$0xff] }
 0xaa5   :  { %v3369_v53 = vpack.c.bf16 %v2290_v51, %v2288_v50  ;;  %v1879_v35 = vld [vmem:[#allocation7 + $0x1480] ss:$8 sm:$0x3]  ;;  %v2410_v50 = vld [vmem:[#allocation7 + $0x1958] sm:$0xff] }
 0xaa6   :  { %v2152_v31 = vld [vmem:[#allocation7 + $0x1720] ss:$8 sm:$0x3] }
 0xaa7   :  { %3336 = vmatpush1.bf16.msra.mxu1 %v3335_v62  ;;  %v2294_v62 = vld [vmem:[#allocation7 + $0x18a8] sm:$0xff]  ;;  %v2161_v38 = vrot.slane %v2152_v31, %v3711_v2  ;;  %v2407_v51 = vld [vmem:[#allocation7 + $0x1940] sm:$0xff] }
 0xaa8   :  { %3338 = vmatprep.subr.bf16.mxu1 %v3337_v1  ;;  %v3373_v1 = vpack.c.bf16 %v2294_v62, %v2292_v60  ;;  %v2412_v54 = vld [vmem:[#allocation7 + $0x1968] sm:$0xff]  ;;  %v2411_v62 = vld [vmem:[#allocation7 + $0x1960] sm:$0xff] }
 0xaa9   :  { %v3397_v60 = vpack.c.bf16 %v2414_v56, %v2412_v54  ;;  %v2450_v54 = vld [vmem:[#allocation7 + $0x1a98] sm:$0xff] }
 0xaab   :  { %3340 = vmatpush1.bf16.msra.mxu1 %v3339_v7  ;;  %v2298_v7 = vld [vmem:[#allocation7 + $0x18c8] sm:$0xff] }
 0xaac   :  { %v3520_v0 = vpop.eup %3519  ;;  %3342 = vmatprep.subr.bf16.mxu1 %v3341_v8  ;;  %v3377_v8 = vpack.c.bf16 %v2298_v7, %v2296_v6 }
 0xaad   :  { %v3522_v61 = vpop.eup %3521  ;;  %v2611_v17 = vadd.f32 -1.0, %v3520_v0  ;;  %v2299_v0 = vld [vmem:[#allocation7 + $0x18d0] sm:$0xff] }
 0xaae   :  { %v2612_v59 = vadd.f32 -1.0, %v3522_v61  ;;  %v3383_v16 = vpack.c.bf16 %v2301_v15, %v2299_v0  ;;  %v2304_v61 = vld [vmem:[#allocation7 + $0x18f8] sm:$0xff] }
 0xaaf   :  { %3344 = vmatpush1.bf16.msra.mxu1 %v3343_v13  ;;  %v2085_v24 = vsel %vm2075_vm12, %v3785_v37, %v2611_v17  ;;  %v2280_v37 = vld [vmem:[#allocation7 + $0x1838] sm:$0xff]  ;;  %v2302_v13 = vld [vmem:[#allocation7 + $0x18e8] sm:$0xff] }
 0xab0   :  { %v2086_v55 = vsel %vm2076_vm11, %v2073_v42, %v2612_v59  ;;  %3346 = vmatprep.subr.bf16.mxu1 %v3345_v14  ;;  %v3361_v42 = vpack.c.bf16 %v2282_v41, %v2280_v37  ;;  %v3381_v14 = vpack.c.bf16 %v2302_v13, %v2300_v12  ;;  %v2306_v17 = vld [vmem:[#allocation7 + $0x1908] sm:$0xff]  ;;  %v2305_v59 = vld [vmem:[#allocation7 + $0x1900] sm:$0xff]  ;;  %v2422_v12 = vld [vmem:[#allocation7 + $0x19b8] sm:$0xff] }
 0xab1   :  { %2228 = vmatprep.mubr.f32.mxu0 %v2086_v55  ;;  %v3385_v19 = vpack.c.bf16 %v2306_v17, %v2304_v61  ;;  %v2308_v55 = vld [vmem:[#allocation7 + $0x1918] sm:$0xff]  ;;  %v2421_v61 = vld [vmem:[#allocation7 + $0x19b0] sm:$0xff]  ;;  %v2424_v17 = vld [vmem:[#allocation7 + $0x19c8] sm:$0xff] }
 0xab2   :  { %2229 = vmatmul.mubr.f32.vlgmr.msra.gmra.mrb[12].mxu0 %v2085_v24  ;;  %v2309_v24 = vld [vmem:[#allocation7 + $0x1920] sm:$0xff] }
 0xab3   :  { %3348 = vmatpush1.bf16.msra.mxu1 %v3347_v20  ;;  %v3387_v20 = vpack.c.bf16 %v2305_v59, %v2303_v18  ;;  %v3391_v25 = vpack.c.bf16 %v2309_v24, %v2307_v22  ;;  %v2426_v18 = vld [vmem:[#allocation7 + $0x19d8] sm:$0xff] }
 0xab4   :  { %3350 = vmatprep.subr.bf16.mxu1 %v3349_v21  ;;  %v2310_v21 = vld [vmem:[#allocation7 + $0x1928] sm:$0xff]  ;;  %v3409_v59 = vpack.c.bf16 %v2426_v18, %v2424_v17  ;;  %v2430_v22 = vld [vmem:[#allocation7 + $0x19f8] sm:$0xff] }
 0xab5   :  { %v3389_v23 = vpack.c.bf16 %v2310_v21, %v2308_v55  ;;  %v2425_v55 = vld [vmem:[#allocation7 + $0x19d0] sm:$0xff]  ;;  %v2428_v21 = vld [vmem:[#allocation7 + $0x19e8] sm:$0xff]  ;;  %v2466_v17 = vld [vmem:[#allocation7 + $0x1b18] sm:$0xff] }
 0xab6   :  { %v3413_v24 = vpack.c.bf16 %v2430_v22, %v2428_v21  ;;  %v2470_v21 = vld [vmem:[#allocation7 + $0x1b38] sm:$0xff] }
 0xab7   :  { %3352 = vmatpush1.bf16.msra.mxu1 %v3351_v26  ;;  %v1884_v26 = vrot.slane %v1879_v35, %v3709_v63  ;;  %v2429_v35 = vld [vmem:[#allocation7 + $0x19f0] sm:$0xff] }
 0xab8   :  { %3354 = vmatprep.subr.bf16.mxu1 %v3353_v32 }
 0xabb   :  { %3356 = vmatpush1.bf16.msra.mxu1 %v3355_v29 }
 0xabc   :  { %3358 = vmatprep.subr.bf16.mxu1 %v3357_v33  ;;  %v2157_v33 = vrot.slane %v2152_v31, %v3709_v63  ;;  %v2436_v31 = vld [vmem:[#allocation7 + $0x1a28] sm:$0xff] }
 0xabf   :  { %3360 = vmatpush1.bf16.msra.mxu1 %v3359_v40 }
 0xac0   :  { %3362 = vmatprep.subr.bf16.mxu1 %v3361_v42 }
 0xac3   :  { %3364 = vmatpush1.bf16.msra.mxu1 %v3363_v45 }
 0xac4   :  { %3366 = vmatprep.subr.bf16.mxu1 %v3365_v48 }
 0xac7   :  { %3368 = vmatpush1.bf16.msra.mxu1 %v3367_v52  ;;  %v3393_v52 = vpack.c.bf16 %v2410_v50, %v2408_v49 }
 0xac8   :  { %3370 = vmatprep.subr.bf16.mxu1 %v3369_v53  ;;  %v2409_v53 = vld [vmem:[#allocation7 + $0x1950] sm:$0xff] }
 0xac9   :  { %3394 = vmatprep.subr.bf16.mxu0 %v3393_v52  ;;  %v2445_v52 = vld [vmem:[#allocation7 + $0x1a70] sm:$0xff] }
 0xacb   :  { %3372 = vmatpush1.bf16.msra.mxu1 %v3371_v57  ;;  %v3395_v57 = vpack.c.bf16 %v2409_v53, %v2407_v51  ;;  %v2443_v51 = vld [vmem:[#allocation7 + $0x1a60] sm:$0xff]  ;;  %v2448_v53 = vld [vmem:[#allocation7 + $0x1a88] sm:$0xff] }
 0xacc   :  { %3374 = vmatprep.subr.bf16.mxu1 %v3373_v1  ;;  %v2413_v1 = vld [vmem:[#allocation7 + $0x1970] sm:$0xff]  ;;  %v3431_v56 = vpack.c.bf16 %v2445_v52, %v2443_v51 }
 0xacd   :  { %3396 = vmatpush1.bf16.msra.mxu0 %v3395_v57  ;;  %v3399_v7 = vpack.c.bf16 %v2413_v1, %v2411_v62  ;;  %v3433_v57 = vpack.c.bf16 %v2450_v54, %v2448_v53  ;;  %v2449_v62 = vld [vmem:[#allocation7 + $0x1a90] sm:$0xff] }
 0xace   :  { %3398 = vmatprep.subr.bf16.mxu0 %v3397_v60  ;;  %v2447_v60 = vld [vmem:[#allocation7 + $0x1a80] sm:$0xff] }
 0xacf   :  { %3376 = vmatpush1.bf16.msra.mxu1 %v3375_v5  ;;  %v2418_v5 = vld [vmem:[#allocation7 + $0x1998] sm:$0xff]  ;;  %v3435_v1 = vpack.c.bf16 %v2449_v62, %v2447_v60 }
 0xad0   :  { %3378 = vmatprep.subr.bf16.mxu1 %v3377_v8  ;;  %v3401_v9 = vpack.c.bf16 %v2418_v5, %v2416_v3  ;;  %v2452_v3 = vld [vmem:[#allocation7 + $0x1aa8] sm:$0xff] }
 0xad1   :  { %3400 = vmatpush1.bf16.msra.mxu0 %v3399_v7 }
 0xad2   :  { %3402 = vmatprep.subr.bf16.mxu0 %v3401_v9  ;;  %v2458_v9 = vld [vmem:[#allocation7 + $0x1ad8] sm:$0xff] }
 0xad3   :  { %3380 = vmatpush1.bf16.msra.mxu1 %v3379_v11  ;;  %v2420_v11 = vld [vmem:[#allocation7 + $0x19a8] sm:$0xff] }
 0xad4   :  { %3382 = vmatprep.subr.bf16.mxu1 %v3381_v14  ;;  %v3405_v15 = vpack.c.bf16 %v2422_v12, %v2420_v11  ;;  %v2457_v11 = vld [vmem:[#allocation7 + $0x1ad0] sm:$0xff] }
 0xad7   :  { %3384 = vmatpush1.bf16.msra.mxu1 %v3383_v16  ;;  %v2419_v16 = vld [vmem:[#allocation7 + $0x19a0] sm:$0xff] }
 0xad8   :  { %3386 = vmatprep.subr.bf16.mxu1 %v3385_v19  ;;  %v3407_v19 = vpack.c.bf16 %v2421_v61, %v2419_v16  ;;  %v2461_v16 = vld [vmem:[#allocation7 + $0x1af0] sm:$0xff]  ;;  %v2464_v61 = vld [vmem:[#allocation7 + $0x1b08] sm:$0xff] }
 0xadb   :  { %3388 = vmatpush1.bf16.msra.mxu1 %v3387_v20  ;;  %v2423_v20 = vld [vmem:[#allocation7 + $0x19c0] sm:$0xff] }
 0xadc   :  { %3390 = vmatprep.subr.bf16.mxu1 %v3389_v23  ;;  %v3411_v23 = vpack.c.bf16 %v2425_v55, %v2423_v20  ;;  %v2465_v20 = vld [vmem:[#allocation7 + $0x1b10] sm:$0xff]  ;;  %v2468_v55 = vld [vmem:[#allocation7 + $0x1b28] sm:$0xff] }
 0xadf   :  { %3392 = vmatpush1.bf16.msra.mxu1 %v3391_v25  ;;  %v2427_v25 = vld [vmem:[#allocation7 + $0x19e0] sm:$0xff] }
 0xb75   :  { %v1952_v32 = vpop.f32.mrb[12].mxu1 }
 0xb76   :  { %v1953_v27 = vadd.f32 %v1952_v32, %v1884_v26  ;;  %v1954_v28 = vpop.f32.mrb[13].mxu1  ;;  %v2432_v26 = vld [vmem:[#allocation7 + $0x1a08] sm:$0xff]  ;;  %v2434_v32 = vld [vmem:[#allocation7 + $0x1a18] sm:$0xff] }
 0xb77   :  { %v3417_v28 = vpack.c.bf16 %v2434_v32, %v2432_v26  ;;  %v2312_v26 = vld [vmem:[#allocation7 + $0x1930] ss:$8 sm:$0x3] }
 0xb78   :  { %v1957_v29 = vmin.f32 %v1953_v27, 0.0  ;;  %vm1956_vm13 = vcmp.gt.f32.partialorder %v1953_v27, 0.0  ;;  %v2317_v32 = vrot.slane %v2312_v26, %v3709_v63 }
 0xb7a   :  { %v1958_v30 = vmul.f32 1.442695, %v1957_v29  ;;  %v2431_v29 = vld [vmem:[#allocation7 + $0x1a00] sm:$0xff] }
 0xb7c   :  { %3523 = vpow2.f32 %v1958_v30  ;;  %v2433_v30 = vld [vmem:[#allocation7 + $0x1a10] sm:$0xff] }
 0xb85   :  { %v2230_v39 = vpop.f32.mrb[12].mxu0 }
 0xb86   :  { %v3524_v40 = vpop.eup %3523  ;;  %v2231_v37 = vadd.f32 %v2230_v39, %v2157_v33  ;;  %v2232_v41 = vpop.f32.mrb[13].mxu0  ;;  %v2438_v33 = vld [vmem:[#allocation7 + $0x1a38] sm:$0xff] }
 0xb87   :  { %v2233_v42 = vadd.f32 %v2232_v41, %v2161_v38  ;;  %v2608_v43 = vadd.f32 -1.0, %v3524_v40  ;;  %v3419_v38 = vpack.c.bf16 %v2433_v30, %v2431_v29  ;;  %v3421_v39 = vpack.c.bf16 %v2438_v33, %v2436_v31  ;;  %v2435_v40 = vld [vmem:[#allocation7 + $0x1a20] sm:$0xff]  ;;  %v2440_v41 = vld [vmem:[#allocation7 + $0x1a48] sm:$0xff] }
 0xb88   :  { %v2237_v44 = vmin.f32 %v2231_v37, 0.0  ;;  %vm2235_vm15 = vcmp.gt.f32.partialorder %v2231_v37, 0.0 }
 0xb89   :  { %v2238_v45 = vmin.f32 %v2233_v42, 0.0  ;;  %v1961_v46 = vsel %vm1956_vm13, %v1953_v27, %v2608_v43  ;;  %vm2236_vm14 = vcmp.gt.f32.partialorder %v2233_v42, 0.0  ;;  %v3415_v27 = vpack.c.bf16 %v2429_v35, %v2427_v25  ;;  %v2469_v25 = vld [vmem:[#allocation7 + $0x1b30] sm:$0xff] }
 0xb8a   :  { %v2239_v47 = vmul.f32 1.442695, %v2237_v44  ;;  %v3793_v36 = vmax.f32 %v1961_v46, 1e-06  ;;  %v2441_v46 = vld [vmem:[#allocation7 + $0x1a50] sm:$0xff] }
 0xb8b   :  { %v2241_v48 = vmul.f32 1.442695, %v2238_v45  ;;  %v2439_v45 = vld [vmem:[#allocation7 + $0x1a40] sm:$0xff] }
 0xb8c   :  { %3525 = vpow2.f32 %v2239_v47  ;;  %1964 = vrot.lane.b32.xlu1 %v3793_v36, %s3642_s22  ;;  %v2444_v47 = vld [vmem:[#allocation7 + $0x1a68] sm:$0xff]  ;;  %v3427_v49 = vpack.c.bf16 %v2441_v46, %v2439_v45 }
 0xb8d   :  { %3527 = vpow2.f32 %v2241_v48  ;;  %v2446_v48 = vld [vmem:[#allocation7 + $0x1a78] sm:$0xff] }
 0xb8e   :  { %v3429_v50 = vpack.c.bf16 %v2446_v48, %v2444_v47 }
 0xb90   :  { %2549 = vrot.lane.b32.xlu1 %v3767_v58, %s3643_s23 }
 0xb94   :  { %2553 = vrot.lane.b32.xlu1 %v3749_v34, %s3644_s24  ;;  %v2415_v34 = vld [vmem:[#allocation7 + $0x1980] sm:$0xff] }
 0xb95   :  { %v3403_v14 = vpack.c.bf16 %v2417_v10, %v2415_v34  ;;  %v2455_v10 = vld [vmem:[#allocation7 + $0x1ac0] sm:$0xff] }
 0xb96   :  { %v3526_v4 = vpop.eup %3525  ;;  %v3443_v12 = vpack.c.bf16 %v2457_v11, %v2455_v10 }
 0xb97   :  { %v3528_v6 = vpop.eup %3527  ;;  %v2613_v58 = vadd.f32 -1.0, %v3526_v4  ;;  %3404 = vmatpush1.bf16.msra.mxu0 %v3403_v14  ;;  %v2454_v4 = vld [vmem:[#allocation7 + $0x1ab8] sm:$0xff]  ;;  %v2459_v14 = vld [vmem:[#allocation7 + $0x1ae0] sm:$0xff] }
 0xb98   :  { %v2614_v8 = vadd.f32 -1.0, %v3528_v6  ;;  %3406 = vmatprep.subr.bf16.mxu0 %v3405_v15  ;;  %v3437_v5 = vpack.c.bf16 %v2454_v4, %v2452_v3  ;;  %v2451_v6 = vld [vmem:[#allocation7 + $0x1aa0] sm:$0xff]  ;;  %v3447_v18 = vpack.c.bf16 %v2461_v16, %v2459_v14 }
 0xb99   :  { %v2245_v0 = vsel %vm2235_vm15, %v2231_v37, %v2613_v58  ;;  %v2437_v37 = vld [vmem:[#allocation7 + $0x1a30] sm:$0xff] }
 0xb9a   :  { %v2246_v13 = vsel %vm2236_vm14, %v2233_v42, %v2614_v8  ;;  %v2442_v42 = vld [vmem:[#allocation7 + $0x1a58] sm:$0xff]  ;;  %v3423_v43 = vpack.c.bf16 %v2437_v37, %v2435_v40  ;;  %v2453_v58 = vld [vmem:[#allocation7 + $0x1ab0] sm:$0xff]  ;;  %v2456_v8 = vld [vmem:[#allocation7 + $0x1ac8] sm:$0xff] }
 0xb9b   :  { %2388 = vmatprep.mubr.f32.mxu1 %v2246_v13  ;;  %3408 = vmatpush1.bf16.msra.mxu0 %v3407_v19  ;;  %v3425_v44 = vpack.c.bf16 %v2442_v42, %v2440_v41  ;;  %v3439_v7 = vpack.c.bf16 %v2453_v58, %v2451_v6  ;;  %v3441_v34 = vpack.c.bf16 %v2458_v9, %v2456_v8  ;;  %v2460_v13 = vld [vmem:[#allocation7 + $0x1ae8] sm:$0xff] }
 0xb9c   :  { %2389 = vmatmul.mubr.f32.vlgmr.msra.gmra.mrb[14].mxu1 %v2245_v0  ;;  %3410 = vmatprep.subr.bf16.mxu0 %v3409_v59  ;;  %v2462_v0 = vld [vmem:[#allocation7 + $0x1af8] sm:$0xff]  ;;  %v3449_v19 = vpack.c.bf16 %v2466_v17, %v2464_v61  ;;  %v2463_v59 = vld [vmem:[#allocation7 + $0x1b00] sm:$0xff] }
 0xb9d   :  { %v3445_v15 = vpack.c.bf16 %v2462_v0, %v2460_v13  ;;  %v3451_v22 = vpack.c.bf16 %v2465_v20, %v2463_v59 }
 0xb9f   :  { %3412 = vmatpush1.bf16.msra.mxu0 %v3411_v23  ;;  %v3453_v23 = vpack.c.bf16 %v2470_v21, %v2468_v55 }
 0xba0   :  { %3414 = vmatprep.subr.bf16.mxu0 %v3413_v24  ;;  %v2467_v24 = vld [vmem:[#allocation7 + $0x1b20] sm:$0xff] }
 0xba1   :  { %v3455_v35 = vpack.c.bf16 %v2469_v25, %v2467_v24 }
 0xba3   :  { %3416 = vmatpush1.bf16.msra.mxu0 %v3415_v27  ;;  %v2321_v27 = vrot.slane %v2312_v26, %v3711_v2  ;;  %v2472_v2 = vld [vmem:[#allocation7 + $0x1b40] ss:$8 sm:$0x3] }
 0xba4   :  { %3418 = vmatprep.subr.bf16.mxu0 %v3417_v28  ;;  %v2477_v46 = vrot.slane %v2472_v2, %v3709_v63 }
 0xba7   :  { %3420 = vmatpush1.bf16.msra.mxu0 %v3419_v38 }
 0xba8   :  { %3422 = vmatprep.subr.bf16.mxu0 %v3421_v39 }
 0xbab   :  { %3424 = vmatpush1.bf16.msra.mxu0 %v3423_v43 }
 0xbac   :  { %3426 = vmatprep.subr.bf16.mxu0 %v3425_v44 }
 0xbaf   :  { %3428 = vmatpush1.bf16.msra.mxu0 %v3427_v49 }
 0xbb0   :  { %3430 = vmatprep.subr.bf16.mxu0 %v3429_v50 }
 0xbb3   :  { %3432 = vmatpush1.bf16.msra.mxu0 %v3431_v56 }
 0xbb4   :  { %3434 = vmatprep.subr.bf16.mxu0 %v3433_v57 }
 0xbb7   :  { %3436 = vmatpush1.bf16.msra.mxu0 %v3435_v1 }
 0xbb8   :  { %3438 = vmatprep.subr.bf16.mxu0 %v3437_v5 }
 0xbbb   :  { %3440 = vmatpush1.bf16.msra.mxu0 %v3439_v7 }
 0xbbc   :  { %3442 = vmatprep.subr.bf16.mxu0 %v3441_v34 }
 0xbbf   :  { %3444 = vmatpush1.bf16.msra.mxu0 %v3443_v12 }
 0xbc0   :  { %3446 = vmatprep.subr.bf16.mxu0 %v3445_v15 }
 0xbc3   :  { %3448 = vmatpush1.bf16.msra.mxu0 %v3447_v18 }
 0xbc4   :  { %3450 = vmatprep.subr.bf16.mxu0 %v3449_v19 }
 0xbc7   :  { %3452 = vmatpush1.bf16.msra.mxu0 %v3451_v22 }
 0xbc8   :  { %3454 = vmatprep.subr.bf16.mxu0 %v3453_v23 }
 0xbcb   :  { %3456 = vmatpush1.bf16.msra.mxu0 %v3455_v35 }
 0xbfe   :  { %v1965_v50 = vpop.permute.xlu1 %1964 }
 0xbff   :  { %v1967_v51 = vadd.f32 %v1965_v50, %v3793_v36 }
 0xc02   :  { %v2550_v56 = vpop.permute.xlu1 %2549 }
 0xc06   :  { %v2554_v60 = vpop.permute.xlu1 %2553 }
 0xc6f   :  { %v2390_v28 = vpop.f32.mrb[14].mxu1 }
 0xc70   :  { %v2391_v29 = vadd.f32 %v2390_v28, %v2317_v32  ;;  %v2392_v30 = vpop.f32.mrb[15].mxu1 }
 0xc71   :  { %v2393_v31 = vadd.f32 %v2392_v30, %v2321_v27 }
 0xc72   :  { %v2397_v33 = vmin.f32 %v2391_v29, 0.0  ;;  %vm2395_vm2 = vcmp.gt.f32.partialorder %v2391_v29, 0.0 }
 0xc73   :  { %v2398_v38 = vmin.f32 %v2393_v31, 0.0  ;;  %vm2396_vm1 = vcmp.gt.f32.partialorder %v2393_v31, 0.0 }
 0xc74   :  { %v2399_v39 = vmul.f32 1.442695, %v2397_v33 }
 0xc75   :  { %v2401_v40 = vmul.f32 1.442695, %v2398_v38 }
 0xc76   :  { %3529 = vpow2.f32 %v2399_v39 }
 0xc77   :  { %3531 = vpow2.f32 %v2401_v40 }
 0xc78   :  { %3533 = vrcp.f32 %v1967_v51 }
 0xc80   :  { %v3530_v37 = vpop.eup %3529 }
 0xc81   :  { %v3532_v41 = vpop.eup %3531  ;;  %v2615_v42 = vadd.f32 -1.0, %v3530_v37 }
 0xc82   :  { %v2616_v43 = vadd.f32 -1.0, %v3532_v41  ;;  %v3534_v52 = vpop.eup %3533 }
 0xc83   :  { %v2405_v45 = vsel %vm2395_vm2, %v2391_v29, %v2615_v42  ;;  %v1969_v53 = vmul.f32 %v3534_v52, %v3793_v36 }
 0xc84   :  { %v2406_v44 = vsel %vm2396_vm1, %v2393_v31, %v2616_v43 }
 0xc85   :  { %2543 = vmatprep.mubr.f32.mxu0 %v2406_v44  ;;  %v1970_v54 = vmul.f32 6.0, %v1969_v53 }
 0xc86   :  { %2544 = vmatmul.mubr.f32.vlgmr.msra.gmra.mrb[14].mxu0 %v2405_v45 }
 0xc87   :  { %v2609_v57 = vadd.f32 -3.0, %v1970_v54 }
 0xc89   :  { %v2561_v62 = vsel %vm2560_vm3, %v2609_v57, %v2550_v56 }
 0xc8a   :  { %v2563_v63 = vsel %vm2562_vm4, %v2561_v62, %v2554_v60 }
 0xd59   :  { %v2545_v47 = vpop.f32.mrb[14].mxu0 }
 0xd5a   :  { %v2546_v48 = vadd.f32 %v2545_v47, %v2477_v46  ;;  %v2547_v49 = vpop.f32.mrb[15].mxu0 }
 0xd5c   :  { %2557 = vrot.lane.b32.xlu1 %v2546_v48, %s3645_s25 }
 0xdce   :  { %v2558_v1 = vpop.permute.xlu1 %2557 }
 0xdcf   :  { %v2565_v3 = vsel %vm2564_vm5, %v2563_v63, %v2558_v1 }
 0xdd0   :  { %v2567_v4 = vsel %vm2566_vm6, %v2565_v3, 0.0 }
 0xdd1   :  { %2568 = vst [vmem:[#allocation8] sm:$0x3] %v2567_v4 }
 0xdd2   :  { %3613 = shalt.err (!%p3610_p0)
}
 0xdd3   :  { %s3614_s4 = scalar_lea.hbm %s3818_s3, 32 }
 0xdd4   :  { %p3615_p1 = scmp.ne.s32.totalorder %s3818_s3, %s3614_s4  ;;  %p3618_p2 = scmp.lt.u32.totalorder %s3614_s4, %s3818_s3 }
 0xdd6   :  { %p3620_p3 = pnand %p3618_p2, %p3615_p1 }
 0xdd8   :  { %3623 = shalt.err (!%p3620_p3)
}
 0xdd9   :  { %2578 = dma.vmem_to_hbm [thread:$0]  %s2576_s27, 32, %s3818_s3, [#allocation4]  }
 0xdda   :  { %3628 = dma.done.wait [#allocation4], 32  }
 0xddb   :  { %3629 = vsyncadd [#allocation4], 4294967264 }
 0xddc   :  { %2582 = vsyncpa [#allocation3], 1 }
 0xddd   :  { %2583 = vsyncpa [#allocation6], 1 }
 0xdde   :  { %2584 = vsyncpa [#allocation4], 1 }

</bundles_post_ra>
